<compile_context>
chip_gen: v6e
topology: v6e:2x2x1
jax: 0.10.0
libtpu: 0.0.40
codegen_flags: <defaults>
</compile_context>

<pallas_src>
import functools

import jax
import jax.numpy as jnp
import numpy as np
from jax import lax
from jax.experimental import pallas as pl
from jax.experimental.pallas import tpu as pltpu

NEG_SLOPE = 0.01                 # nn.LeakyReLU default negative_slope
MATMUL_DTYPE = jnp.bfloat16      # MXU-native on v5e/v6e/v7x; accumulation stays f32


# ---------------------------------------------------------------------------
# Fused whole-net kernel (channels on sublanes, flattened spatial on lanes)
# ---------------------------------------------------------------------------
def _postnet_kernel(x_ref, ep_ref, w_ref, b_ref, o_ref, *,
                    structure, H, W, w_stride, b_stride):
    """Whole-net fused forward for one image.

    x_ref  : (1, N,  HW) latent            (f32)
    ep_ref : (1, 2N, HW) entropy params    (f32)
    w_ref  : (n_conv*w_stride, w_cols) packed weights (bf16); conv j lives at
             rows [j*w_stride : j*w_stride+Cout], cols [:K] (K = 9*Cin or Cin)
    b_ref  : (n_conv*b_stride, 1) packed biases (f32)
    o_ref  : (1, N, HW) output             (f32)
    """
    HW = H * W

    # ---- hoisted per-tap edge-validity masks (row & col combined), (1, HW) f32
    pos = lax.broadcasted_iota(jnp.int32, (1, HW), 1)
    col = pos % W
    row_ok = (pos >= W, None, pos < (H - 1) * W)      # dy = 0, 1, 2
    col_ok = (col > 0, None, col < (W - 1))           # dx = 0, 1, 2
    tap_masks = []
    for dy in range(3):
        for dx in range(3):
            conds = [c for c in (row_ok[dy], col_ok[dx]) if c is not None]
            if not conds:
                tap_masks.append(None)                # center tap: always valid
            else:
                m = conds[0]
                for c in conds[1:]:
                    m = jnp.logical_and(m, c)
                tap_masks.append(m.astype(jnp.float32))

    # ---- packed-parameter walker (same order as _pack_params) ----
    conv_idx = [0]

    def next_wb(cout, k):
        j = conv_idx[0]
        conv_idx[0] = j + 1
        w = w_ref[j * w_stride: j * w_stride + cout, :k]    # (cout, k)  bf16
        b = b_ref[j * b_stride: j * b_stride + cout, :]     # (cout, 1)  f32
        return w, b

    def lrelu(a):
        # leaky_relu(a) == max(a, slope*a) for 0 < slope < 1
        return jnp.maximum(a, NEG_SLOPE * a)

    def conv3x3(x, cin, cout):
        # x: (cin, HW) f32.  Build the (9*cin, HW) im2col block with XLU rolls +
        # precomputed masks and contract against the packed (cout, 9*cin)
        # weight in ONE MXU dot (K = 36/72 instead of 9 dots with K = 4/8).
        w, b = next_wb(cout, 9 * cin)
        rows = []
        for tap in range(9):
            dy, dx = divmod(tap, 3)
            delta = (dy - 1) * W + (dx - 1)           # flat spatial offset of this tap
            xs = x if delta == 0 else pltpu.roll(x, shift=(-delta) % HW, axis=1)
            m = tap_masks[tap]
            if m is not None:
                xs = xs * m                           # zero wrapped / out-of-image taps
            rows.append(xs)
        patch = jnp.concatenate(rows, axis=0).astype(w.dtype)   # (9*cin, HW) bf16
        y = jnp.dot(w, patch, preferred_element_type=jnp.float32)
        return y + b

    def conv1x1(x, cin, cout):
        w, b = next_wb(cout, cin)
        return jnp.dot(w, x.astype(w.dtype), preferred_element_type=jnp.float32) + b

    def res_block(x, cin, cout, has_skip):
        h = lrelu(conv3x3(x, cin, cout))
        h = lrelu(conv3x3(h, cout, cout))
        identity = conv1x1(x, cin, cout) if has_skip else x
        return h + identity

    x = x_ref[0].astype(jnp.float32)       # (N,  HW)
    ep = ep_ref[0].astype(jnp.float32)     # (2N, HW)

    f_lat = x
    for cin, cout, has_skip in structure[0]:
        f_lat = res_block(f_lat, cin, cout, has_skip)
    f_ent = ep
    for cin, cout, has_skip in structure[1]:
        f_ent = res_block(f_ent, cin, cout, has_skip)
    ret = jnp.concatenate([f_lat, f_ent], axis=0)      # channel concat (dim=1 in NCHW)
    for cin, cout, has_skip in structure[2]:
        ret = res_block(ret, cin, cout, has_skip)

    o_ref[0] = (ret + x).astype(o_ref.dtype)


# ---------------------------------------------------------------------------
# Host-side parameter packing: torch OIHW conv weights -> two lane-dense slabs
# ---------------------------------------------------------------------------
def _pack_conv3x3(w):
    co, ci = int(w.shape[0]), int(w.shape[1])
    # (Cout, Cin, 3, 3) -> (Cout, 9*Cin); column = tap*Cin + cin, tap = dy*3+dx
    return np.transpose(np.asarray(w, np.float32), (0, 2, 3, 1)).reshape(co, 9 * ci)


def _pack_params(params):
    convs, structure = [], []
    for stage in ("enc_latent", "enc_entropy", "enc"):
        flags = []
        for p in params[stage]:
            co, ci = int(p["w1"].shape[0]), int(p["w1"].shape[1])
            has_skip = "ws" in p
            convs.append((_pack_conv3x3(p["w1"]), np.asarray(p["b1"], np.float32)))
            convs.append((_pack_conv3x3(p["w2"]), np.asarray(p["b2"], np.float32)))
            if has_skip:
                convs.append((np.asarray(p["ws"], np.float32),
                              np.asarray(p["bs"], np.float32)))
            flags.append((ci, co, has_skip))
        structure.append(tuple(flags))

    max_co = max(w.shape[0] for w, _ in convs)
    max_k = max(w.shape[1] for w, _ in convs)
    w_stride = 16 * int(np.ceil(max_co / 16))      # bf16 sublane tile = 16 rows
    b_stride = 8 * int(np.ceil(max_co / 8))        # f32  sublane tile = 8 rows
    w_cols = 128 * int(np.ceil(max_k / 128))       # lane tile = 128

    n = len(convs)
    wslab = np.zeros((n * w_stride, w_cols), np.float32)
    bslab = np.zeros((n * b_stride, 1), np.float32)
    for j, (w2, b) in enumerate(convs):
        co, k = w2.shape
        wslab[j * w_stride: j * w_stride + co, :k] = w2
        bslab[j * b_stride: j * b_stride + co, 0] = b

    return (jnp.asarray(wslab, dtype=MATMUL_DTYPE),   # pre-cast weights host-side
            jnp.asarray(bslab, dtype=jnp.float32),
            tuple(structure), w_stride, b_stride)


def _flops_per_image(structure, HW):
    flops = 0
    for stage in structure:
        for cin, cout, has_skip in stage:
            flops += 2 * (9 * cin) * cout * HW       # conv1
            flops += 2 * (9 * cout) * cout * HW      # conv2
            if has_skip:
                flops += 2 * cin * cout * HW         # 1x1 skip
    return flops


# ---------------------------------------------------------------------------
# Public builder: pack params once, return a jitted NCHW forward
# ---------------------------------------------------------------------------
def build_latent_postnet(params, N, H, W):
    wslab, bslab, structure, w_stride, b_stride = _pack_params(params)
    HW = H * W
    flops_img = _flops_per_image(structure, HW)
    param_bytes = int(wslab.size * wslab.dtype.itemsize
                      + bslab.size * bslab.dtype.itemsize)

    kernel = functools.partial(_postnet_kernel, structure=structure, H=H, W=W,
                               w_stride=w_stride, b_stride=b_stride)

    @jax.jit
    def fwd(x_nchw, ep_nchw):
        B = x_nchw.shape[0]
        # NCHW -> (B, C, H*W): channels on sublanes, lane-dense flattened spatial.
        x = x_nchw.reshape(B, N, HW)
        ep = ep_nchw.reshape(B, 2 * N, HW)

        bytes_accessed = int(param_bytes                     # params DMA'd once
                             + 4 * (x.size + ep.size)        # activations in
                             + 4 * (B * N * HW))             # output once

        out = pl.pallas_call(
            kernel,
            grid=(B,),
            in_specs=[
                pl.BlockSpec((1, N, HW), lambda b: (b, 0, 0)),
                pl.BlockSpec((1, 2 * N, HW), lambda b: (b, 0, 0)),
                # packed parameter slabs: constant index_map -> resident across grid
                pl.BlockSpec(wslab.shape, lambda b: (0, 0)),
                pl.BlockSpec(bslab.shape, lambda b: (0, 0)),
            ],
            out_specs=pl.BlockSpec((1, N, HW), lambda b: (b, 0, 0)),
            out_shape=jax.ShapeDtypeStruct((B, N, HW), x_nchw.dtype),
            compiler_params=pltpu.CompilerParams(
                dimension_semantics=("parallel",)),
            cost_estimate=pl.CostEstimate(flops=flops_img * B, transcendentals=0,
                                          bytes_accessed=bytes_accessed),
        )(x, ep, wslab, bslab)
        return out.reshape(B, N, H, W)

    return fwd


# ---------------------------------------------------------------------------
# Deterministic synthetic parameters (torch layouts; shapes from module __init__)
# ---------------------------------------------------------------------------
def _init_res_block(key, in_ch, out_ch, scale=0.1):
    k = jax.random.split(key, 6)
    p = {
        "w1": jax.random.normal(k[0], (out_ch, in_ch, 3, 3), jnp.float32) * scale,
        "b1": jax.random.normal(k[1], (out_ch,), jnp.float32) * scale,
        "w2": jax.random.normal(k[2], (out_ch, out_ch, 3, 3), jnp.float32) * scale,
        "b2": jax.random.normal(k[3], (out_ch,), jnp.float32) * scale,
    }
    if in_ch != out_ch:
        p["ws"] = jax.random.normal(k[4], (out_ch, in_ch), jnp.float32) * scale
        p["bs"] = jax.random.normal(k[5], (out_ch,), jnp.float32) * scale
    return p


def init_latent_postnet(key, N):
    k = jax.random.split(key, 6)
    return {
        "enc_latent": [_init_res_block(k[0], N, N), _init_res_block(k[1], N, N)],
        "enc_entropy": [_init_res_block(k[2], 2 * N, 2 * N),
                        _init_res_block(k[3], 2 * N, N)],
        "enc": [_init_res_block(k[4], 2 * N, 2 * N),
                _init_res_block(k[5], 2 * N, N)],
    }


# ---------------------------------------------------------------------------
# Pure-JAX reference (NCHW, mirrors the PyTorch forward exactly)
# ---------------------------------------------------------------------------
def _ref_conv(x, w, b):
    if w.ndim == 2:
        w = w[:, :, None, None]
    y = lax.conv_general_dilated(x, w, (1, 1), "SAME",
                                 dimension_numbers=("NCHW", "OIHW", "NCHW"))
    return y + b.reshape(1, -1, 1, 1)


def _ref_lrelu(x):
    return jnp.where(x >= 0, x, NEG_SLOPE * x)


def _ref_res_block(x, p):
    h = _ref_lrelu(_ref_conv(x, p["w1"], p["b1"]))
    h = _ref_lrelu(_ref_conv(h, p["w2"], p["b2"]))
    identity = _ref_conv(x, p["ws"], p["bs"]) if "ws" in p else x
    return h + identity


def ref_latent_postnet(params, x, ep):
    f_latent = x
    for p in params["enc_latent"]:
        f_latent = _ref_res_block(f_latent, p)
    f_ent = ep
    for p in params["enc_entropy"]:
        f_ent = _ref_res_block(f_ent, p)
    ret = jnp.concatenate([f_latent, f_ent], axis=1)
    for p in params["enc"]:
        ret = _ref_res_block(ret, p)
    return ret + x


# ---------------------------------------------------------------------------
if __name__ == "__main__":
    key = jax.random.PRNGKey(0)
    N, B, H, W = 4, 2, 16, 16
    kx, ke, kp = jax.random.split(key, 3)

    x = jax.random.normal(kx, (B, N, H, W), jnp.float32)              # NCHW, like torch
    entropy_params = jax.random.normal(ke, (B, 2 * N, H, W), jnp.float32)
    params = init_latent_postnet(kp, N)

    fwd = build_latent_postnet(params, N, H, W)
    out = jax.block_until_ready(fwd(x, entropy_params))
    ref = jax.block_until_ready(ref_latent_postnet(params, x, entropy_params))

    assert out.shape == (B, N, H, W)
    # bf16 MXU operands (f32 accumulation) -> loosened tolerance vs the f32 reference.
    np.testing.assert_allclose(np.asarray(out), np.asarray(ref), rtol=2e-2, atol=2e-2)
    print("KERNEL_OK")
</pallas_src>

<mosaic_0001>
module attributes {stable_mosaic.version = 11 : i64} {
  func.func @_postnet_kernel(%arg0: i32, %arg1: memref<1x4x256xf32, #tpu.memory_space<vmem>>, %arg2: memref<1x8x256xf32, #tpu.memory_space<vmem>>, %arg3: memref<224x128xbf16, #tpu.memory_space<vmem>>, %arg4: memref<112x1xf32, #tpu.memory_space<vmem>>, %arg5: memref<1x4x256xf32, #tpu.memory_space<vmem>>) attributes {dimension_semantics = [#tpu.dimension_semantics<parallel>], iteration_bounds = array<i64: 2>, scalar_prefetch = 0 : i64, scratch_operands = 0 : i64, tpu.core_type = #tpu.core_type<tc>, window_params = [{transform_indices = @transform_0, window_bounds = array<i64: 1, 4, 256>}, {transform_indices = @transform_1, window_bounds = array<i64: 1, 8, 256>}, {pipeline_mode = #tpu.pipeline_mode<synchronous>, transform_indices = @transform_2, window_bounds = array<i64: 224, 128>}, {pipeline_mode = #tpu.pipeline_mode<synchronous>, transform_indices = @transform_3, window_bounds = array<i64: 112, 1>}, {transform_indices = @transform_4, window_bounds = array<i64: 1, 4, 256>}]} {
    %0 = tpu.iota {dimensions = array<i32: 1>} : vector<1x256xi32>
    %c16_i32 = arith.constant 16 : i32
    %c0_i32 = arith.constant 0 : i32
    %1 = arith.cmpi eq, %c16_i32, %c0_i32 : i32
    %c1_i32 = arith.constant 1 : i32
    %2 = arith.select %1, %c1_i32, %c16_i32 : i32
    %3 = vector.broadcast %2 : i32 to vector<1x256xi32>
    %4 = arith.remsi %0, %3 : vector<1x256xi32>
    %c0_i32_0 = arith.constant 0 : i32
    %5 = vector.broadcast %c0_i32_0 : i32 to vector<1x256xi32>
    %6 = arith.cmpi ne, %4, %5 : vector<1x256xi32>
    %c0_i32_1 = arith.constant 0 : i32
    %7 = vector.broadcast %c0_i32_1 : i32 to vector<1x256xi32>
    %8 = arith.cmpi slt, %4, %7 : vector<1x256xi32>
    %c0_i32_2 = arith.constant 0 : i32
    %9 = arith.cmpi slt, %2, %c0_i32_2 : i32
    %10 = vector.broadcast %9 : i1 to vector<1x256xi1>
    %11 = vector.broadcast %10 : vector<1x256xi1> to vector<1x256xi1>
    %12 = arith.xori %8, %11 : vector<1x256xi1>
    %13 = arith.andi %12, %6 : vector<1x256xi1>
    %14 = vector.broadcast %2 : i32 to vector<1x256xi32>
    %15 = arith.addi %4, %14 : vector<1x256xi32>
    %16 = arith.select %13, %15, %4 : vector<1x256xi1>, vector<1x256xi32>
    %c16_i32_3 = arith.constant 16 : i32
    %17 = vector.broadcast %c16_i32_3 : i32 to vector<1x256xi32>
    %18 = arith.cmpi sge, %0, %17 : vector<1x256xi32>
    %c240_i32 = arith.constant 240 : i32
    %19 = vector.broadcast %c240_i32 : i32 to vector<1x256xi32>
    %20 = arith.cmpi slt, %0, %19 : vector<1x256xi32>
    %c0_i32_4 = arith.constant 0 : i32
    %21 = vector.broadcast %c0_i32_4 : i32 to vector<1x256xi32>
    %22 = arith.cmpi sgt, %16, %21 : vector<1x256xi32>
    %c15_i32 = arith.constant 15 : i32
    %23 = vector.broadcast %c15_i32 : i32 to vector<1x256xi32>
    %24 = arith.cmpi slt, %16, %23 : vector<1x256xi32>
    %25 = arith.andi %18, %22 : vector<1x256xi1>
    %26 = arith.extui %25 : vector<1x256xi1> to vector<1x256xi32>
    %27 = arith.sitofp %26 : vector<1x256xi32> to vector<1x256xf32>
    %28 = arith.extui %18 : vector<1x256xi1> to vector<1x256xi32>
    %29 = arith.sitofp %28 : vector<1x256xi32> to vector<1x256xf32>
    %30 = arith.andi %18, %24 : vector<1x256xi1>
    %31 = arith.extui %30 : vector<1x256xi1> to vector<1x256xi32>
    %32 = arith.sitofp %31 : vector<1x256xi32> to vector<1x256xf32>
    %33 = arith.extui %22 : vector<1x256xi1> to vector<1x256xi32>
    %34 = arith.sitofp %33 : vector<1x256xi32> to vector<1x256xf32>
    %35 = arith.extui %24 : vector<1x256xi1> to vector<1x256xi32>
    %36 = arith.sitofp %35 : vector<1x256xi32> to vector<1x256xf32>
    %37 = arith.andi %20, %22 : vector<1x256xi1>
    %38 = arith.extui %37 : vector<1x256xi1> to vector<1x256xi32>
    %39 = arith.sitofp %38 : vector<1x256xi32> to vector<1x256xf32>
    %40 = arith.extui %20 : vector<1x256xi1> to vector<1x256xi32>
    %41 = arith.sitofp %40 : vector<1x256xi32> to vector<1x256xf32>
    %42 = arith.andi %20, %24 : vector<1x256xi1>
    %43 = arith.extui %42 : vector<1x256xi1> to vector<1x256xi32>
    %44 = arith.sitofp %43 : vector<1x256xi32> to vector<1x256xf32>
    %c0 = arith.constant 0 : index
    %c0_5 = arith.constant 0 : index
    %c0_6 = arith.constant 0 : index
    %45 = vector.load %arg1[%c0, %c0_5, %c0_6] : memref<1x4x256xf32, #tpu.memory_space<vmem>>, vector<1x4x256xf32>
    %46 = vector.shape_cast %45 : vector<1x4x256xf32> to vector<4x256xf32>
    %c0_7 = arith.constant 0 : index
    %c0_8 = arith.constant 0 : index
    %c0_9 = arith.constant 0 : index
    %47 = vector.load %arg2[%c0_7, %c0_8, %c0_9] : memref<1x8x256xf32, #tpu.memory_space<vmem>>, vector<1x8x256xf32>
    %48 = vector.shape_cast %47 : vector<1x8x256xf32> to vector<8x256xf32>
    %c0_10 = arith.constant 0 : index
    %c0_11 = arith.constant 0 : index
    %49 = vector.load %arg3[%c0_10, %c0_11] : memref<224x128xbf16, #tpu.memory_space<vmem>>, vector<4x36xbf16>
    %c0_12 = arith.constant 0 : index
    %c0_13 = arith.constant 0 : index
    %50 = vector.load %arg4[%c0_12, %c0_13] : memref<112x1xf32, #tpu.memory_space<vmem>>, vector<4x1xf32>
    %c17_i32 = arith.constant 17 : i32
    %51 = tpu.dynamic_rotate %46 by %c17_i32 dim 1 : vector<4x256xf32>, i32 -> vector<4x256xf32>
    %52 = vector.broadcast %27 : vector<1x256xf32> to vector<4x256xf32>
    %53 = arith.mulf %51, %52 : vector<4x256xf32>
    %c16_i32_14 = arith.constant 16 : i32
    %54 = tpu.dynamic_rotate %46 by %c16_i32_14 dim 1 : vector<4x256xf32>, i32 -> vector<4x256xf32>
    %55 = vector.broadcast %29 : vector<1x256xf32> to vector<4x256xf32>
    %56 = arith.mulf %54, %55 : vector<4x256xf32>
    %c15_i32_15 = arith.constant 15 : i32
    %57 = tpu.dynamic_rotate %46 by %c15_i32_15 dim 1 : vector<4x256xf32>, i32 -> vector<4x256xf32>
    %58 = vector.broadcast %32 : vector<1x256xf32> to vector<4x256xf32>
    %59 = arith.mulf %57, %58 : vector<4x256xf32>
    %c1_i32_16 = arith.constant 1 : i32
    %60 = tpu.dynamic_rotate %46 by %c1_i32_16 dim 1 : vector<4x256xf32>, i32 -> vector<4x256xf32>
    %61 = vector.broadcast %34 : vector<1x256xf32> to vector<4x256xf32>
    %62 = arith.mulf %60, %61 : vector<4x256xf32>
    %c255_i32 = arith.constant 255 : i32
    %63 = tpu.dynamic_rotate %46 by %c255_i32 dim 1 : vector<4x256xf32>, i32 -> vector<4x256xf32>
    %64 = vector.broadcast %36 : vector<1x256xf32> to vector<4x256xf32>
    %65 = arith.mulf %63, %64 : vector<4x256xf32>
    %c241_i32 = arith.constant 241 : i32
    %66 = tpu.dynamic_rotate %46 by %c241_i32 dim 1 : vector<4x256xf32>, i32 -> vector<4x256xf32>
    %67 = vector.broadcast %39 : vector<1x256xf32> to vector<4x256xf32>
    %68 = arith.mulf %66, %67 : vector<4x256xf32>
    %c240_i32_17 = arith.constant 240 : i32
    %69 = tpu.dynamic_rotate %46 by %c240_i32_17 dim 1 : vector<4x256xf32>, i32 -> vector<4x256xf32>
    %70 = vector.broadcast %41 : vector<1x256xf32> to vector<4x256xf32>
    %71 = arith.mulf %69, %70 : vector<4x256xf32>
    %c239_i32 = arith.constant 239 : i32
    %72 = tpu.dynamic_rotate %46 by %c239_i32 dim 1 : vector<4x256xf32>, i32 -> vector<4x256xf32>
    %73 = vector.broadcast %44 : vector<1x256xf32> to vector<4x256xf32>
    %74 = arith.mulf %72, %73 : vector<4x256xf32>
    %75 = tpu.concatenate %53, %56, %59, %62, %46, %65, %68, %71, %74 in 0 : vector<4x256xf32>, vector<4x256xf32>, vector<4x256xf32>, vector<4x256xf32>, vector<4x256xf32>, vector<4x256xf32>, vector<4x256xf32>, vector<4x256xf32>, vector<4x256xf32> -> vector<36x256xf32>
    %76 = arith.truncf %75 : vector<36x256xf32> to vector<36x256xbf16>
    %cst = arith.constant dense<0.000000e+00> : vector<4x256xf32>
    %77 = tpu.matmul %49, %76, %cst {dimension_numbers = #tpu.dot_dimension_numbers<[1], [0], [0], [1], [0, 0, 1, 1], [], []>} : vector<4x36xbf16>, vector<36x256xbf16>, vector<4x256xf32> -> vector<4x256xf32>
    %78 = vector.broadcast %50 : vector<4x1xf32> to vector<4x256xf32>
    %79 = arith.addf %77, %78 : vector<4x256xf32>
    %cst_18 = arith.constant 0.00999999977 : f32
    %80 = vector.broadcast %cst_18 : f32 to vector<4x256xf32>
    %81 = arith.mulf %80, %79 : vector<4x256xf32>
    %82 = arith.maximumf %79, %81 : vector<4x256xf32>
    %c16 = arith.constant 16 : index
    %c0_19 = arith.constant 0 : index
    %83 = vector.load %arg3[%c16, %c0_19] : memref<224x128xbf16, #tpu.memory_space<vmem>>, vector<4x36xbf16>
    %c8 = arith.constant 8 : index
    %c0_20 = arith.constant 0 : index
    %84 = vector.load %arg4[%c8, %c0_20] : memref<112x1xf32, #tpu.memory_space<vmem>>, vector<4x1xf32>
    %c17_i32_21 = arith.constant 17 : i32
    %85 = tpu.dynamic_rotate %82 by %c17_i32_21 dim 1 : vector<4x256xf32>, i32 -> vector<4x256xf32>
    %86 = vector.broadcast %27 : vector<1x256xf32> to vector<4x256xf32>
    %87 = arith.mulf %85, %86 : vector<4x256xf32>
    %c16_i32_22 = arith.constant 16 : i32
    %88 = tpu.dynamic_rotate %82 by %c16_i32_22 dim 1 : vector<4x256xf32>, i32 -> vector<4x256xf32>
    %89 = vector.broadcast %29 : vector<1x256xf32> to vector<4x256xf32>
    %90 = arith.mulf %88, %89 : vector<4x256xf32>
    %c15_i32_23 = arith.constant 15 : i32
    %91 = tpu.dynamic_rotate %82 by %c15_i32_23 dim 1 : vector<4x256xf32>, i32 -> vector<4x256xf32>
    %92 = vector.broadcast %32 : vector<1x256xf32> to vector<4x256xf32>
    %93 = arith.mulf %91, %92 : vector<4x256xf32>
    %c1_i32_24 = arith.constant 1 : i32
    %94 = tpu.dynamic_rotate %82 by %c1_i32_24 dim 1 : vector<4x256xf32>, i32 -> vector<4x256xf32>
    %95 = vector.broadcast %34 : vector<1x256xf32> to vector<4x256xf32>
    %96 = arith.mulf %94, %95 : vector<4x256xf32>
    %c255_i32_25 = arith.constant 255 : i32
    %97 = tpu.dynamic_rotate %82 by %c255_i32_25 dim 1 : vector<4x256xf32>, i32 -> vector<4x256xf32>
    %98 = vector.broadcast %36 : vector<1x256xf32> to vector<4x256xf32>
    %99 = arith.mulf %97, %98 : vector<4x256xf32>
    %c241_i32_26 = arith.constant 241 : i32
    %100 = tpu.dynamic_rotate %82 by %c241_i32_26 dim 1 : vector<4x256xf32>, i32 -> vector<4x256xf32>
    %101 = vector.broadcast %39 : vector<1x256xf32> to vector<4x256xf32>
    %102 = arith.mulf %100, %101 : vector<4x256xf32>
    %c240_i32_27 = arith.constant 240 : i32
    %103 = tpu.dynamic_rotate %82 by %c240_i32_27 dim 1 : vector<4x256xf32>, i32 -> vector<4x256xf32>
    %104 = vector.broadcast %41 : vector<1x256xf32> to vector<4x256xf32>
    %105 = arith.mulf %103, %104 : vector<4x256xf32>
    %c239_i32_28 = arith.constant 239 : i32
    %106 = tpu.dynamic_rotate %82 by %c239_i32_28 dim 1 : vector<4x256xf32>, i32 -> vector<4x256xf32>
    %107 = vector.broadcast %44 : vector<1x256xf32> to vector<4x256xf32>
    %108 = arith.mulf %106, %107 : vector<4x256xf32>
    %109 = tpu.concatenate %87, %90, %93, %96, %82, %99, %102, %105, %108 in 0 : vector<4x256xf32>, vector<4x256xf32>, vector<4x256xf32>, vector<4x256xf32>, vector<4x256xf32>, vector<4x256xf32>, vector<4x256xf32>, vector<4x256xf32>, vector<4x256xf32> -> vector<36x256xf32>
    %110 = arith.truncf %109 : vector<36x256xf32> to vector<36x256xbf16>
    %cst_29 = arith.constant dense<0.000000e+00> : vector<4x256xf32>
    %111 = tpu.matmul %83, %110, %cst_29 {dimension_numbers = #tpu.dot_dimension_numbers<[1], [0], [0], [1], [0, 0, 1, 1], [], []>} : vector<4x36xbf16>, vector<36x256xbf16>, vector<4x256xf32> -> vector<4x256xf32>
    %112 = vector.broadcast %84 : vector<4x1xf32> to vector<4x256xf32>
    %113 = arith.addf %111, %112 : vector<4x256xf32>
    %cst_30 = arith.constant 0.00999999977 : f32
    %114 = vector.broadcast %cst_30 : f32 to vector<4x256xf32>
    %115 = arith.mulf %114, %113 : vector<4x256xf32>
    %116 = arith.maximumf %113, %115 : vector<4x256xf32>
    %117 = arith.addf %116, %46 : vector<4x256xf32>
    %c32 = arith.constant 32 : index
    %c0_31 = arith.constant 0 : index
    %118 = vector.load %arg3[%c32, %c0_31] : memref<224x128xbf16, #tpu.memory_space<vmem>>, vector<4x36xbf16>
    %c16_32 = arith.constant 16 : index
    %c0_33 = arith.constant 0 : index
    %119 = vector.load %arg4[%c16_32, %c0_33] : memref<112x1xf32, #tpu.memory_space<vmem>>, vector<4x1xf32>
    %c17_i32_34 = arith.constant 17 : i32
    %120 = tpu.dynamic_rotate %117 by %c17_i32_34 dim 1 : vector<4x256xf32>, i32 -> vector<4x256xf32>
    %121 = vector.broadcast %27 : vector<1x256xf32> to vector<4x256xf32>
    %122 = arith.mulf %120, %121 : vector<4x256xf32>
    %c16_i32_35 = arith.constant 16 : i32
    %123 = tpu.dynamic_rotate %117 by %c16_i32_35 dim 1 : vector<4x256xf32>, i32 -> vector<4x256xf32>
    %124 = vector.broadcast %29 : vector<1x256xf32> to vector<4x256xf32>
    %125 = arith.mulf %123, %124 : vector<4x256xf32>
    %c15_i32_36 = arith.constant 15 : i32
    %126 = tpu.dynamic_rotate %117 by %c15_i32_36 dim 1 : vector<4x256xf32>, i32 -> vector<4x256xf32>
    %127 = vector.broadcast %32 : vector<1x256xf32> to vector<4x256xf32>
    %128 = arith.mulf %126, %127 : vector<4x256xf32>
    %c1_i32_37 = arith.constant 1 : i32
    %129 = tpu.dynamic_rotate %117 by %c1_i32_37 dim 1 : vector<4x256xf32>, i32 -> vector<4x256xf32>
    %130 = vector.broadcast %34 : vector<1x256xf32> to vector<4x256xf32>
    %131 = arith.mulf %129, %130 : vector<4x256xf32>
    %c255_i32_38 = arith.constant 255 : i32
    %132 = tpu.dynamic_rotate %117 by %c255_i32_38 dim 1 : vector<4x256xf32>, i32 -> vector<4x256xf32>
    %133 = vector.broadcast %36 : vector<1x256xf32> to vector<4x256xf32>
    %134 = arith.mulf %132, %133 : vector<4x256xf32>
    %c241_i32_39 = arith.constant 241 : i32
    %135 = tpu.dynamic_rotate %117 by %c241_i32_39 dim 1 : vector<4x256xf32>, i32 -> vector<4x256xf32>
    %136 = vector.broadcast %39 : vector<1x256xf32> to vector<4x256xf32>
    %137 = arith.mulf %135, %136 : vector<4x256xf32>
    %c240_i32_40 = arith.constant 240 : i32
    %138 = tpu.dynamic_rotate %117 by %c240_i32_40 dim 1 : vector<4x256xf32>, i32 -> vector<4x256xf32>
    %139 = vector.broadcast %41 : vector<1x256xf32> to vector<4x256xf32>
    %140 = arith.mulf %138, %139 : vector<4x256xf32>
    %c239_i32_41 = arith.constant 239 : i32
    %141 = tpu.dynamic_rotate %117 by %c239_i32_41 dim 1 : vector<4x256xf32>, i32 -> vector<4x256xf32>
    %142 = vector.broadcast %44 : vector<1x256xf32> to vector<4x256xf32>
    %143 = arith.mulf %141, %142 : vector<4x256xf32>
    %144 = tpu.concatenate %122, %125, %128, %131, %117, %134, %137, %140, %143 in 0 : vector<4x256xf32>, vector<4x256xf32>, vector<4x256xf32>, vector<4x256xf32>, vector<4x256xf32>, vector<4x256xf32>, vector<4x256xf32>, vector<4x256xf32>, vector<4x256xf32> -> vector<36x256xf32>
    %145 = arith.truncf %144 : vector<36x256xf32> to vector<36x256xbf16>
    %cst_42 = arith.constant dense<0.000000e+00> : vector<4x256xf32>
    %146 = tpu.matmul %118, %145, %cst_42 {dimension_numbers = #tpu.dot_dimension_numbers<[1], [0], [0], [1], [0, 0, 1, 1], [], []>} : vector<4x36xbf16>, vector<36x256xbf16>, vector<4x256xf32> -> vector<4x256xf32>
    %147 = vector.broadcast %119 : vector<4x1xf32> to vector<4x256xf32>
    %148 = arith.addf %146, %147 : vector<4x256xf32>
    %cst_43 = arith.constant 0.00999999977 : f32
    %149 = vector.broadcast %cst_43 : f32 to vector<4x256xf32>
    %150 = arith.mulf %149, %148 : vector<4x256xf32>
    %151 = arith.maximumf %148, %150 : vector<4x256xf32>
    %c48 = arith.constant 48 : index
    %c0_44 = arith.constant 0 : index
    %152 = vector.load %arg3[%c48, %c0_44] : memref<224x128xbf16, #tpu.memory_space<vmem>>, vector<4x36xbf16>
    %c24 = arith.constant 24 : index
    %c0_45 = arith.constant 0 : index
    %153 = vector.load %arg4[%c24, %c0_45] : memref<112x1xf32, #tpu.memory_space<vmem>>, vector<4x1xf32>
    %c17_i32_46 = arith.constant 17 : i32
    %154 = tpu.dynamic_rotate %151 by %c17_i32_46 dim 1 : vector<4x256xf32>, i32 -> vector<4x256xf32>
    %155 = vector.broadcast %27 : vector<1x256xf32> to vector<4x256xf32>
    %156 = arith.mulf %154, %155 : vector<4x256xf32>
    %c16_i32_47 = arith.constant 16 : i32
    %157 = tpu.dynamic_rotate %151 by %c16_i32_47 dim 1 : vector<4x256xf32>, i32 -> vector<4x256xf32>
    %158 = vector.broadcast %29 : vector<1x256xf32> to vector<4x256xf32>
    %159 = arith.mulf %157, %158 : vector<4x256xf32>
    %c15_i32_48 = arith.constant 15 : i32
    %160 = tpu.dynamic_rotate %151 by %c15_i32_48 dim 1 : vector<4x256xf32>, i32 -> vector<4x256xf32>
    %161 = vector.broadcast %32 : vector<1x256xf32> to vector<4x256xf32>
    %162 = arith.mulf %160, %161 : vector<4x256xf32>
    %c1_i32_49 = arith.constant 1 : i32
    %163 = tpu.dynamic_rotate %151 by %c1_i32_49 dim 1 : vector<4x256xf32>, i32 -> vector<4x256xf32>
    %164 = vector.broadcast %34 : vector<1x256xf32> to vector<4x256xf32>
    %165 = arith.mulf %163, %164 : vector<4x256xf32>
    %c255_i32_50 = arith.constant 255 : i32
    %166 = tpu.dynamic_rotate %151 by %c255_i32_50 dim 1 : vector<4x256xf32>, i32 -> vector<4x256xf32>
    %167 = vector.broadcast %36 : vector<1x256xf32> to vector<4x256xf32>
    %168 = arith.mulf %166, %167 : vector<4x256xf32>
    %c241_i32_51 = arith.constant 241 : i32
    %169 = tpu.dynamic_rotate %151 by %c241_i32_51 dim 1 : vector<4x256xf32>, i32 -> vector<4x256xf32>
    %170 = vector.broadcast %39 : vector<1x256xf32> to vector<4x256xf32>
    %171 = arith.mulf %169, %170 : vector<4x256xf32>
    %c240_i32_52 = arith.constant 240 : i32
    %172 = tpu.dynamic_rotate %151 by %c240_i32_52 dim 1 : vector<4x256xf32>, i32 -> vector<4x256xf32>
    %173 = vector.broadcast %41 : vector<1x256xf32> to vector<4x256xf32>
    %174 = arith.mulf %172, %173 : vector<4x256xf32>
    %c239_i32_53 = arith.constant 239 : i32
    %175 = tpu.dynamic_rotate %151 by %c239_i32_53 dim 1 : vector<4x256xf32>, i32 -> vector<4x256xf32>
    %176 = vector.broadcast %44 : vector<1x256xf32> to vector<4x256xf32>
    %177 = arith.mulf %175, %176 : vector<4x256xf32>
    %178 = tpu.concatenate %156, %159, %162, %165, %151, %168, %171, %174, %177 in 0 : vector<4x256xf32>, vector<4x256xf32>, vector<4x256xf32>, vector<4x256xf32>, vector<4x256xf32>, vector<4x256xf32>, vector<4x256xf32>, vector<4x256xf32>, vector<4x256xf32> -> vector<36x256xf32>
    %179 = arith.truncf %178 : vector<36x256xf32> to vector<36x256xbf16>
    %cst_54 = arith.constant dense<0.000000e+00> : vector<4x256xf32>
    %180 = tpu.matmul %152, %179, %cst_54 {dimension_numbers = #tpu.dot_dimension_numbers<[1], [0], [0], [1], [0, 0, 1, 1], [], []>} : vector<4x36xbf16>, vector<36x256xbf16>, vector<4x256xf32> -> vector<4x256xf32>
    %181 = vector.broadcast %153 : vector<4x1xf32> to vector<4x256xf32>
    %182 = arith.addf %180, %181 : vector<4x256xf32>
    %cst_55 = arith.constant 0.00999999977 : f32
    %183 = vector.broadcast %cst_55 : f32 to vector<4x256xf32>
    %184 = arith.mulf %183, %182 : vector<4x256xf32>
    %185 = arith.maximumf %182, %184 : vector<4x256xf32>
    %186 = arith.addf %185, %117 : vector<4x256xf32>
    %c64 = arith.constant 64 : index
    %c0_56 = arith.constant 0 : index
    %187 = vector.load %arg3[%c64, %c0_56] : memref<224x128xbf16, #tpu.memory_space<vmem>>, vector<8x72xbf16>
    %c32_57 = arith.constant 32 : index
    %c0_58 = arith.constant 0 : index
    %188 = vector.load %arg4[%c32_57, %c0_58] : memref<112x1xf32, #tpu.memory_space<vmem>>, vector<8x1xf32>
    %c17_i32_59 = arith.constant 17 : i32
    %189 = tpu.dynamic_rotate %48 by %c17_i32_59 dim 1 : vector<8x256xf32>, i32 -> vector<8x256xf32>
    %190 = vector.broadcast %27 : vector<1x256xf32> to vector<8x256xf32>
    %191 = arith.mulf %189, %190 : vector<8x256xf32>
    %c16_i32_60 = arith.constant 16 : i32
    %192 = tpu.dynamic_rotate %48 by %c16_i32_60 dim 1 : vector<8x256xf32>, i32 -> vector<8x256xf32>
    %193 = vector.broadcast %29 : vector<1x256xf32> to vector<8x256xf32>
    %194 = arith.mulf %192, %193 : vector<8x256xf32>
    %c15_i32_61 = arith.constant 15 : i32
    %195 = tpu.dynamic_rotate %48 by %c15_i32_61 dim 1 : vector<8x256xf32>, i32 -> vector<8x256xf32>
    %196 = vector.broadcast %32 : vector<1x256xf32> to vector<8x256xf32>
    %197 = arith.mulf %195, %196 : vector<8x256xf32>
    %c1_i32_62 = arith.constant 1 : i32
    %198 = tpu.dynamic_rotate %48 by %c1_i32_62 dim 1 : vector<8x256xf32>, i32 -> vector<8x256xf32>
    %199 = vector.broadcast %34 : vector<1x256xf32> to vector<8x256xf32>
    %200 = arith.mulf %198, %199 : vector<8x256xf32>
    %c255_i32_63 = arith.constant 255 : i32
    %201 = tpu.dynamic_rotate %48 by %c255_i32_63 dim 1 : vector<8x256xf32>, i32 -> vector<8x256xf32>
    %202 = vector.broadcast %36 : vector<1x256xf32> to vector<8x256xf32>
    %203 = arith.mulf %201, %202 : vector<8x256xf32>
    %c241_i32_64 = arith.constant 241 : i32
    %204 = tpu.dynamic_rotate %48 by %c241_i32_64 dim 1 : vector<8x256xf32>, i32 -> vector<8x256xf32>
    %205 = vector.broadcast %39 : vector<1x256xf32> to vector<8x256xf32>
    %206 = arith.mulf %204, %205 : vector<8x256xf32>
    %c240_i32_65 = arith.constant 240 : i32
    %207 = tpu.dynamic_rotate %48 by %c240_i32_65 dim 1 : vector<8x256xf32>, i32 -> vector<8x256xf32>
    %208 = vector.broadcast %41 : vector<1x256xf32> to vector<8x256xf32>
    %209 = arith.mulf %207, %208 : vector<8x256xf32>
    %c239_i32_66 = arith.constant 239 : i32
    %210 = tpu.dynamic_rotate %48 by %c239_i32_66 dim 1 : vector<8x256xf32>, i32 -> vector<8x256xf32>
    %211 = vector.broadcast %44 : vector<1x256xf32> to vector<8x256xf32>
    %212 = arith.mulf %210, %211 : vector<8x256xf32>
    %213 = tpu.concatenate %191, %194, %197, %200, %48, %203, %206, %209, %212 in 0 : vector<8x256xf32>, vector<8x256xf32>, vector<8x256xf32>, vector<8x256xf32>, vector<8x256xf32>, vector<8x256xf32>, vector<8x256xf32>, vector<8x256xf32>, vector<8x256xf32> -> vector<72x256xf32>
    %214 = arith.truncf %213 : vector<72x256xf32> to vector<72x256xbf16>
    %cst_67 = arith.constant dense<0.000000e+00> : vector<8x256xf32>
    %215 = tpu.matmul %187, %214, %cst_67 {dimension_numbers = #tpu.dot_dimension_numbers<[1], [0], [0], [1], [0, 0, 1, 1], [], []>} : vector<8x72xbf16>, vector<72x256xbf16>, vector<8x256xf32> -> vector<8x256xf32>
    %216 = vector.broadcast %188 : vector<8x1xf32> to vector<8x256xf32>
    %217 = arith.addf %215, %216 : vector<8x256xf32>
    %cst_68 = arith.constant 0.00999999977 : f32
    %218 = vector.broadcast %cst_68 : f32 to vector<8x256xf32>
    %219 = arith.mulf %218, %217 : vector<8x256xf32>
    %220 = arith.maximumf %217, %219 : vector<8x256xf32>
    %c80 = arith.constant 80 : index
    %c0_69 = arith.constant 0 : index
    %221 = vector.load %arg3[%c80, %c0_69] : memref<224x128xbf16, #tpu.memory_space<vmem>>, vector<8x72xbf16>
    %c40 = arith.constant 40 : index
    %c0_70 = arith.constant 0 : index
    %222 = vector.load %arg4[%c40, %c0_70] : memref<112x1xf32, #tpu.memory_space<vmem>>, vector<8x1xf32>
    %c17_i32_71 = arith.constant 17 : i32
    %223 = tpu.dynamic_rotate %220 by %c17_i32_71 dim 1 : vector<8x256xf32>, i32 -> vector<8x256xf32>
    %224 = vector.broadcast %27 : vector<1x256xf32> to vector<8x256xf32>
    %225 = arith.mulf %223, %224 : vector<8x256xf32>
    %c16_i32_72 = arith.constant 16 : i32
    %226 = tpu.dynamic_rotate %220 by %c16_i32_72 dim 1 : vector<8x256xf32>, i32 -> vector<8x256xf32>
    %227 = vector.broadcast %29 : vector<1x256xf32> to vector<8x256xf32>
    %228 = arith.mulf %226, %227 : vector<8x256xf32>
    %c15_i32_73 = arith.constant 15 : i32
    %229 = tpu.dynamic_rotate %220 by %c15_i32_73 dim 1 : vector<8x256xf32>, i32 -> vector<8x256xf32>
    %230 = vector.broadcast %32 : vector<1x256xf32> to vector<8x256xf32>
    %231 = arith.mulf %229, %230 : vector<8x256xf32>
    %c1_i32_74 = arith.constant 1 : i32
    %232 = tpu.dynamic_rotate %220 by %c1_i32_74 dim 1 : vector<8x256xf32>, i32 -> vector<8x256xf32>
    %233 = vector.broadcast %34 : vector<1x256xf32> to vector<8x256xf32>
    %234 = arith.mulf %232, %233 : vector<8x256xf32>
    %c255_i32_75 = arith.constant 255 : i32
    %235 = tpu.dynamic_rotate %220 by %c255_i32_75 dim 1 : vector<8x256xf32>, i32 -> vector<8x256xf32>
    %236 = vector.broadcast %36 : vector<1x256xf32> to vector<8x256xf32>
    %237 = arith.mulf %235, %236 : vector<8x256xf32>
    %c241_i32_76 = arith.constant 241 : i32
    %238 = tpu.dynamic_rotate %220 by %c241_i32_76 dim 1 : vector<8x256xf32>, i32 -> vector<8x256xf32>
    %239 = vector.broadcast %39 : vector<1x256xf32> to vector<8x256xf32>
    %240 = arith.mulf %238, %239 : vector<8x256xf32>
    %c240_i32_77 = arith.constant 240 : i32
    %241 = tpu.dynamic_rotate %220 by %c240_i32_77 dim 1 : vector<8x256xf32>, i32 -> vector<8x256xf32>
    %242 = vector.broadcast %41 : vector<1x256xf32> to vector<8x256xf32>
    %243 = arith.mulf %241, %242 : vector<8x256xf32>
    %c239_i32_78 = arith.constant 239 : i32
    %244 = tpu.dynamic_rotate %220 by %c239_i32_78 dim 1 : vector<8x256xf32>, i32 -> vector<8x256xf32>
    %245 = vector.broadcast %44 : vector<1x256xf32> to vector<8x256xf32>
    %246 = arith.mulf %244, %245 : vector<8x256xf32>
    %247 = tpu.concatenate %225, %228, %231, %234, %220, %237, %240, %243, %246 in 0 : vector<8x256xf32>, vector<8x256xf32>, vector<8x256xf32>, vector<8x256xf32>, vector<8x256xf32>, vector<8x256xf32>, vector<8x256xf32>, vector<8x256xf32>, vector<8x256xf32> -> vector<72x256xf32>
    %248 = arith.truncf %247 : vector<72x256xf32> to vector<72x256xbf16>
    %cst_79 = arith.constant dense<0.000000e+00> : vector<8x256xf32>
    %249 = tpu.matmul %221, %248, %cst_79 {dimension_numbers = #tpu.dot_dimension_numbers<[1], [0], [0], [1], [0, 0, 1, 1], [], []>} : vector<8x72xbf16>, vector<72x256xbf16>, vector<8x256xf32> -> vector<8x256xf32>
    %250 = vector.broadcast %222 : vector<8x1xf32> to vector<8x256xf32>
    %251 = arith.addf %249, %250 : vector<8x256xf32>
    %cst_80 = arith.constant 0.00999999977 : f32
    %252 = vector.broadcast %cst_80 : f32 to vector<8x256xf32>
    %253 = arith.mulf %252, %251 : vector<8x256xf32>
    %254 = arith.maximumf %251, %253 : vector<8x256xf32>
    %255 = arith.addf %254, %48 : vector<8x256xf32>
    %c96 = arith.constant 96 : index
    %c0_81 = arith.constant 0 : index
    %256 = vector.load %arg3[%c96, %c0_81] : memref<224x128xbf16, #tpu.memory_space<vmem>>, vector<4x72xbf16>
    %c48_82 = arith.constant 48 : index
    %c0_83 = arith.constant 0 : index
    %257 = vector.load %arg4[%c48_82, %c0_83] : memref<112x1xf32, #tpu.memory_space<vmem>>, vector<4x1xf32>
    %c17_i32_84 = arith.constant 17 : i32
    %258 = tpu.dynamic_rotate %255 by %c17_i32_84 dim 1 : vector<8x256xf32>, i32 -> vector<8x256xf32>
    %259 = vector.broadcast %27 : vector<1x256xf32> to vector<8x256xf32>
    %260 = arith.mulf %258, %259 : vector<8x256xf32>
    %c16_i32_85 = arith.constant 16 : i32
    %261 = tpu.dynamic_rotate %255 by %c16_i32_85 dim 1 : vector<8x256xf32>, i32 -> vector<8x256xf32>
    %262 = vector.broadcast %29 : vector<1x256xf32> to vector<8x256xf32>
    %263 = arith.mulf %261, %262 : vector<8x256xf32>
    %c15_i32_86 = arith.constant 15 : i32
    %264 = tpu.dynamic_rotate %255 by %c15_i32_86 dim 1 : vector<8x256xf32>, i32 -> vector<8x256xf32>
    %265 = vector.broadcast %32 : vector<1x256xf32> to vector<8x256xf32>
    %266 = arith.mulf %264, %265 : vector<8x256xf32>
    %c1_i32_87 = arith.constant 1 : i32
    %267 = tpu.dynamic_rotate %255 by %c1_i32_87 dim 1 : vector<8x256xf32>, i32 -> vector<8x256xf32>
    %268 = vector.broadcast %34 : vector<1x256xf32> to vector<8x256xf32>
    %269 = arith.mulf %267, %268 : vector<8x256xf32>
    %c255_i32_88 = arith.constant 255 : i32
    %270 = tpu.dynamic_rotate %255 by %c255_i32_88 dim 1 : vector<8x256xf32>, i32 -> vector<8x256xf32>
    %271 = vector.broadcast %36 : vector<1x256xf32> to vector<8x256xf32>
    %272 = arith.mulf %270, %271 : vector<8x256xf32>
    %c241_i32_89 = arith.constant 241 : i32
    %273 = tpu.dynamic_rotate %255 by %c241_i32_89 dim 1 : vector<8x256xf32>, i32 -> vector<8x256xf32>
    %274 = vector.broadcast %39 : vector<1x256xf32> to vector<8x256xf32>
    %275 = arith.mulf %273, %274 : vector<8x256xf32>
    %c240_i32_90 = arith.constant 240 : i32
    %276 = tpu.dynamic_rotate %255 by %c240_i32_90 dim 1 : vector<8x256xf32>, i32 -> vector<8x256xf32>
    %277 = vector.broadcast %41 : vector<1x256xf32> to vector<8x256xf32>
    %278 = arith.mulf %276, %277 : vector<8x256xf32>
    %c239_i32_91 = arith.constant 239 : i32
    %279 = tpu.dynamic_rotate %255 by %c239_i32_91 dim 1 : vector<8x256xf32>, i32 -> vector<8x256xf32>
    %280 = vector.broadcast %44 : vector<1x256xf32> to vector<8x256xf32>
    %281 = arith.mulf %279, %280 : vector<8x256xf32>
    %282 = tpu.concatenate %260, %263, %266, %269, %255, %272, %275, %278, %281 in 0 : vector<8x256xf32>, vector<8x256xf32>, vector<8x256xf32>, vector<8x256xf32>, vector<8x256xf32>, vector<8x256xf32>, vector<8x256xf32>, vector<8x256xf32>, vector<8x256xf32> -> vector<72x256xf32>
    %283 = arith.truncf %282 : vector<72x256xf32> to vector<72x256xbf16>
    %cst_92 = arith.constant dense<0.000000e+00> : vector<4x256xf32>
    %284 = tpu.matmul %256, %283, %cst_92 {dimension_numbers = #tpu.dot_dimension_numbers<[1], [0], [0], [1], [0, 0, 1, 1], [], []>} : vector<4x72xbf16>, vector<72x256xbf16>, vector<4x256xf32> -> vector<4x256xf32>
    %285 = vector.broadcast %257 : vector<4x1xf32> to vector<4x256xf32>
    %286 = arith.addf %284, %285 : vector<4x256xf32>
    %cst_93 = arith.constant 0.00999999977 : f32
    %287 = vector.broadcast %cst_93 : f32 to vector<4x256xf32>
    %288 = arith.mulf %287, %286 : vector<4x256xf32>
    %289 = arith.maximumf %286, %288 : vector<4x256xf32>
    %c112 = arith.constant 112 : index
    %c0_94 = arith.constant 0 : index
    %290 = vector.load %arg3[%c112, %c0_94] : memref<224x128xbf16, #tpu.memory_space<vmem>>, vector<4x36xbf16>
    %c56 = arith.constant 56 : index
    %c0_95 = arith.constant 0 : index
    %291 = vector.load %arg4[%c56, %c0_95] : memref<112x1xf32, #tpu.memory_space<vmem>>, vector<4x1xf32>
    %c17_i32_96 = arith.constant 17 : i32
    %292 = tpu.dynamic_rotate %289 by %c17_i32_96 dim 1 : vector<4x256xf32>, i32 -> vector<4x256xf32>
    %293 = vector.broadcast %27 : vector<1x256xf32> to vector<4x256xf32>
    %294 = arith.mulf %292, %293 : vector<4x256xf32>
    %c16_i32_97 = arith.constant 16 : i32
    %295 = tpu.dynamic_rotate %289 by %c16_i32_97 dim 1 : vector<4x256xf32>, i32 -> vector<4x256xf32>
    %296 = vector.broadcast %29 : vector<1x256xf32> to vector<4x256xf32>
    %297 = arith.mulf %295, %296 : vector<4x256xf32>
    %c15_i32_98 = arith.constant 15 : i32
    %298 = tpu.dynamic_rotate %289 by %c15_i32_98 dim 1 : vector<4x256xf32>, i32 -> vector<4x256xf32>
    %299 = vector.broadcast %32 : vector<1x256xf32> to vector<4x256xf32>
    %300 = arith.mulf %298, %299 : vector<4x256xf32>
    %c1_i32_99 = arith.constant 1 : i32
    %301 = tpu.dynamic_rotate %289 by %c1_i32_99 dim 1 : vector<4x256xf32>, i32 -> vector<4x256xf32>
    %302 = vector.broadcast %34 : vector<1x256xf32> to vector<4x256xf32>
    %303 = arith.mulf %301, %302 : vector<4x256xf32>
    %c255_i32_100 = arith.constant 255 : i32
    %304 = tpu.dynamic_rotate %289 by %c255_i32_100 dim 1 : vector<4x256xf32>, i32 -> vector<4x256xf32>
    %305 = vector.broadcast %36 : vector<1x256xf32> to vector<4x256xf32>
    %306 = arith.mulf %304, %305 : vector<4x256xf32>
    %c241_i32_101 = arith.constant 241 : i32
    %307 = tpu.dynamic_rotate %289 by %c241_i32_101 dim 1 : vector<4x256xf32>, i32 -> vector<4x256xf32>
    %308 = vector.broadcast %39 : vector<1x256xf32> to vector<4x256xf32>
    %309 = arith.mulf %307, %308 : vector<4x256xf32>
    %c240_i32_102 = arith.constant 240 : i32
    %310 = tpu.dynamic_rotate %289 by %c240_i32_102 dim 1 : vector<4x256xf32>, i32 -> vector<4x256xf32>
    %311 = vector.broadcast %41 : vector<1x256xf32> to vector<4x256xf32>
    %312 = arith.mulf %310, %311 : vector<4x256xf32>
    %c239_i32_103 = arith.constant 239 : i32
    %313 = tpu.dynamic_rotate %289 by %c239_i32_103 dim 1 : vector<4x256xf32>, i32 -> vector<4x256xf32>
    %314 = vector.broadcast %44 : vector<1x256xf32> to vector<4x256xf32>
    %315 = arith.mulf %313, %314 : vector<4x256xf32>
    %316 = tpu.concatenate %294, %297, %300, %303, %289, %306, %309, %312, %315 in 0 : vector<4x256xf32>, vector<4x256xf32>, vector<4x256xf32>, vector<4x256xf32>, vector<4x256xf32>, vector<4x256xf32>, vector<4x256xf32>, vector<4x256xf32>, vector<4x256xf32> -> vector<36x256xf32>
    %317 = arith.truncf %316 : vector<36x256xf32> to vector<36x256xbf16>
    %cst_104 = arith.constant dense<0.000000e+00> : vector<4x256xf32>
    %318 = tpu.matmul %290, %317, %cst_104 {dimension_numbers = #tpu.dot_dimension_numbers<[1], [0], [0], [1], [0, 0, 1, 1], [], []>} : vector<4x36xbf16>, vector<36x256xbf16>, vector<4x256xf32> -> vector<4x256xf32>
    %319 = vector.broadcast %291 : vector<4x1xf32> to vector<4x256xf32>
    %320 = arith.addf %318, %319 : vector<4x256xf32>
    %cst_105 = arith.constant 0.00999999977 : f32
    %321 = vector.broadcast %cst_105 : f32 to vector<4x256xf32>
    %322 = arith.mulf %321, %320 : vector<4x256xf32>
    %323 = arith.maximumf %320, %322 : vector<4x256xf32>
    %c128 = arith.constant 128 : index
    %c0_106 = arith.constant 0 : index
    %324 = vector.load %arg3[%c128, %c0_106] : memref<224x128xbf16, #tpu.memory_space<vmem>>, vector<4x8xbf16>
    %c64_107 = arith.constant 64 : index
    %c0_108 = arith.constant 0 : index
    %325 = vector.load %arg4[%c64_107, %c0_108] : memref<112x1xf32, #tpu.memory_space<vmem>>, vector<4x1xf32>
    %326 = arith.truncf %255 : vector<8x256xf32> to vector<8x256xbf16>
    %cst_109 = arith.constant dense<0.000000e+00> : vector<4x256xf32>
    %327 = tpu.matmul %324, %326, %cst_109 {dimension_numbers = #tpu.dot_dimension_numbers<[1], [0], [0], [1], [0, 0, 1, 1], [], []>} : vector<4x8xbf16>, vector<8x256xbf16>, vector<4x256xf32> -> vector<4x256xf32>
    %328 = vector.broadcast %325 : vector<4x1xf32> to vector<4x256xf32>
    %329 = arith.addf %327, %328 : vector<4x256xf32>
    %330 = arith.addf %323, %329 : vector<4x256xf32>
    %331 = tpu.concatenate %186, %330 in 0 : vector<4x256xf32>, vector<4x256xf32> -> vector<8x256xf32>
    %c144 = arith.constant 144 : index
    %c0_110 = arith.constant 0 : index
    %332 = vector.load %arg3[%c144, %c0_110] : memref<224x128xbf16, #tpu.memory_space<vmem>>, vector<8x72xbf16>
    %c72 = arith.constant 72 : index
    %c0_111 = arith.constant 0 : index
    %333 = vector.load %arg4[%c72, %c0_111] : memref<112x1xf32, #tpu.memory_space<vmem>>, vector<8x1xf32>
    %c17_i32_112 = arith.constant 17 : i32
    %334 = tpu.dynamic_rotate %331 by %c17_i32_112 dim 1 : vector<8x256xf32>, i32 -> vector<8x256xf32>
    %335 = vector.broadcast %27 : vector<1x256xf32> to vector<8x256xf32>
    %336 = arith.mulf %334, %335 : vector<8x256xf32>
    %c16_i32_113 = arith.constant 16 : i32
    %337 = tpu.dynamic_rotate %331 by %c16_i32_113 dim 1 : vector<8x256xf32>, i32 -> vector<8x256xf32>
    %338 = vector.broadcast %29 : vector<1x256xf32> to vector<8x256xf32>
    %339 = arith.mulf %337, %338 : vector<8x256xf32>
    %c15_i32_114 = arith.constant 15 : i32
    %340 = tpu.dynamic_rotate %331 by %c15_i32_114 dim 1 : vector<8x256xf32>, i32 -> vector<8x256xf32>
    %341 = vector.broadcast %32 : vector<1x256xf32> to vector<8x256xf32>
    %342 = arith.mulf %340, %341 : vector<8x256xf32>
    %c1_i32_115 = arith.constant 1 : i32
    %343 = tpu.dynamic_rotate %331 by %c1_i32_115 dim 1 : vector<8x256xf32>, i32 -> vector<8x256xf32>
    %344 = vector.broadcast %34 : vector<1x256xf32> to vector<8x256xf32>
    %345 = arith.mulf %343, %344 : vector<8x256xf32>
    %c255_i32_116 = arith.constant 255 : i32
    %346 = tpu.dynamic_rotate %331 by %c255_i32_116 dim 1 : vector<8x256xf32>, i32 -> vector<8x256xf32>
    %347 = vector.broadcast %36 : vector<1x256xf32> to vector<8x256xf32>
    %348 = arith.mulf %346, %347 : vector<8x256xf32>
    %c241_i32_117 = arith.constant 241 : i32
    %349 = tpu.dynamic_rotate %331 by %c241_i32_117 dim 1 : vector<8x256xf32>, i32 -> vector<8x256xf32>
    %350 = vector.broadcast %39 : vector<1x256xf32> to vector<8x256xf32>
    %351 = arith.mulf %349, %350 : vector<8x256xf32>
    %c240_i32_118 = arith.constant 240 : i32
    %352 = tpu.dynamic_rotate %331 by %c240_i32_118 dim 1 : vector<8x256xf32>, i32 -> vector<8x256xf32>
    %353 = vector.broadcast %41 : vector<1x256xf32> to vector<8x256xf32>
    %354 = arith.mulf %352, %353 : vector<8x256xf32>
    %c239_i32_119 = arith.constant 239 : i32
    %355 = tpu.dynamic_rotate %331 by %c239_i32_119 dim 1 : vector<8x256xf32>, i32 -> vector<8x256xf32>
    %356 = vector.broadcast %44 : vector<1x256xf32> to vector<8x256xf32>
    %357 = arith.mulf %355, %356 : vector<8x256xf32>
    %358 = tpu.concatenate %336, %339, %342, %345, %331, %348, %351, %354, %357 in 0 : vector<8x256xf32>, vector<8x256xf32>, vector<8x256xf32>, vector<8x256xf32>, vector<8x256xf32>, vector<8x256xf32>, vector<8x256xf32>, vector<8x256xf32>, vector<8x256xf32> -> vector<72x256xf32>
    %359 = arith.truncf %358 : vector<72x256xf32> to vector<72x256xbf16>
    %cst_120 = arith.constant dense<0.000000e+00> : vector<8x256xf32>
    %360 = tpu.matmul %332, %359, %cst_120 {dimension_numbers = #tpu.dot_dimension_numbers<[1], [0], [0], [1], [0, 0, 1, 1], [], []>} : vector<8x72xbf16>, vector<72x256xbf16>, vector<8x256xf32> -> vector<8x256xf32>
    %361 = vector.broadcast %333 : vector<8x1xf32> to vector<8x256xf32>
    %362 = arith.addf %360, %361 : vector<8x256xf32>
    %cst_121 = arith.constant 0.00999999977 : f32
    %363 = vector.broadcast %cst_121 : f32 to vector<8x256xf32>
    %364 = arith.mulf %363, %362 : vector<8x256xf32>
    %365 = arith.maximumf %362, %364 : vector<8x256xf32>
    %c160 = arith.constant 160 : index
    %c0_122 = arith.constant 0 : index
    %366 = vector.load %arg3[%c160, %c0_122] : memref<224x128xbf16, #tpu.memory_space<vmem>>, vector<8x72xbf16>
    %c80_123 = arith.constant 80 : index
    %c0_124 = arith.constant 0 : index
    %367 = vector.load %arg4[%c80_123, %c0_124] : memref<112x1xf32, #tpu.memory_space<vmem>>, vector<8x1xf32>
    %c17_i32_125 = arith.constant 17 : i32
    %368 = tpu.dynamic_rotate %365 by %c17_i32_125 dim 1 : vector<8x256xf32>, i32 -> vector<8x256xf32>
    %369 = vector.broadcast %27 : vector<1x256xf32> to vector<8x256xf32>
    %370 = arith.mulf %368, %369 : vector<8x256xf32>
    %c16_i32_126 = arith.constant 16 : i32
    %371 = tpu.dynamic_rotate %365 by %c16_i32_126 dim 1 : vector<8x256xf32>, i32 -> vector<8x256xf32>
    %372 = vector.broadcast %29 : vector<1x256xf32> to vector<8x256xf32>
    %373 = arith.mulf %371, %372 : vector<8x256xf32>
    %c15_i32_127 = arith.constant 15 : i32
    %374 = tpu.dynamic_rotate %365 by %c15_i32_127 dim 1 : vector<8x256xf32>, i32 -> vector<8x256xf32>
    %375 = vector.broadcast %32 : vector<1x256xf32> to vector<8x256xf32>
    %376 = arith.mulf %374, %375 : vector<8x256xf32>
    %c1_i32_128 = arith.constant 1 : i32
    %377 = tpu.dynamic_rotate %365 by %c1_i32_128 dim 1 : vector<8x256xf32>, i32 -> vector<8x256xf32>
    %378 = vector.broadcast %34 : vector<1x256xf32> to vector<8x256xf32>
    %379 = arith.mulf %377, %378 : vector<8x256xf32>
    %c255_i32_129 = arith.constant 255 : i32
    %380 = tpu.dynamic_rotate %365 by %c255_i32_129 dim 1 : vector<8x256xf32>, i32 -> vector<8x256xf32>
    %381 = vector.broadcast %36 : vector<1x256xf32> to vector<8x256xf32>
    %382 = arith.mulf %380, %381 : vector<8x256xf32>
    %c241_i32_130 = arith.constant 241 : i32
    %383 = tpu.dynamic_rotate %365 by %c241_i32_130 dim 1 : vector<8x256xf32>, i32 -> vector<8x256xf32>
    %384 = vector.broadcast %39 : vector<1x256xf32> to vector<8x256xf32>
    %385 = arith.mulf %383, %384 : vector<8x256xf32>
    %c240_i32_131 = arith.constant 240 : i32
    %386 = tpu.dynamic_rotate %365 by %c240_i32_131 dim 1 : vector<8x256xf32>, i32 -> vector<8x256xf32>
    %387 = vector.broadcast %41 : vector<1x256xf32> to vector<8x256xf32>
    %388 = arith.mulf %386, %387 : vector<8x256xf32>
    %c239_i32_132 = arith.constant 239 : i32
    %389 = tpu.dynamic_rotate %365 by %c239_i32_132 dim 1 : vector<8x256xf32>, i32 -> vector<8x256xf32>
    %390 = vector.broadcast %44 : vector<1x256xf32> to vector<8x256xf32>
    %391 = arith.mulf %389, %390 : vector<8x256xf32>
    %392 = tpu.concatenate %370, %373, %376, %379, %365, %382, %385, %388, %391 in 0 : vector<8x256xf32>, vector<8x256xf32>, vector<8x256xf32>, vector<8x256xf32>, vector<8x256xf32>, vector<8x256xf32>, vector<8x256xf32>, vector<8x256xf32>, vector<8x256xf32> -> vector<72x256xf32>
    %393 = arith.truncf %392 : vector<72x256xf32> to vector<72x256xbf16>
    %cst_133 = arith.constant dense<0.000000e+00> : vector<8x256xf32>
    %394 = tpu.matmul %366, %393, %cst_133 {dimension_numbers = #tpu.dot_dimension_numbers<[1], [0], [0], [1], [0, 0, 1, 1], [], []>} : vector<8x72xbf16>, vector<72x256xbf16>, vector<8x256xf32> -> vector<8x256xf32>
    %395 = vector.broadcast %367 : vector<8x1xf32> to vector<8x256xf32>
    %396 = arith.addf %394, %395 : vector<8x256xf32>
    %cst_134 = arith.constant 0.00999999977 : f32
    %397 = vector.broadcast %cst_134 : f32 to vector<8x256xf32>
    %398 = arith.mulf %397, %396 : vector<8x256xf32>
    %399 = arith.maximumf %396, %398 : vector<8x256xf32>
    %400 = arith.addf %399, %331 : vector<8x256xf32>
    %c176 = arith.constant 176 : index
    %c0_135 = arith.constant 0 : index
    %401 = vector.load %arg3[%c176, %c0_135] : memref<224x128xbf16, #tpu.memory_space<vmem>>, vector<4x72xbf16>
    %c88 = arith.constant 88 : index
    %c0_136 = arith.constant 0 : index
    %402 = vector.load %arg4[%c88, %c0_136] : memref<112x1xf32, #tpu.memory_space<vmem>>, vector<4x1xf32>
    %c17_i32_137 = arith.constant 17 : i32
    %403 = tpu.dynamic_rotate %400 by %c17_i32_137 dim 1 : vector<8x256xf32>, i32 -> vector<8x256xf32>
    %404 = vector.broadcast %27 : vector<1x256xf32> to vector<8x256xf32>
    %405 = arith.mulf %403, %404 : vector<8x256xf32>
    %c16_i32_138 = arith.constant 16 : i32
    %406 = tpu.dynamic_rotate %400 by %c16_i32_138 dim 1 : vector<8x256xf32>, i32 -> vector<8x256xf32>
    %407 = vector.broadcast %29 : vector<1x256xf32> to vector<8x256xf32>
    %408 = arith.mulf %406, %407 : vector<8x256xf32>
    %c15_i32_139 = arith.constant 15 : i32
    %409 = tpu.dynamic_rotate %400 by %c15_i32_139 dim 1 : vector<8x256xf32>, i32 -> vector<8x256xf32>
    %410 = vector.broadcast %32 : vector<1x256xf32> to vector<8x256xf32>
    %411 = arith.mulf %409, %410 : vector<8x256xf32>
    %c1_i32_140 = arith.constant 1 : i32
    %412 = tpu.dynamic_rotate %400 by %c1_i32_140 dim 1 : vector<8x256xf32>, i32 -> vector<8x256xf32>
    %413 = vector.broadcast %34 : vector<1x256xf32> to vector<8x256xf32>
    %414 = arith.mulf %412, %413 : vector<8x256xf32>
    %c255_i32_141 = arith.constant 255 : i32
    %415 = tpu.dynamic_rotate %400 by %c255_i32_141 dim 1 : vector<8x256xf32>, i32 -> vector<8x256xf32>
    %416 = vector.broadcast %36 : vector<1x256xf32> to vector<8x256xf32>
    %417 = arith.mulf %415, %416 : vector<8x256xf32>
    %c241_i32_142 = arith.constant 241 : i32
    %418 = tpu.dynamic_rotate %400 by %c241_i32_142 dim 1 : vector<8x256xf32>, i32 -> vector<8x256xf32>
    %419 = vector.broadcast %39 : vector<1x256xf32> to vector<8x256xf32>
    %420 = arith.mulf %418, %419 : vector<8x256xf32>
    %c240_i32_143 = arith.constant 240 : i32
    %421 = tpu.dynamic_rotate %400 by %c240_i32_143 dim 1 : vector<8x256xf32>, i32 -> vector<8x256xf32>
    %422 = vector.broadcast %41 : vector<1x256xf32> to vector<8x256xf32>
    %423 = arith.mulf %421, %422 : vector<8x256xf32>
    %c239_i32_144 = arith.constant 239 : i32
    %424 = tpu.dynamic_rotate %400 by %c239_i32_144 dim 1 : vector<8x256xf32>, i32 -> vector<8x256xf32>
    %425 = vector.broadcast %44 : vector<1x256xf32> to vector<8x256xf32>
    %426 = arith.mulf %424, %425 : vector<8x256xf32>
    %427 = tpu.concatenate %405, %408, %411, %414, %400, %417, %420, %423, %426 in 0 : vector<8x256xf32>, vector<8x256xf32>, vector<8x256xf32>, vector<8x256xf32>, vector<8x256xf32>, vector<8x256xf32>, vector<8x256xf32>, vector<8x256xf32>, vector<8x256xf32> -> vector<72x256xf32>
    %428 = arith.truncf %427 : vector<72x256xf32> to vector<72x256xbf16>
    %cst_145 = arith.constant dense<0.000000e+00> : vector<4x256xf32>
    %429 = tpu.matmul %401, %428, %cst_145 {dimension_numbers = #tpu.dot_dimension_numbers<[1], [0], [0], [1], [0, 0, 1, 1], [], []>} : vector<4x72xbf16>, vector<72x256xbf16>, vector<4x256xf32> -> vector<4x256xf32>
    %430 = vector.broadcast %402 : vector<4x1xf32> to vector<4x256xf32>
    %431 = arith.addf %429, %430 : vector<4x256xf32>
    %cst_146 = arith.constant 0.00999999977 : f32
    %432 = vector.broadcast %cst_146 : f32 to vector<4x256xf32>
    %433 = arith.mulf %432, %431 : vector<4x256xf32>
    %434 = arith.maximumf %431, %433 : vector<4x256xf32>
    %c192 = arith.constant 192 : index
    %c0_147 = arith.constant 0 : index
    %435 = vector.load %arg3[%c192, %c0_147] : memref<224x128xbf16, #tpu.memory_space<vmem>>, vector<4x36xbf16>
    %c96_148 = arith.constant 96 : index
    %c0_149 = arith.constant 0 : index
    %436 = vector.load %arg4[%c96_148, %c0_149] : memref<112x1xf32, #tpu.memory_space<vmem>>, vector<4x1xf32>
    %c17_i32_150 = arith.constant 17 : i32
    %437 = tpu.dynamic_rotate %434 by %c17_i32_150 dim 1 : vector<4x256xf32>, i32 -> vector<4x256xf32>
    %438 = vector.broadcast %27 : vector<1x256xf32> to vector<4x256xf32>
    %439 = arith.mulf %437, %438 : vector<4x256xf32>
    %c16_i32_151 = arith.constant 16 : i32
    %440 = tpu.dynamic_rotate %434 by %c16_i32_151 dim 1 : vector<4x256xf32>, i32 -> vector<4x256xf32>
    %441 = vector.broadcast %29 : vector<1x256xf32> to vector<4x256xf32>
    %442 = arith.mulf %440, %441 : vector<4x256xf32>
    %c15_i32_152 = arith.constant 15 : i32
    %443 = tpu.dynamic_rotate %434 by %c15_i32_152 dim 1 : vector<4x256xf32>, i32 -> vector<4x256xf32>
    %444 = vector.broadcast %32 : vector<1x256xf32> to vector<4x256xf32>
    %445 = arith.mulf %443, %444 : vector<4x256xf32>
    %c1_i32_153 = arith.constant 1 : i32
    %446 = tpu.dynamic_rotate %434 by %c1_i32_153 dim 1 : vector<4x256xf32>, i32 -> vector<4x256xf32>
    %447 = vector.broadcast %34 : vector<1x256xf32> to vector<4x256xf32>
    %448 = arith.mulf %446, %447 : vector<4x256xf32>
    %c255_i32_154 = arith.constant 255 : i32
    %449 = tpu.dynamic_rotate %434 by %c255_i32_154 dim 1 : vector<4x256xf32>, i32 -> vector<4x256xf32>
    %450 = vector.broadcast %36 : vector<1x256xf32> to vector<4x256xf32>
    %451 = arith.mulf %449, %450 : vector<4x256xf32>
    %c241_i32_155 = arith.constant 241 : i32
    %452 = tpu.dynamic_rotate %434 by %c241_i32_155 dim 1 : vector<4x256xf32>, i32 -> vector<4x256xf32>
    %453 = vector.broadcast %39 : vector<1x256xf32> to vector<4x256xf32>
    %454 = arith.mulf %452, %453 : vector<4x256xf32>
    %c240_i32_156 = arith.constant 240 : i32
    %455 = tpu.dynamic_rotate %434 by %c240_i32_156 dim 1 : vector<4x256xf32>, i32 -> vector<4x256xf32>
    %456 = vector.broadcast %41 : vector<1x256xf32> to vector<4x256xf32>
    %457 = arith.mulf %455, %456 : vector<4x256xf32>
    %c239_i32_157 = arith.constant 239 : i32
    %458 = tpu.dynamic_rotate %434 by %c239_i32_157 dim 1 : vector<4x256xf32>, i32 -> vector<4x256xf32>
    %459 = vector.broadcast %44 : vector<1x256xf32> to vector<4x256xf32>
    %460 = arith.mulf %458, %459 : vector<4x256xf32>
    %461 = tpu.concatenate %439, %442, %445, %448, %434, %451, %454, %457, %460 in 0 : vector<4x256xf32>, vector<4x256xf32>, vector<4x256xf32>, vector<4x256xf32>, vector<4x256xf32>, vector<4x256xf32>, vector<4x256xf32>, vector<4x256xf32>, vector<4x256xf32> -> vector<36x256xf32>
    %462 = arith.truncf %461 : vector<36x256xf32> to vector<36x256xbf16>
    %cst_158 = arith.constant dense<0.000000e+00> : vector<4x256xf32>
    %463 = tpu.matmul %435, %462, %cst_158 {dimension_numbers = #tpu.dot_dimension_numbers<[1], [0], [0], [1], [0, 0, 1, 1], [], []>} : vector<4x36xbf16>, vector<36x256xbf16>, vector<4x256xf32> -> vector<4x256xf32>
    %464 = vector.broadcast %436 : vector<4x1xf32> to vector<4x256xf32>
    %465 = arith.addf %463, %464 : vector<4x256xf32>
    %cst_159 = arith.constant 0.00999999977 : f32
    %466 = vector.broadcast %cst_159 : f32 to vector<4x256xf32>
    %467 = arith.mulf %466, %465 : vector<4x256xf32>
    %468 = arith.maximumf %465, %467 : vector<4x256xf32>
    %c208 = arith.constant 208 : index
    %c0_160 = arith.constant 0 : index
    %469 = vector.load %arg3[%c208, %c0_160] : memref<224x128xbf16, #tpu.memory_space<vmem>>, vector<4x8xbf16>
    %c104 = arith.constant 104 : index
    %c0_161 = arith.constant 0 : index
    %470 = vector.load %arg4[%c104, %c0_161] : memref<112x1xf32, #tpu.memory_space<vmem>>, vector<4x1xf32>
    %471 = arith.truncf %400 : vector<8x256xf32> to vector<8x256xbf16>
    %cst_162 = arith.constant dense<0.000000e+00> : vector<4x256xf32>
    %472 = tpu.matmul %469, %471, %cst_162 {dimension_numbers = #tpu.dot_dimension_numbers<[1], [0], [0], [1], [0, 0, 1, 1], [], []>} : vector<4x8xbf16>, vector<8x256xbf16>, vector<4x256xf32> -> vector<4x256xf32>
    %473 = vector.broadcast %470 : vector<4x1xf32> to vector<4x256xf32>
    %474 = arith.addf %472, %473 : vector<4x256xf32>
    %475 = arith.addf %468, %474 : vector<4x256xf32>
    %476 = arith.addf %475, %46 : vector<4x256xf32>
    %c0_163 = arith.constant 0 : index
    %c0_164 = arith.constant 0 : index
    %c0_165 = arith.constant 0 : index
    %477 = vector.load %arg5[%c0_163, %c0_164, %c0_165] : memref<1x4x256xf32, #tpu.memory_space<vmem>>, vector<1x4x256xf32>
    %478 = vector.shape_cast %477 : vector<1x4x256xf32> to vector<4x256xf32>
    %479 = vector.shape_cast %476 : vector<4x256xf32> to vector<1x4x256xf32>
    tpu.vector_store %arg5[%c0_163, %c0_164, %c0_165], %479 {strides = array<i32>} : memref<1x4x256xf32, #tpu.memory_space<vmem>>, vector<1x4x256xf32>,
    return
  }
  func.func @transform_0(%arg0: i32) -> (i32, i32, i32) {
    %c0_i32 = arith.constant 0 : i32
    %c0_i32_0 = arith.constant 0 : i32
    %c0_i32_1 = arith.constant 0 : i32
    return %arg0, %c0_i32, %c0_i32_0 : i32, i32, i32
  }
  func.func @transform_1(%arg0: i32) -> (i32, i32, i32) {
    %c0_i32 = arith.constant 0 : i32
    %c0_i32_0 = arith.constant 0 : i32
    %c0_i32_1 = arith.constant 0 : i32
    return %arg0, %c0_i32, %c0_i32_0 : i32, i32, i32
  }
  func.func @transform_2(%arg0: i32) -> (i32, i32) {
    %c0_i32 = arith.constant 0 : i32
    %c0_i32_0 = arith.constant 0 : i32
    %c0_i32_1 = arith.constant 0 : i32
    return %c0_i32, %c0_i32_0 : i32, i32
  }
  func.func @transform_3(%arg0: i32) -> (i32, i32) {
    %c0_i32 = arith.constant 0 : i32
    %c0_i32_0 = arith.constant 0 : i32
    %c0_i32_1 = arith.constant 0 : i32
    return %c0_i32, %c0_i32_0 : i32, i32
  }
  func.func @transform_4(%arg0: i32) -> (i32, i32, i32) {
    %c0_i32 = arith.constant 0 : i32
    %c0_i32_0 = arith.constant 0 : i32
    %c0_i32_1 = arith.constant 0 : i32
    return %arg0, %c0_i32, %c0_i32_0 : i32, i32, i32
  }
}

</mosaic_0001>

<bundles_post_ra>
// kernel: fwd.1
= control target key start
LH: loop header
LB: loop body
LE: loop exit
PB: predicated region body
PF: predicated region fallthrough
CT: control target
= control target key end

     0   :  { %s2436_s15 = smov 0   ;;  %s3694_s0 = inlined_call_operand.vmem [shape: f32[2,4,256], index: 0, kind: input, shape index: {}]   ;;  %s3695_s1 = inlined_call_operand.vmem [shape: f32[2,8,256], index: 1, kind: input, shape index: {}]   ;;  %s3696_s2 = inlined_call_operand.vmem [shape: bf16[224,128], index: 2, kind: input, shape index: {}]   ;;  %s3697_s3 = inlined_call_operand.vmem [shape: f32[112,1], index: 3, kind: input, shape index: {}]   ;;  %s3698_s4 = inlined_call_operand.vmem [shape: f32[2,4,256], index: 4, kind: output, shape index: {}]  }
   0x1 LB: > { %s2313_s16 = sadd.s32 4294967295, %s2399_s15   ;;  %p2317_p0 = scmp.ge.s32.totalorder %s2399_s15, 1  ;;  %s2399_s15 = sphi %s2436_s15, %s14_s15  }
   0x2   : > { %p172_p1 = scmp.lt.s32.totalorder %s2399_s15, 3 }
   0x4   : > { %p173_p2 = pnand %p2317_p0, %p172_p1 }
   0x5   : > { %p203_p3 = scmp.lt.s32.totalorder (!%p173_p2), %s2313_s16, 1  ;;  %s2401_s21 = smov (!%p173_p2), 127  }
   0x6   : > { %176 = sbr.rel (%p173_p2) target bundleno = 3605 (0xe15), region = 36  ;;  %s2402_s22 = smov (!%p173_p2), 111  }
   0x7   : > { %s2403_s23 = smov (!%p173_p2), 112   ;;  %s2404_s24 = smov (!%p173_p2), 113  }
   0x8   : > { %s2405_s25 = smov (!%p173_p2), 1   ;;  %s2406_s26 = smov (!%p173_p2), 16  }
   0x9   : > { %s2408_s27 = smov (!%p173_p2), 17   ;;  %s2409_s28 = smov (!%p173_p2), 15  }
   0xb   : > { %s3706_s16 = smov (!%p203_p3, %s2313_s16), 1  ;;  %v2407_v2 = vmov 0   ;;  %v298_v3 = vld [vmem:[%s3697_s3] sm:$0xf]  ;;  %v219_v4 = vlaneseq  ;;  %v2410_v13 = vmov 0.0   ;;  %vm422_vm11 = vcmask 1041408  }
   0xc   : > { %s2368_s17 = sshll.u32 %s3706_s16, 3  ;;  %461 = vmatprep.mubr.bf16.mxu0 %v2407_v2  ;;  %2389 = vset.pattern.permute.xlu0 %v2407_v2  ;;  %vm398_vm12 = vcmask 1043456   ;;  %s2369_s11 = sshll.u32 %s3706_s16, 4 }
   0xd   : > { %s2452_s20 = scalar_lea.vmem %s3694_s0, %s2368_s17  ;;  %624 = vmatprep.mubr.bf16.mxu1 %v2407_v2  ;;  %2390 = vset.pattern.permute.xlu1 %v2407_v2  ;;  %v2500_v5 = vand.u32 127, %v219_v4  ;;  %s212_s14 = scalar_lea.vmem %s3695_s1, %s2369_s11 }
   0xe   : > { %v2455_v0 = vld [vmem:[%s2452_s20] sm:$0xff]  ;;  %s217_s18 = scalar_lea.vmem %s3698_s4, %s2368_s17 }
   0xf   : > { %338 = vrot.lane.b32.xlu1 %v2455_v0, %s2401_s21  ;;  %365 = vrot.lane.b32.xlu0 %v2455_v0, %s2402_s22  ;;  %v2463_v1 = vcombine.high %v2455_v0, %v2455_v0  ;;  %v221_v6 = vadd.s32 128, %v2500_v5  ;;  %v226_v7 = vand.u32 15, %v2500_v5  ;;  %vm342_vm3 = vcmp.lt.s32.totalorder %v2500_v5, 127 }
  0x10   : > { %vm360_vm6 = vcmp.lt.s32.totalorder %v2500_v5, 112  ;;  %vm369_vm7 = vcmp.lt.s32.totalorder %v2500_v5, 111  ;;  %vm351_vm10 = vcmp.lt.s32.totalorder %v2500_v5, 113  ;;  %vm333_vm13 = vcmp.lt.s32.totalorder %v2500_v5, 1 }
  0x11   : > { %v233_v8 = vand.u32 15, %v221_v6  ;;  %vm2504_vm0 = vcmp.lt.s32.totalorder %v226_v7, 15  ;;  %vm249_vm1 = vcmp.lt.s32.totalorder %v221_v6, 240  ;;  %vm2537_vm8 = vcmp.gt.s32.totalorder %v226_v7, 0 }
  0x12   : > { %v2512_v14 = vsel %vm2504_vm0, 1.0, %v2410_v13  ;;  %v2530_v20 = vsel %vm249_vm1, 1.0, %v2410_v13  ;;  %v2559_v34 = vsel %vm2537_vm8, 1.0, %v2410_v13  ;;  %vm246_vm14 = vcmp.ge.s32.totalorder %v2500_v5, 16 }
  0x13   : > { %356 = vrot.lane.b32.xlu0 %v2455_v0, %s2403_s23  ;;  %340 = vrot.lane.b32.xlu1 %v2463_v1, %s2401_s21  ;;  %vm253_vm2 = vcmp.lt.s32.totalorder %v233_v8, 15  ;;  %vm2522_vm5 = vcmp.gt.s32.totalorder %v233_v8, 0  ;;  %vm315_vm15 = vcmp.lt.s32.totalorder %v2500_v5, 16  ;;  %v2594_v62 = vsel %vm246_vm14, 1.0, %v2410_v13 }
  0x14   : > { %vm289_vm4 = vmand %vm249_vm1, %vm253_vm2  ;;  %v2516_v16 = vsel %vm253_vm2, 1.0, %v2410_v13  ;;  %v2586_v59 = vsel %vm2522_vm5, 1.0, %v2410_v13  ;;  %vm306_vm2 = vcmp.lt.s32.totalorder %v2500_v5, 17 }
  0x15   : > { %v2533_v21 = vsel %vm289_vm4, 1.0, %v2410_v13  ;;  %vm279_vm9 = vmand %vm249_vm1, %vm2522_vm5  ;;  %vm324_vm5 = vcmp.lt.s32.totalorder %v2500_v5, 15 }
  0x16   : > { %v2562_v35 = vsel %vm279_vm9, 1.0, %v2410_v13  ;;  %vm254_vm1 = vmand %vm246_vm14, %vm2537_vm8  ;;  %vm1048_vm8 = vcmask 588800   ;;  %vm1547_vm9 = vcmask 64512  }
  0x17   : > { %358 = vrot.lane.b32.xlu1 %v2463_v1, %s2403_s23  ;;  %367 = vrot.lane.b32.xlu0 %v2463_v1, %s2402_s22  ;;  %v2599_v4 = vsel %vm254_vm1, 1.0, %v2410_v13  ;;  %vm264_vm4 = vmand %vm246_vm14, %vm2504_vm0  ;;  %vm418_vm0 = vcmask 293888  }
  0x18   : > { %v2614_v11 = vsel %vm264_vm4, 1.0, %v2410_v13 }
  0x1b   : > { %349 = vrot.lane.b32.xlu1 %v2463_v1, %s2404_s24  ;;  %347 = vrot.lane.b32.xlu0 %v2455_v0, %s2404_s24 }
  0x1f   : > { %331 = vrot.lane.b32.xlu1 %v2463_v1, %s2405_s25  ;;  %329 = vrot.lane.b32.xlu0 %v2455_v0, %s2405_s25 }
  0x23   : > { %313 = vrot.lane.b32.xlu1 %v2463_v1, %s2406_s26  ;;  %311 = vrot.lane.b32.xlu0 %v2455_v0, %s2406_s26 }
  0x27   : > { %304 = vrot.lane.b32.xlu1 %v2463_v1, %s2408_s27  ;;  %302 = vrot.lane.b32.xlu0 %v2455_v0, %s2408_s27 }
  0x2b   : > { %322 = vrot.lane.b32.xlu1 %v2463_v1, %s2409_s28  ;;  %320 = vrot.lane.b32.xlu0 %v2455_v0, %s2409_s28 }
  0x2f   : > { %415 = vperm.xlu0 %2389, %v298_v3  }
  0x81   : > { %v339_v9 = vpop.permute.xlu1 %338  ;;  %v366_v10 = vpop.permute.xlu0 %365 }
  0x85   : > { %v357_v12 = vpop.permute.xlu0 %356  ;;  %v341_v15 = vpop.permute.xlu1 %340 }
  0x86   : > { %v343_v17 = vsel %vm342_vm3, %v339_v9, %v341_v15  ;;  %v344_v18 = vsel %vm342_vm3, %v341_v15, %v339_v9 }
  0x87   : > { %v345_v22 = vmul.f32 %v2512_v14, %v343_v17  ;;  %v346_v23 = vmul.f32 %v2516_v16, %v344_v18 }
  0x89   : > { %v359_v25 = vpop.permute.xlu1 %358  ;;  %v368_v26 = vpop.permute.xlu0 %367  ;;  %v388_v36 = vrot.slane %v345_v22, 4  ;;  %v389_v37 = vrot.slane %v346_v23, 4 }
  0x8a   : > { %v362_v27 = vsel %vm360_vm6, %v359_v25, %v357_v12  ;;  %v370_v28 = vsel %vm369_vm7, %v366_v10, %v368_v26  ;;  %v371_v29 = vsel %vm369_vm7, %v368_v26, %v366_v10  ;;  %v361_v30 = vsel %vm360_vm6, %v357_v12, %v359_v25 }
  0x8b   : > { %v364_v31 = vmul.f32 %v2530_v20, %v362_v27  ;;  %v373_v32 = vmul.f32 %v2533_v21, %v371_v29  ;;  %v372_v33 = vmul.f32 %v2512_v14, %v370_v28  ;;  %v394_v42 = vrot.slane %v361_v30, 4 }
  0x8c   : > { %v404_v51 = vsel %vm398_vm12, %v2463_v1, %v389_v37  ;;  %v403_v53 = vsel %vm398_vm12, %v2455_v0, %v388_v36 }
  0x8d   : > { %v350_v38 = vpop.permute.xlu1 %349  ;;  %v348_v39 = vpop.permute.xlu0 %347  ;;  %v412_v40 = vpack.c.bf16 %v373_v32, %v373_v32  ;;  %v411_v41 = vpack.c.bf16 %v372_v33, %v372_v33  ;;  %v395_v45 = vrot.slane %v364_v31, 4 }
  0x8e   : > { %v352_v43 = vsel %vm351_vm10, %v348_v39, %v350_v38  ;;  %v353_v44 = vsel %vm351_vm10, %v350_v38, %v348_v39  ;;  %v297_v38 = vld [vmem:[%s3696_s2] sm:$0x3] }
  0x8f   : > { %v354_v46 = vmul.f32 %v2559_v34, %v352_v43  ;;  %v355_v47 = vmul.f32 %v2562_v35, %v353_v44  ;;  %2338 = vmatprep.subr.msk.bf16.mxu0 %vm422_vm11, %v412_v40  ;;  %v424_v48 = vsel %vm422_vm11, %v411_v41, 0 }
  0x90   : > { %440 = vmatpush1.bf16.msra.mxu0 %v424_v48 }
  0x91   : > { %v332_v49 = vpop.permute.xlu1 %331  ;;  %v330_v50 = vpop.permute.xlu0 %329  ;;  %v406_v52 = vsel %vm398_vm12, %v355_v47, %v395_v45  ;;  %v405_v54 = vsel %vm398_vm12, %v354_v46, %v394_v42 }
  0x92   : > { %v410_v55 = vpack.c.bf16 %v406_v52, %v404_v51  ;;  %v409_v56 = vpack.c.bf16 %v405_v54, %v403_v53  ;;  %v334_v60 = vsel %vm333_vm13, %v330_v50, %v332_v49  ;;  %v335_v61 = vsel %vm333_vm13, %v332_v49, %v330_v50  ;;  %v475_v50 = vld [vmem:[%s3697_s3 + $0x8] sm:$0xf] }
  0x93   : > { %v336_v7 = vmul.f32 %v2559_v34, %v335_v61  ;;  %v337_v8 = vmul.f32 %v2586_v59, %v334_v60 }
  0x94   : > { %441 = vmatprep.subr.bf16.mxu0 %v410_v55 }
  0x95   : > { %v314_v57 = vpop.permute.xlu1 %313  ;;  %442 = vmatpush1.bf16.msra.mxu0 %v409_v56  ;;  %v312_v58 = vpop.permute.xlu0 %311  ;;  %v382_v23 = vrot.slane %v336_v7, 4  ;;  %v383_v24 = vrot.slane %v337_v8, 4 }
  0x96   : > { %v317_v63 = vsel %vm315_vm15, %v314_v57, %v312_v58  ;;  %v316_v15 = vsel %vm315_vm15, %v312_v58, %v314_v57 }
  0x97   : > { %v318_v12 = vmul.f32 %v2594_v62, %v317_v63  ;;  %v377_v28 = vrot.slane %v316_v15, 4 }
  0x99   : > { %v305_v3 = vpop.permute.xlu1 %304  ;;  %v303_v6 = vpop.permute.xlu0 %302  ;;  %v376_v27 = vrot.slane %v318_v12, 4 }
  0x9a   : > { %v307_v9 = vsel %vm306_vm2, %v303_v6, %v305_v3  ;;  %v308_v10 = vsel %vm306_vm2, %v305_v3, %v303_v6 }
  0x9b   : > { %v309_v17 = vmul.f32 %v2599_v4, %v308_v10  ;;  %v310_v18 = vmul.f32 %v2586_v59, %v307_v9 }
  0x9d   : > { %v323_v19 = vpop.permute.xlu1 %322  ;;  %v321_v22 = vpop.permute.xlu0 %320  ;;  %v400_v30 = vsel %vm398_vm12, %v310_v18, %v377_v28  ;;  %v399_v32 = vsel %vm398_vm12, %v309_v17, %v376_v27 }
  0x9e   : > { %v325_v25 = vsel %vm324_vm5, %v321_v22, %v323_v19  ;;  %v326_v26 = vsel %vm324_vm5, %v323_v19, %v321_v22 }
  0x9f   : > { %v327_v29 = vmul.f32 %v2614_v11, %v326_v26  ;;  %v328_v13 = vmul.f32 %v2516_v16, %v325_v25 }
  0xa1   : > { %v402_v31 = vsel %vm398_vm12, %v328_v13, %v383_v24  ;;  %v401_v33 = vsel %vm398_vm12, %v327_v29, %v382_v23 }
  0xa2   : > { %v408_v36 = vpack.c.bf16 %v402_v31, %v400_v30  ;;  %v407_v37 = vpack.c.bf16 %v401_v33, %v399_v32 }
  0xa4   : > { %443 = vmatprep.subr.bf16.mxu0 %v408_v36 }
  0xa5   : > { %444 = vmatpush1.bf16.msra.mxu0 %v407_v37 }
  0xa8   : > { %2339 = vmatmul.mubr.msk.bf16.vlgmr.msra.gmra.mxu0 %vm418_vm0, %v297_v38 }
  0xa9   : > { %789 = vmatprep.mubr.bf16.mxu0 %v2407_v2 }
  0xaa   : > { %v416_v39 = vpop.permute.xlu0 %415 }
 0x168   : > { %v463_v40 = vpop.f32.mrf.mxu0 }
 0x169   : > { %v464_v41 = vadd.f32 %v463_v40, %v416_v39 }
 0x16a   : > { %v465_v42 = vpop.f32.mrf.mxu0 }
 0x16b   : > { %v470_v43 = vmul.f32 0.01, %v464_v41  ;;  %v466_v44 = vadd.f32 %v465_v42, %v416_v39 }
 0x16c   : > { %v467_v45 = vpop.f32.mrf.mxu0 }
 0x16d   : > { %v472_v46 = vmax.f32 %v464_v41, %v470_v43  ;;  %v471_v47 = vmul.f32 0.01, %v466_v44 }
 0x16e   : > { %v468_v48 = vpop.f32.mrf.mxu0 }
 0x16f   : > { %508 = vrot.lane.b32.xlu0 %v472_v46, %s2401_s21  ;;  %532 = vrot.lane.b32.xlu1 %v472_v46, %s2402_s22  ;;  %v473_v49 = vmax.f32 %v466_v44, %v471_v47 }
 0x173   : > { %524 = vrot.lane.b32.xlu0 %v472_v46, %s2403_s23  ;;  %534 = vrot.lane.b32.xlu1 %v473_v49, %s2402_s22 }
 0x177   : > { %516 = vrot.lane.b32.xlu0 %v472_v46, %s2404_s24  ;;  %510 = vrot.lane.b32.xlu1 %v473_v49, %s2401_s21 }
 0x17b   : > { %500 = vrot.lane.b32.xlu0 %v472_v46, %s2405_s25  ;;  %526 = vrot.lane.b32.xlu1 %v473_v49, %s2403_s23 }
 0x17f   : > { %484 = vrot.lane.b32.xlu0 %v472_v46, %s2406_s26  ;;  %518 = vrot.lane.b32.xlu1 %v473_v49, %s2404_s24 }
 0x183   : > { %476 = vrot.lane.b32.xlu0 %v472_v46, %s2408_s27  ;;  %502 = vrot.lane.b32.xlu1 %v473_v49, %s2405_s25 }
 0x187   : > { %492 = vrot.lane.b32.xlu0 %v472_v46, %s2409_s28  ;;  %486 = vrot.lane.b32.xlu1 %v473_v49, %s2406_s26 }
 0x18b   : > { %580 = vperm.xlu0 %2389, %v475_v50   ;;  %478 = vrot.lane.b32.xlu1 %v473_v49, %s2408_s27 }
 0x18f   : > { %494 = vrot.lane.b32.xlu1 %v473_v49, %s2409_s28 }
 0x1e1   : > { %v509_v51 = vpop.permute.xlu0 %508  ;;  %v533_v52 = vpop.permute.xlu1 %532 }
 0x1e5   : > { %v525_v53 = vpop.permute.xlu0 %524  ;;  %v535_v54 = vpop.permute.xlu1 %534 }
 0x1e6   : > { %v536_v55 = vsel %vm369_vm7, %v533_v52, %v535_v54  ;;  %v537_v56 = vsel %vm369_vm7, %v535_v54, %v533_v52 }
 0x1e7   : > { %v539_v57 = vmul.f32 %v2533_v21, %v537_v56  ;;  %v538_v58 = vmul.f32 %v2512_v14, %v536_v55 }
 0x1e9   : > { %v517_v60 = vpop.permute.xlu0 %516  ;;  %v511_v61 = vpop.permute.xlu1 %510  ;;  %v577_v63 = vpack.c.bf16 %v539_v57, %v539_v57  ;;  %v576_v3 = vpack.c.bf16 %v538_v58, %v538_v58 }
 0x1ea   : > { %v512_v6 = vsel %vm342_vm3, %v509_v51, %v511_v61  ;;  %v513_v7 = vsel %vm342_vm3, %v511_v61, %v509_v51 }
 0x1eb   : > { %2340 = vmatprep.subr.msk.bf16.mxu1 %vm422_vm11, %v577_v63  ;;  %v587_v8 = vsel %vm422_vm11, %v576_v3, 0  ;;  %v514_v9 = vmul.f32 %v2512_v14, %v512_v6  ;;  %v515_v10 = vmul.f32 %v2516_v16, %v513_v7 }
 0x1ec   : > { %603 = vmatpush1.bf16.msra.mxu1 %v587_v8 }
 0x1ed   : > { %v527_v12 = vpop.permute.xlu1 %526  ;;  %v501_v17 = vpop.permute.xlu0 %500  ;;  %v554_v22 = vrot.slane %v514_v9, 4  ;;  %v555_v23 = vrot.slane %v515_v10, 4 }
 0x1ee   : > { %v529_v15 = vsel %vm360_vm6, %v527_v12, %v525_v53  ;;  %v528_v19 = vsel %vm360_vm6, %v525_v53, %v527_v12 }
 0x1ef   : > { %v531_v18 = vmul.f32 %v2530_v20, %v529_v15  ;;  %v560_v27 = vrot.slane %v528_v19, 4  ;;  %v569_v32 = vsel %vm398_vm12, %v473_v49, %v555_v23  ;;  %v568_v36 = vsel %vm398_vm12, %v472_v46, %v554_v22  ;;  %v2721_v19 = vld [vmem:[%s212_s14 + $0x8] sm:$0xff] }
 0x1f0   : > { %1027 = vrot.lane.b32.xlu0 %v2721_v19, %s2402_s22 }
 0x1f1   : > { %v519_v24 = vpop.permute.xlu1 %518  ;;  %v561_v28 = vrot.slane %v531_v18, 4  ;;  %v485_v30 = vpop.permute.xlu0 %484  ;;  %v2717_v18 = vld [vmem:[%s212_s14] sm:$0xff] }
 0x1f2   : > { %v520_v25 = vsel %vm351_vm10, %v517_v60, %v519_v24  ;;  %v521_v26 = vsel %vm351_vm10, %v519_v24, %v517_v60  ;;  %1025 = vrot.lane.b32.xlu1 %v2717_v18, %s2402_s22 }
 0x1f3   : > { %v522_v29 = vmul.f32 %v2559_v34, %v520_v25  ;;  %v523_v13 = vmul.f32 %v2562_v35, %v521_v26 }
 0x1f4   : > { %1011 = vrot.lane.b32.xlu0 %v2721_v19, %s2404_s24 }
 0x1f5   : > { %v503_v31 = vpop.permute.xlu1 %502  ;;  %v571_v33 = vsel %vm398_vm12, %v523_v13, %v561_v28  ;;  %v570_v37 = vsel %vm398_vm12, %v522_v29, %v560_v27  ;;  %v477_v41 = vpop.permute.xlu0 %476 }
 0x1f6   : > { %v575_v38 = vpack.c.bf16 %v571_v33, %v569_v32  ;;  %v574_v39 = vpack.c.bf16 %v570_v37, %v568_v36  ;;  %v504_v42 = vsel %vm333_vm13, %v501_v17, %v503_v31  ;;  %v505_v43 = vsel %vm333_vm13, %v503_v31, %v501_v17  ;;  %v474_v17 = vld [vmem:[%s3696_s2 + $0x8] sm:$0x3]  ;;  %1009 = vrot.lane.b32.xlu1 %v2717_v18, %s2404_s24  ;;  %v968_v36 = vld [vmem:[%s3697_s3 + $0x20] sm:$0xff] }
 0x1f7   : > { %v506_v46 = vmul.f32 %v2559_v34, %v505_v43  ;;  %v507_v47 = vmul.f32 %v2586_v59, %v504_v42 }
 0x1f8   : > { %604 = vmatprep.subr.bf16.mxu1 %v575_v38 }
 0x1f9   : > { %605 = vmatpush1.bf16.msra.mxu1 %v574_v39  ;;  %v487_v40 = vpop.permute.xlu1 %486  ;;  %v493_v52 = vpop.permute.xlu0 %492  ;;  %v548_v56 = vrot.slane %v506_v46, 4  ;;  %v549_v57 = vrot.slane %v507_v47, 4 }
 0x1fa   : > { %v489_v44 = vsel %vm315_vm15, %v487_v40, %v485_v30  ;;  %v488_v51 = vsel %vm315_vm15, %v485_v30, %v487_v40 }
 0x1fb   : > { %v490_v50 = vmul.f32 %v2594_v62, %v489_v44  ;;  %v543_v63 = vrot.slane %v488_v51, 4 }
 0x1fd   : > { %v479_v45 = vpop.permute.xlu1 %478  ;;  %v542_v61 = vrot.slane %v490_v50, 4 }
 0x1fe   : > { %v480_v48 = vsel %vm306_vm2, %v477_v41, %v479_v45  ;;  %v481_v49 = vsel %vm306_vm2, %v479_v45, %v477_v41 }
 0x1ff   : > { %v482_v53 = vmul.f32 %v2599_v4, %v481_v49  ;;  %v483_v54 = vmul.f32 %v2586_v59, %v480_v48 }
 0x201   : > { %v495_v55 = vpop.permute.xlu1 %494  ;;  %v565_v7 = vsel %vm398_vm12, %v483_v54, %v543_v63  ;;  %v564_v9 = vsel %vm398_vm12, %v482_v53, %v542_v61 }
 0x202   : > { %v496_v58 = vsel %vm324_vm5, %v493_v52, %v495_v55  ;;  %v497_v60 = vsel %vm324_vm5, %v495_v55, %v493_v52 }
 0x203   : > { %v498_v3 = vmul.f32 %v2614_v11, %v497_v60  ;;  %v499_v6 = vmul.f32 %v2516_v16, %v496_v58 }
 0x205   : > { %v567_v8 = vsel %vm398_vm12, %v499_v6, %v549_v57  ;;  %v566_v10 = vsel %vm398_vm12, %v498_v3, %v548_v56 }
 0x206   : > { %v573_v12 = vpack.c.bf16 %v567_v8, %v565_v7  ;;  %v572_v15 = vpack.c.bf16 %v566_v10, %v564_v9  ;;  %v581_v22 = vpop.permute.xlu0 %580 }
 0x208   : > { %606 = vmatprep.subr.bf16.mxu1 %v573_v12 }
 0x209   : > { %607 = vmatpush1.bf16.msra.mxu1 %v572_v15 }
 0x20c   : > { %2341 = vmatmul.mubr.msk.bf16.vlgmr.msra.gmra.mxu1 %vm418_vm0, %v474_v17 }
 0x20d   : > { %952 = vmatprep.mubr.bf16.mxu1 %v2407_v2 }
 0x262   : > { %v1028_v38 = vpop.permute.xlu0 %1027 }
 0x264   : > { %v1026_v37 = vpop.permute.xlu1 %1025 }
 0x266   : > { %v2799_v40 = vpop.permute.xlu0 %1011 }
 0x268   : > { %v2797_v39 = vpop.permute.xlu1 %1009 }
 0x2cc   : > { %v626_v23 = vpop.f32.mrf.mxu1 }
 0x2cd   : > { %v627_v24 = vadd.f32 %v626_v23, %v581_v22 }
 0x2ce   : > { %v628_v25 = vpop.f32.mrf.mxu1 }
 0x2cf   : > { %v633_v26 = vmul.f32 0.01, %v627_v24  ;;  %v629_v27 = vadd.f32 %v628_v25, %v581_v22 }
 0x2d0   : > { %v630_v28 = vpop.f32.mrf.mxu1 }
 0x2d1   : > { %v635_v29 = vmax.f32 %v627_v24, %v633_v26  ;;  %v634_v13 = vmul.f32 0.01, %v629_v27 }
 0x2d2   : > { %v631_v30 = vpop.f32.mrf.mxu1 }
 0x2d3   : > { %v2730_v31 = vadd.f32 %v635_v29, %v2455_v0  ;;  %v636_v32 = vmax.f32 %v629_v27, %v634_v13  ;;  %v640_v0 = vld [vmem:[%s3697_s3 + $0x10] sm:$0xf] }
 0x2d5   : > { %v2733_v33 = vadd.f32 %v636_v32, %v2463_v1  ;;  %697 = vrot.lane.b32.xlu1 %v2730_v31, %s2402_s22 }
 0x2d7   : > { %699 = vrot.lane.b32.xlu0 %v2733_v33, %s2402_s22 }
 0x2d9   : > { %673 = vrot.lane.b32.xlu1 %v2730_v31, %s2401_s21 }
 0x2db   : > { %675 = vrot.lane.b32.xlu0 %v2733_v33, %s2401_s21 }
 0x2dd   : > { %689 = vrot.lane.b32.xlu1 %v2730_v31, %s2403_s23 }
 0x2df   : > { %691 = vrot.lane.b32.xlu0 %v2733_v33, %s2403_s23 }
 0x2e1   : > { %681 = vrot.lane.b32.xlu1 %v2730_v31, %s2404_s24 }
 0x2e3   : > { %683 = vrot.lane.b32.xlu0 %v2733_v33, %s2404_s24 }
 0x2e5   : > { %665 = vrot.lane.b32.xlu1 %v2730_v31, %s2405_s25 }
 0x2e7   : > { %667 = vrot.lane.b32.xlu0 %v2733_v33, %s2405_s25 }
 0x2e9   : > { %649 = vrot.lane.b32.xlu1 %v2730_v31, %s2406_s26 }
 0x2eb   : > { %651 = vrot.lane.b32.xlu0 %v2733_v33, %s2406_s26 }
 0x2ed   : > { %641 = vrot.lane.b32.xlu1 %v2730_v31, %s2408_s27 }
 0x2ef   : > { %643 = vrot.lane.b32.xlu0 %v2733_v33, %s2408_s27 }
 0x2f1   : > { %657 = vrot.lane.b32.xlu1 %v2730_v31, %s2409_s28 }
 0x2f3   : > { %659 = vrot.lane.b32.xlu0 %v2733_v33, %s2409_s28 }
 0x2f5   : > { %1017 = vrot.lane.b32.xlu1 %v2717_v18, %s2403_s23 }
 0x2f7   : > { %1019 = vrot.lane.b32.xlu0 %v2721_v19, %s2403_s23 }
 0x2f9   : > { %1001 = vrot.lane.b32.xlu1 %v2717_v18, %s2401_s21 }
 0x2fb   : > { %1003 = vrot.lane.b32.xlu0 %v2721_v19, %s2401_s21 }
 0x2fd   : > { %985 = vrot.lane.b32.xlu1 %v2717_v18, %s2409_s28 }
 0x2ff   : > { %987 = vrot.lane.b32.xlu0 %v2721_v19, %s2409_s28 }
 0x301   : > { %993 = vrot.lane.b32.xlu1 %v2717_v18, %s2405_s25 }
 0x303   : > { %995 = vrot.lane.b32.xlu0 %v2721_v19, %s2405_s25 }
 0x305   : > { %969 = vrot.lane.b32.xlu1 %v2717_v18, %s2408_s27 }
 0x307   : > { %971 = vrot.lane.b32.xlu0 %v2721_v19, %s2408_s27 }
 0x309   : > { %977 = vrot.lane.b32.xlu1 %v2717_v18, %s2406_s26 }
 0x30b   : > { %979 = vrot.lane.b32.xlu0 %v2721_v19, %s2406_s26 }
 0x30d   : > { %745 = vperm.xlu1 %2390, %v640_v0  }
 0x30f   : > { %1045 = vperm.xlu0 %2389, %v968_v36  }
 0x347   : > { %v698_v41 = vpop.permute.xlu1 %697 }
 0x349   : > { %v700_v42 = vpop.permute.xlu0 %699 }
 0x34a   : > { %v701_v43 = vsel %vm369_vm7, %v698_v41, %v700_v42  ;;  %v702_v44 = vsel %vm369_vm7, %v700_v42, %v698_v41 }
 0x34b   : > { %v703_v45 = vmul.f32 %v2512_v14, %v701_v43  ;;  %v704_v46 = vmul.f32 %v2533_v21, %v702_v44  ;;  %v674_v47 = vpop.permute.xlu1 %673 }
 0x34d   : > { %v741_v48 = vpack.c.bf16 %v703_v45, %v703_v45  ;;  %v742_v49 = vpack.c.bf16 %v704_v46, %v704_v46  ;;  %v676_v50 = vpop.permute.xlu0 %675 }
 0x34e   : > { %v677_v51 = vsel %vm342_vm3, %v674_v47, %v676_v50  ;;  %v678_v52 = vsel %vm342_vm3, %v676_v50, %v674_v47  ;;  %v1029_v50 = vsel %vm369_vm7, %v1026_v37, %v1028_v38 }
 0x34f   : > { %2342 = vmatprep.subr.msk.bf16.mxu0 %vm422_vm11, %v742_v49  ;;  %v690_v53 = vpop.permute.xlu1 %689  ;;  %v752_v54 = vsel %vm422_vm11, %v741_v48, 0  ;;  %v679_v55 = vmul.f32 %v2512_v14, %v677_v51  ;;  %v680_v56 = vmul.f32 %v2516_v16, %v678_v52  ;;  %v1030_v51 = vsel %vm369_vm7, %v1028_v38, %v1026_v37 }
 0x350   : > { %768 = vmatpush1.bf16.msra.mxu0 %v752_v54  ;;  %v1031_v38 = vmul.f32 %v2512_v14, %v1029_v50 }
 0x351   : > { %v692_v57 = vpop.permute.xlu0 %691  ;;  %v719_v3 = vrot.slane %v679_v55, 4  ;;  %v720_v6 = vrot.slane %v680_v56, 4 }
 0x352   : > { %v694_v58 = vsel %vm360_vm6, %v692_v57, %v690_v53  ;;  %v693_v63 = vsel %vm360_vm6, %v690_v53, %v692_v57 }
 0x353   : > { %v696_v60 = vmul.f32 %v2530_v20, %v694_v58  ;;  %v682_v61 = vpop.permute.xlu1 %681  ;;  %v725_v10 = vrot.slane %v693_v63, 4  ;;  %v734_v24 = vsel %vm398_vm12, %v2733_v33, %v720_v6  ;;  %v733_v26 = vsel %vm398_vm12, %v2730_v31, %v719_v3 }
 0x354   : > { %v1032_v6 = vmul.f32 %v2533_v21, %v1030_v51 }
 0x355   : > { %v684_v7 = vpop.permute.xlu0 %683  ;;  %v726_v12 = vrot.slane %v696_v60, 4 }
 0x356   : > { %v685_v8 = vsel %vm351_vm10, %v682_v61, %v684_v7  ;;  %v686_v9 = vsel %vm351_vm10, %v684_v7, %v682_v61 }
 0x357   : > { %v687_v15 = vmul.f32 %v2559_v34, %v685_v8  ;;  %v688_v17 = vmul.f32 %v2562_v35, %v686_v9  ;;  %v666_v22 = vpop.permute.xlu1 %665 }
 0x359   : > { %v668_v23 = vpop.permute.xlu0 %667  ;;  %v736_v25 = vsel %vm398_vm12, %v688_v17, %v726_v12  ;;  %v735_v27 = vsel %vm398_vm12, %v687_v15, %v725_v10 }
 0x35a   : > { %v740_v28 = vpack.c.bf16 %v736_v25, %v734_v24  ;;  %v739_v29 = vpack.c.bf16 %v735_v27, %v733_v26  ;;  %v669_v32 = vsel %vm333_vm13, %v666_v22, %v668_v23  ;;  %v670_v0 = vsel %vm333_vm13, %v668_v23, %v666_v22 }
 0x35b   : > { %v650_v13 = vpop.permute.xlu1 %649  ;;  %v671_v43 = vmul.f32 %v2559_v34, %v670_v0  ;;  %v672_v44 = vmul.f32 %v2586_v59, %v669_v32  ;;  %v1014_v23 = vsel %vm351_vm10, %v2799_v40, %v2797_v39  ;;  %v1041_v25 = vpack.c.bf16 %v1031_v38, %v1031_v38 }
 0x35c   : > { %769 = vmatprep.subr.bf16.mxu0 %v740_v28  ;;  %v1042_v26 = vpack.c.bf16 %v1032_v6, %v1032_v6 }
 0x35d   : > { %v652_v30 = vpop.permute.xlu0 %651  ;;  %770 = vmatpush1.bf16.msra.mxu0 %v739_v29  ;;  %v713_v55 = vrot.slane %v671_v43, 4  ;;  %v714_v56 = vrot.slane %v672_v44, 4  ;;  %v639_v29 = vld [vmem:[%s3696_s2 + $0x10] sm:$0x3] }
 0x35e   : > { %v654_v41 = vsel %vm315_vm15, %v652_v30, %v650_v13  ;;  %v653_v49 = vsel %vm315_vm15, %v650_v13, %v652_v30  ;;  %v1013_v13 = vsel %vm351_vm10, %v2797_v39, %v2799_v40  ;;  %v1016_v30 = vmul.f32 %v2562_v35, %v1014_v23  ;;  %v967_v23 = vld [vmem:[%s3696_s2 + $0x20] sm:$0xf] }
 0x35f   : > { %v642_v36 = vpop.permute.xlu1 %641  ;;  %v655_v47 = vmul.f32 %v2594_v62, %v654_v41  ;;  %v708_v61 = vrot.slane %v653_v49, 4  ;;  %v1053_v39 = vsel %vm398_vm12, %v1041_v25, 0  ;;  %v1015_v43 = vmul.f32 %v2559_v34, %v1013_v13 }
 0x361   : > { %v644_v42 = vpop.permute.xlu0 %643  ;;  %v707_v60 = vrot.slane %v655_v47, 4 }
 0x362   : > { %v645_v45 = vsel %vm306_vm2, %v642_v36, %v644_v42  ;;  %v646_v46 = vsel %vm306_vm2, %v644_v42, %v642_v36 }
 0x363   : > { %v658_v48 = vpop.permute.xlu1 %657  ;;  %v647_v52 = vmul.f32 %v2599_v4, %v646_v46  ;;  %v648_v53 = vmul.f32 %v2586_v59, %v645_v45 }
 0x365   : > { %v660_v54 = vpop.permute.xlu0 %659  ;;  %v730_v8 = vsel %vm398_vm12, %v648_v53, %v708_v61  ;;  %v729_v10 = vsel %vm398_vm12, %v647_v52, %v707_v60 }
 0x366   : > { %v661_v57 = vsel %vm324_vm5, %v658_v48, %v660_v54  ;;  %v662_v58 = vsel %vm324_vm5, %v660_v54, %v658_v48 }
 0x367   : > { %v663_v63 = vmul.f32 %v2614_v11, %v662_v58  ;;  %v664_v3 = vmul.f32 %v2516_v16, %v661_v57  ;;  %v1018_v37 = vpop.permute.xlu1 %1017 }
 0x369   : > { %v1020_v7 = vpop.permute.xlu0 %1019  ;;  %v732_v9 = vsel %vm398_vm12, %v664_v3, %v714_v56  ;;  %v731_v12 = vsel %vm398_vm12, %v663_v63, %v713_v55 }
 0x36a   : > { %v1022_v15 = vsel %vm360_vm6, %v1020_v7, %v1018_v37  ;;  %v738_v17 = vpack.c.bf16 %v732_v9, %v730_v8  ;;  %v737_v22 = vpack.c.bf16 %v731_v12, %v729_v10  ;;  %v1021_v42 = vsel %vm360_vm6, %v1018_v37, %v1020_v7 }
 0x36b   : > { %v1002_v24 = vpop.permute.xlu1 %1001  ;;  %v1024_v27 = vmul.f32 %v2530_v20, %v1022_v15  ;;  %v1039_v49 = vpack.c.bf16 %v1021_v42, %v1015_v43 }
 0x36c   : > { %771 = vmatprep.subr.bf16.mxu0 %v738_v17 }
 0x36d   : > { %v1004_v28 = vpop.permute.xlu0 %1003  ;;  %772 = vmatpush1.bf16.msra.mxu0 %v737_v22  ;;  %v1040_v40 = vpack.c.bf16 %v1024_v27, %v1016_v30 }
 0x36e   : > { %v1005_v32 = vsel %vm342_vm3, %v1002_v24, %v1004_v28  ;;  %v1006_v0 = vsel %vm342_vm3, %v1004_v28, %v1002_v24  ;;  %2346 = vmatprep.subr.msk.bf16.mxu0 %vm398_vm12, %v1042_v26 }
 0x36f   : > { %v1008_v36 = vmul.f32 %v2516_v16, %v1006_v0  ;;  %v986_v41 = vpop.permute.xlu1 %985  ;;  %v1007_v44 = vmul.f32 %v2512_v14, %v1005_v32 }
 0x370   : > { %2343 = vmatmul.mubr.msk.bf16.vlgmr.msra.gmra.mxu0 %vm418_vm0, %v639_v29 }
 0x371   : > { %v988_v45 = vpop.permute.xlu0 %987  ;;  %1065 = vmatpush1.bf16.msra.mxu0 %v1053_v39  ;;  %1090 = vmatprep.mubr.bf16.mxu0 %v2407_v2  ;;  %v1038_v48 = vpack.c.bf16 %v1008_v36, %v2721_v19  ;;  %v1037_v51 = vpack.c.bf16 %v1007_v44, %v2717_v18 }
 0x372   : > { %v989_v46 = vsel %vm324_vm5, %v986_v41, %v988_v45  ;;  %v990_v47 = vsel %vm324_vm5, %v988_v45, %v986_v41  ;;  %1066 = vmatprep.subr.bf16.mxu0 %v1040_v40 }
 0x373   : > { %v994_v50 = vpop.permute.xlu1 %993  ;;  %v991_v52 = vmul.f32 %v2614_v11, %v990_v47  ;;  %v992_v53 = vmul.f32 %v2516_v16, %v989_v46 }
 0x375   : > { %v996_v54 = vpop.permute.xlu0 %995  ;;  %1067 = vmatpush1.bf16.msra.mxu0 %v1039_v49 }
 0x376   : > { %v997_v55 = vsel %vm333_vm13, %v994_v50, %v996_v54  ;;  %v998_v56 = vsel %vm333_vm13, %v996_v54, %v994_v50  ;;  %1068 = vmatprep.subr.bf16.mxu0 %v1038_v48  ;;  %v1104_v50 = vld [vmem:[%s3697_s3 + $0x28] sm:$0xff] }
 0x377   : > { %v999_v57 = vmul.f32 %v2559_v34, %v998_v56  ;;  %v1000_v58 = vmul.f32 %v2586_v59, %v997_v55  ;;  %v970_v60 = vpop.permute.xlu1 %969 }
 0x379   : > { %v1035_v61 = vpack.c.bf16 %v999_v57, %v991_v52  ;;  %v972_v63 = vpop.permute.xlu0 %971  ;;  %1069 = vmatpush1.bf16.msra.mxu0 %v1037_v51  ;;  %v1036_v3 = vpack.c.bf16 %v1000_v58, %v992_v53 }
 0x37a   : > { %v973_v37 = vsel %vm306_vm2, %v970_v60, %v972_v63  ;;  %v974_v38 = vsel %vm306_vm2, %v972_v63, %v970_v60 }
 0x37b   : > { %v976_v6 = vmul.f32 %v2586_v59, %v973_v37  ;;  %v978_v7 = vpop.permute.xlu1 %977  ;;  %1070 = vmatprep.subr.bf16.mxu0 %v1036_v3  ;;  %v975_v8 = vmul.f32 %v2599_v4, %v974_v38 }
 0x37d   : > { %v980_v9 = vpop.permute.xlu0 %979  ;;  %1071 = vmatpush1.bf16.msra.mxu0 %v1035_v61 }
 0x37e   : > { %v981_v10 = vsel %vm315_vm15, %v978_v7, %v980_v9  ;;  %v982_v12 = vsel %vm315_vm15, %v980_v9, %v978_v7 }
 0x37f   : > { %v983_v15 = vmul.f32 %v2594_v62, %v982_v12  ;;  %v1034_v17 = vpack.c.bf16 %v981_v10, %v976_v6 }
 0x381   : > { %v1033_v22 = vpack.c.bf16 %v983_v15, %v975_v8  ;;  %1072 = vmatprep.subr.bf16.mxu0 %v1034_v17 }
 0x383   : > { %1073 = vmatpush1.bf16.msra.mxu0 %v1033_v22 }
 0x386   : > { %2347 = vmatmul.mubr.msk.bf16.vlgmr.msra.gmra.mxu0 %vm1048_vm8, %v967_v23 }
 0x387   : > { %1362 = vmatprep.mubr.bf16.mxu0 %v2407_v2 }
 0x388   : > { %v746_v24 = vpop.permute.xlu1 %745 }
 0x38a   : > { %v1046_v40 = vpop.permute.xlu0 %1045 }
 0x430   : > { %v791_v25 = vpop.f32.mrf.mxu0 }
 0x431   : > { %v792_v26 = vadd.f32 %v791_v25, %v746_v24 }
 0x432   : > { %v793_v27 = vpop.f32.mrf.mxu0 }
 0x433   : > { %v798_v28 = vmul.f32 0.01, %v792_v26  ;;  %v794_v29 = vadd.f32 %v793_v27, %v746_v24 }
 0x434   : > { %v795_v13 = vpop.f32.mrf.mxu0 }
 0x435   : > { %v2923_v30 = vmax.f32 %v792_v26, %v798_v28  ;;  %v799_v32 = vmul.f32 0.01, %v794_v29 }
 0x436   : > { %v796_v0 = vpop.f32.mrf.mxu0 }
 0x437   : > { %v2925_v36 = vmax.f32 %v794_v29, %v799_v32  ;;  %860 = vrot.lane.b32.xlu1 %v2923_v30, %s2402_s22 }
 0x439   : > { %862 = vrot.lane.b32.xlu0 %v2925_v36, %s2402_s22 }
 0x43b   : > { %836 = vrot.lane.b32.xlu1 %v2923_v30, %s2401_s21 }
 0x43d   : > { %838 = vrot.lane.b32.xlu0 %v2925_v36, %s2401_s21 }
 0x43f   : > { %852 = vrot.lane.b32.xlu1 %v2923_v30, %s2403_s23 }
 0x441   : > { %854 = vrot.lane.b32.xlu0 %v2925_v36, %s2403_s23 }
 0x443   : > { %844 = vrot.lane.b32.xlu1 %v2923_v30, %s2404_s24 }
 0x445   : > { %846 = vrot.lane.b32.xlu0 %v2925_v36, %s2404_s24 }
 0x446   : > { %v1092_v41 = vpop.f32.mrf.mxu0 }
 0x447   : > { %828 = vrot.lane.b32.xlu1 %v2923_v30, %s2405_s25  ;;  %v1093_v44 = vadd.f32 %v1092_v41, %v1046_v40 }
 0x448   : > { %v1094_v42 = vpop.f32.mrf.mxu0 }
 0x449   : > { %830 = vrot.lane.b32.xlu0 %v2925_v36, %s2405_s25  ;;  %v1095_v45 = vadd.f32 %v1094_v42, %v1046_v40  ;;  %v1099_v46 = vmul.f32 0.01, %v1093_v44 }
 0x44a   : > { %v1096_v39 = vpop.f32.mrf.mxu0 }
 0x44b   : > { %812 = vrot.lane.b32.xlu1 %v2923_v30, %s2406_s26  ;;  %v1100_v47 = vmul.f32 0.01, %v1095_v45  ;;  %v2957_v48 = vmax.f32 %v1093_v44, %v1099_v46 }
 0x44c   : > { %v1097_v43 = vpop.f32.mrf.mxu0 }
 0x44d   : > { %814 = vrot.lane.b32.xlu0 %v2925_v36, %s2406_s26  ;;  %v2961_v49 = vmax.f32 %v1095_v45, %v1100_v47 }
 0x44f   : > { %804 = vrot.lane.b32.xlu1 %v2923_v30, %s2408_s27 }
 0x451   : > { %806 = vrot.lane.b32.xlu0 %v2925_v36, %s2408_s27 }
 0x453   : > { %820 = vrot.lane.b32.xlu1 %v2923_v30, %s2409_s28 }
 0x455   : > { %822 = vrot.lane.b32.xlu0 %v2925_v36, %s2409_s28 }
 0x457   : > { %1161 = vrot.lane.b32.xlu1 %v2957_v48, %s2402_s22 }
 0x459   : > { %1163 = vrot.lane.b32.xlu0 %v2961_v49, %s2402_s22 }
 0x45b   : > { %1145 = vrot.lane.b32.xlu1 %v2957_v48, %s2404_s24 }
 0x45d   : > { %1147 = vrot.lane.b32.xlu0 %v2961_v49, %s2404_s24 }
 0x45f   : > { %1153 = vrot.lane.b32.xlu1 %v2957_v48, %s2403_s23 }
 0x461   : > { %1155 = vrot.lane.b32.xlu0 %v2961_v49, %s2403_s23 }
 0x463   : > { %1137 = vrot.lane.b32.xlu1 %v2957_v48, %s2401_s21 }
 0x465   : > { %1139 = vrot.lane.b32.xlu0 %v2961_v49, %s2401_s21 }
 0x467   : > { %1121 = vrot.lane.b32.xlu1 %v2957_v48, %s2409_s28 }
 0x469   : > { %1123 = vrot.lane.b32.xlu0 %v2961_v49, %s2409_s28 }
 0x46b   : > { %1129 = vrot.lane.b32.xlu1 %v2957_v48, %s2405_s25 }
 0x46d   : > { %1131 = vrot.lane.b32.xlu0 %v2961_v49, %s2405_s25 }
 0x46f   : > { %1105 = vrot.lane.b32.xlu1 %v2957_v48, %s2408_s27 }
 0x471   : > { %1107 = vrot.lane.b32.xlu0 %v2961_v49, %s2408_s27 }
 0x473   : > { %1113 = vrot.lane.b32.xlu1 %v2957_v48, %s2406_s26 }
 0x475   : > { %1115 = vrot.lane.b32.xlu0 %v2961_v49, %s2406_s26 }
 0x477   : > { %1181 = vperm.xlu1 %2390, %v1104_v50  }
 0x4a9   : > { %v861_v51 = vpop.permute.xlu1 %860 }
 0x4ab   : > { %v863_v52 = vpop.permute.xlu0 %862 }
 0x4ac   : > { %v864_v53 = vsel %vm369_vm7, %v861_v51, %v863_v52  ;;  %v865_v54 = vsel %vm369_vm7, %v863_v52, %v861_v51 }
 0x4ad   : > { %v866_v55 = vmul.f32 %v2512_v14, %v864_v53  ;;  %v867_v56 = vmul.f32 %v2533_v21, %v865_v54  ;;  %v837_v57 = vpop.permute.xlu1 %836 }
 0x4af   : > { %v904_v58 = vpack.c.bf16 %v866_v55, %v866_v55  ;;  %v905_v60 = vpack.c.bf16 %v867_v56, %v867_v56  ;;  %v839_v61 = vpop.permute.xlu0 %838 }
 0x4b0   : > { %v840_v63 = vsel %vm342_vm3, %v837_v57, %v839_v61  ;;  %v841_v3 = vsel %vm342_vm3, %v839_v61, %v837_v57 }
 0x4b1   : > { %2344 = vmatprep.subr.msk.bf16.mxu1 %vm422_vm11, %v905_v60  ;;  %v853_v37 = vpop.permute.xlu1 %852  ;;  %v915_v38 = vsel %vm422_vm11, %v904_v58, 0  ;;  %v842_v6 = vmul.f32 %v2512_v14, %v840_v63  ;;  %v843_v7 = vmul.f32 %v2516_v16, %v841_v3 }
 0x4b2   : > { %931 = vmatpush1.bf16.msra.mxu1 %v915_v38 }
 0x4b3   : > { %v855_v8 = vpop.permute.xlu0 %854  ;;  %v882_v17 = vrot.slane %v842_v6, 4  ;;  %v883_v22 = vrot.slane %v843_v7, 4 }
 0x4b4   : > { %v857_v9 = vsel %vm360_vm6, %v855_v8, %v853_v37  ;;  %v856_v15 = vsel %vm360_vm6, %v853_v37, %v855_v8 }
 0x4b5   : > { %v859_v10 = vmul.f32 %v2530_v20, %v857_v9  ;;  %v845_v12 = vpop.permute.xlu1 %844  ;;  %v888_v26 = vrot.slane %v856_v15, 4  ;;  %v897_v0 = vsel %vm398_vm12, %v2925_v36, %v883_v22  ;;  %v896_v42 = vsel %vm398_vm12, %v2923_v30, %v882_v17 }
 0x4b7   : > { %v847_v23 = vpop.permute.xlu0 %846  ;;  %v889_v27 = vrot.slane %v859_v10, 4 }
 0x4b8   : > { %v848_v24 = vsel %vm351_vm10, %v845_v12, %v847_v23  ;;  %v849_v25 = vsel %vm351_vm10, %v847_v23, %v845_v12 }
 0x4b9   : > { %v850_v28 = vmul.f32 %v2559_v34, %v848_v24  ;;  %v851_v29 = vmul.f32 %v2562_v35, %v849_v25  ;;  %v829_v13 = vpop.permute.xlu1 %828 }
 0x4bb   : > { %v831_v32 = vpop.permute.xlu0 %830  ;;  %v899_v41 = vsel %vm398_vm12, %v851_v29, %v889_v27  ;;  %v898_v39 = vsel %vm398_vm12, %v850_v28, %v888_v26 }
 0x4bc   : > { %v903_v40 = vpack.c.bf16 %v899_v41, %v897_v0  ;;  %v902_v43 = vpack.c.bf16 %v898_v39, %v896_v42  ;;  %v832_v46 = vsel %vm333_vm13, %v829_v13, %v831_v32  ;;  %v833_v47 = vsel %vm333_vm13, %v831_v32, %v829_v13  ;;  %v802_v42 = vld [vmem:[%s3696_s2 + $0x18] sm:$0x3] }
 0x4bd   : > { %v813_v44 = vpop.permute.xlu1 %812  ;;  %v834_v30 = vmul.f32 %v2559_v34, %v833_v47  ;;  %v835_v52 = vmul.f32 %v2586_v59, %v832_v46 }
 0x4be   : > { %932 = vmatprep.subr.bf16.mxu1 %v903_v40 }
 0x4bf   : > { %v815_v45 = vpop.permute.xlu0 %814  ;;  %933 = vmatpush1.bf16.msra.mxu1 %v902_v43  ;;  %v876_v63 = vrot.slane %v834_v30, 4  ;;  %v877_v3 = vrot.slane %v835_v52, 4 }
 0x4c0   : > { %v817_v50 = vsel %vm315_vm15, %v815_v45, %v813_v44  ;;  %v816_v57 = vsel %vm315_vm15, %v813_v44, %v815_v45 }
 0x4c1   : > { %v805_v36 = vpop.permute.xlu1 %804  ;;  %v818_v55 = vmul.f32 %v2594_v62, %v817_v50  ;;  %v871_v7 = vrot.slane %v816_v57, 4 }
 0x4c3   : > { %v807_v51 = vpop.permute.xlu0 %806  ;;  %v870_v6 = vrot.slane %v818_v55, 4 }
 0x4c4   : > { %v808_v53 = vsel %vm306_vm2, %v805_v36, %v807_v51  ;;  %v809_v54 = vsel %vm306_vm2, %v807_v51, %v805_v36 }
 0x4c5   : > { %v821_v56 = vpop.permute.xlu1 %820  ;;  %v810_v58 = vmul.f32 %v2599_v4, %v809_v54  ;;  %v811_v60 = vmul.f32 %v2586_v59, %v808_v53 }
 0x4c7   : > { %v823_v61 = vpop.permute.xlu0 %822  ;;  %v893_v15 = vsel %vm398_vm12, %v811_v60, %v871_v7  ;;  %v892_v22 = vsel %vm398_vm12, %v810_v58, %v870_v6 }
 0x4c8   : > { %v824_v37 = vsel %vm324_vm5, %v821_v56, %v823_v61  ;;  %v825_v38 = vsel %vm324_vm5, %v823_v61, %v821_v56 }
 0x4c9   : > { %v826_v8 = vmul.f32 %v2614_v11, %v825_v38  ;;  %v827_v9 = vmul.f32 %v2516_v16, %v824_v37  ;;  %v1162_v10 = vpop.permute.xlu1 %1161 }
 0x4cb   : > { %v1164_v12 = vpop.permute.xlu0 %1163  ;;  %v895_v17 = vsel %vm398_vm12, %v827_v9, %v877_v3  ;;  %v894_v23 = vsel %vm398_vm12, %v826_v8, %v876_v63 }
 0x4cc   : > { %v1165_v24 = vsel %vm369_vm7, %v1162_v10, %v1164_v12  ;;  %v1166_v25 = vsel %vm369_vm7, %v1164_v12, %v1162_v10  ;;  %v901_v26 = vpack.c.bf16 %v895_v17, %v893_v15  ;;  %v900_v27 = vpack.c.bf16 %v894_v23, %v892_v22 }
 0x4cd   : > { %v1167_v28 = vmul.f32 %v2512_v14, %v1165_v24  ;;  %v1168_v29 = vmul.f32 %v2533_v21, %v1166_v25  ;;  %v1146_v13 = vpop.permute.xlu1 %1145 }
 0x4ce   : > { %934 = vmatprep.subr.bf16.mxu1 %v901_v26 }
 0x4cf   : > { %v1177_v32 = vpack.c.bf16 %v1167_v28, %v1167_v28  ;;  %v1178_v0 = vpack.c.bf16 %v1168_v29, %v1168_v29  ;;  %v1148_v41 = vpop.permute.xlu0 %1147  ;;  %935 = vmatpush1.bf16.msra.mxu1 %v900_v27 }
 0x4d0   : > { %v1150_v43 = vsel %vm351_vm10, %v1148_v41, %v1146_v13  ;;  %v1149_v44 = vsel %vm351_vm10, %v1146_v13, %v1148_v41 }
 0x4d1   : > { %2348 = vmatprep.subr.msk.bf16.mxu1 %vm398_vm12, %v1178_v0  ;;  %v1154_v39 = vpop.permute.xlu1 %1153  ;;  %v1188_v40 = vsel %vm398_vm12, %v1177_v32, 0  ;;  %v1152_v47 = vmul.f32 %v2562_v35, %v1150_v43  ;;  %v1151_v30 = vmul.f32 %v2559_v34, %v1149_v44 }
 0x4d2   : > { %2345 = vmatmul.mubr.msk.bf16.vlgmr.msra.gmra.mxu1 %vm418_vm0, %v802_v42 }
 0x4d3   : > { %v1156_v45 = vpop.permute.xlu0 %1155  ;;  %1200 = vmatpush1.bf16.msra.mxu1 %v1188_v40  ;;  %1225 = vmatprep.mubr.bf16.mxu1 %v2407_v2 }
 0x4d4   : > { %v1158_v46 = vsel %vm360_vm6, %v1156_v45, %v1154_v39  ;;  %v1157_v36 = vsel %vm360_vm6, %v1154_v39, %v1156_v45  ;;  %v1103_v39 = vld [vmem:[%s3696_s2 + $0x28] sm:$0xf] }
 0x4d5   : > { %v1160_v50 = vmul.f32 %v2530_v20, %v1158_v46  ;;  %v1138_v51 = vpop.permute.xlu1 %1137  ;;  %v1175_v54 = vpack.c.bf16 %v1157_v36, %v1151_v30 }
 0x4d7   : > { %v1140_v52 = vpop.permute.xlu0 %1139  ;;  %v1176_v53 = vpack.c.bf16 %v1160_v50, %v1152_v47 }
 0x4d8   : > { %v1141_v55 = vsel %vm342_vm3, %v1138_v51, %v1140_v52  ;;  %v1142_v56 = vsel %vm342_vm3, %v1140_v52, %v1138_v51 }
 0x4d9   : > { %v1143_v57 = vmul.f32 %v2512_v14, %v1141_v55  ;;  %v1144_v58 = vmul.f32 %v2516_v16, %v1142_v56  ;;  %1201 = vmatprep.subr.bf16.mxu1 %v1176_v53  ;;  %v1122_v60 = vpop.permute.xlu1 %1121 }
 0x4da   : > { %1202 = vmatpush1.bf16.msra.mxu1 %v1175_v54 }
 0x4db   : > { %v1173_v61 = vpack.c.bf16 %v1143_v57, %v2957_v48  ;;  %v1124_v63 = vpop.permute.xlu0 %1123  ;;  %v1174_v3 = vpack.c.bf16 %v1144_v58, %v2961_v49 }
 0x4dc   : > { %v1125_v38 = vsel %vm324_vm5, %v1122_v60, %v1124_v63  ;;  %v1126_v6 = vsel %vm324_vm5, %v1124_v63, %v1122_v60 }
 0x4dd   : > { %1203 = vmatprep.subr.bf16.mxu1 %v1174_v3  ;;  %v1130_v37 = vpop.permute.xlu1 %1129  ;;  %v1127_v48 = vmul.f32 %v2614_v11, %v1126_v6  ;;  %v1128_v49 = vmul.f32 %v2516_v16, %v1125_v38 }
 0x4de   : > { %1204 = vmatpush1.bf16.msra.mxu1 %v1173_v61 }
 0x4df   : > { %v1132_v7 = vpop.permute.xlu0 %1131 }
 0x4e0   : > { %v1133_v8 = vsel %vm333_vm13, %v1130_v37, %v1132_v7  ;;  %v1134_v9 = vsel %vm333_vm13, %v1132_v7, %v1130_v37 }
 0x4e1   : > { %v1135_v10 = vmul.f32 %v2559_v34, %v1134_v9  ;;  %v1136_v12 = vmul.f32 %v2586_v59, %v1133_v8  ;;  %v1106_v15 = vpop.permute.xlu1 %1105 }
 0x4e3   : > { %v1171_v17 = vpack.c.bf16 %v1135_v10, %v1127_v48  ;;  %v1108_v22 = vpop.permute.xlu0 %1107  ;;  %v1172_v23 = vpack.c.bf16 %v1136_v12, %v1128_v49 }
 0x4e4   : > { %v1109_v24 = vsel %vm306_vm2, %v1106_v15, %v1108_v22  ;;  %v1110_v25 = vsel %vm306_vm2, %v1108_v22, %v1106_v15 }
 0x4e5   : > { %1205 = vmatprep.subr.bf16.mxu1 %v1172_v23  ;;  %v1112_v26 = vmul.f32 %v2586_v59, %v1109_v24  ;;  %v1114_v27 = vpop.permute.xlu1 %1113  ;;  %v1111_v32 = vmul.f32 %v2599_v4, %v1110_v25 }
 0x4e6   : > { %1206 = vmatpush1.bf16.msra.mxu1 %v1171_v17 }
 0x4e7   : > { %v1116_v28 = vpop.permute.xlu0 %1115 }
 0x4e8   : > { %v1117_v29 = vsel %vm315_vm15, %v1114_v27, %v1116_v28  ;;  %v1118_v13 = vsel %vm315_vm15, %v1116_v28, %v1114_v27 }
 0x4e9   : > { %v1119_v0 = vmul.f32 %v2594_v62, %v1118_v13  ;;  %v1170_v41 = vpack.c.bf16 %v1117_v29, %v1112_v26 }
 0x4eb   : > { %v1169_v42 = vpack.c.bf16 %v1119_v0, %v1111_v32  ;;  %1207 = vmatprep.subr.bf16.mxu1 %v1170_v41 }
 0x4ed   : > { %1208 = vmatpush1.bf16.msra.mxu1 %v1169_v42 }
 0x4f0   : > { %2349 = vmatmul.mubr.msk.bf16.vlgmr.msra.gmra.mxu1 %vm1048_vm8, %v1103_v39 }
 0x4f1   : > { %1525 = vmatprep.mubr.bf16.mxu1 %v2407_v2 }
 0x4f2   : > { %v1182_v46 = vpop.permute.xlu1 %1181 }
 0x592   : > { %v3116_v40 = vpop.f32.mrf.mxu1 }
 0x594   : > { %v3118_v43 = vpop.f32.mrf.mxu1 }
 0x596   : > { %v958_v44 = vpop.f32.mrf.mxu1 }
 0x598   : > { %v959_v45 = vpop.f32.mrf.mxu1 }
 0x5b0   : > { %v1227_v47 = vpop.f32.mrf.mxu1 }
 0x5b1   : > { %v1228_v36 = vadd.f32 %v1227_v47, %v1182_v46 }
 0x5b2   : > { %v1229_v50 = vpop.f32.mrf.mxu1 }
 0x5b3   : > { %v1234_v51 = vmul.f32 0.01, %v1228_v36  ;;  %v1230_v30 = vadd.f32 %v1229_v50, %v1182_v46 }
 0x5b4   : > { %v1231_v52 = vpop.f32.mrf.mxu1 }
 0x5b5   : > { %v1236_v53 = vmax.f32 %v1228_v36, %v1234_v51  ;;  %v1235_v54 = vmul.f32 0.01, %v1230_v30 }
 0x5b6   : > { %v1232_v55 = vpop.f32.mrf.mxu1 }
 0x5b7   : > { %v3121_v56 = vadd.f32 %v1236_v53, %v2717_v18  ;;  %v1237_v57 = vmax.f32 %v1230_v30, %v1235_v54  ;;  %v1241_v18 = vld [vmem:[%s3697_s3 + $0x30] sm:$0xf] }
 0x5b9   : > { %v3124_v58 = vadd.f32 %v1237_v57, %v2721_v19  ;;  %1298 = vrot.lane.b32.xlu0 %v3121_v56, %s2402_s22 }
 0x5bb   : > { %1300 = vrot.lane.b32.xlu1 %v3124_v58, %s2402_s22 }
 0x5bd   : > { %1282 = vrot.lane.b32.xlu0 %v3121_v56, %s2404_s24 }
 0x5bf   : > { %1284 = vrot.lane.b32.xlu1 %v3124_v58, %s2404_s24 }
 0x5c1   : > { %1290 = vrot.lane.b32.xlu0 %v3121_v56, %s2403_s23 }
 0x5c3   : > { %1292 = vrot.lane.b32.xlu1 %v3124_v58, %s2403_s23 }
 0x5c5   : > { %1274 = vrot.lane.b32.xlu0 %v3121_v56, %s2401_s21 }
 0x5c7   : > { %1276 = vrot.lane.b32.xlu1 %v3124_v58, %s2401_s21 }
 0x5c9   : > { %1258 = vrot.lane.b32.xlu0 %v3121_v56, %s2409_s28 }
 0x5cb   : > { %1260 = vrot.lane.b32.xlu1 %v3124_v58, %s2409_s28 }
 0x5cd   : > { %1266 = vrot.lane.b32.xlu0 %v3121_v56, %s2405_s25 }
 0x5cf   : > { %1268 = vrot.lane.b32.xlu1 %v3124_v58, %s2405_s25 }
 0x5d1   : > { %1242 = vrot.lane.b32.xlu0 %v3121_v56, %s2408_s27 }
 0x5d3   : > { %1244 = vrot.lane.b32.xlu1 %v3124_v58, %s2408_s27 }
 0x5d5   : > { %1250 = vrot.lane.b32.xlu0 %v3121_v56, %s2406_s26 }
 0x5d7   : > { %1252 = vrot.lane.b32.xlu1 %v3124_v58, %s2406_s26 }
 0x5d9   : > { %1318 = vperm.xlu0 %2389, %v1241_v18  }
 0x62b   : > { %v1299_v19 = vpop.permute.xlu0 %1298 }
 0x62d   : > { %v1301_v60 = vpop.permute.xlu1 %1300 }
 0x62e   : > { %v1302_v61 = vsel %vm369_vm7, %v1299_v19, %v1301_v60  ;;  %v1303_v63 = vsel %vm369_vm7, %v1301_v60, %v1299_v19 }
 0x62f   : > { %v1304_v3 = vmul.f32 %v2512_v14, %v1302_v61  ;;  %v1305_v37 = vmul.f32 %v2533_v21, %v1303_v63  ;;  %v1283_v38 = vpop.permute.xlu0 %1282 }
 0x631   : > { %v1314_v6 = vpack.c.bf16 %v1304_v3, %v1304_v3  ;;  %v1315_v7 = vpack.c.bf16 %v1305_v37, %v1305_v37  ;;  %v1285_v8 = vpop.permute.xlu1 %1284 }
 0x632   : > { %v1287_v49 = vsel %vm351_vm10, %v1285_v8, %v1283_v38  ;;  %v1286_v10 = vsel %vm351_vm10, %v1283_v38, %v1285_v8 }
 0x633   : > { %2350 = vmatprep.subr.msk.bf16.mxu0 %vm398_vm12, %v1315_v7  ;;  %v1291_v9 = vpop.permute.xlu0 %1290  ;;  %v1325_v48 = vsel %vm398_vm12, %v1314_v6, 0  ;;  %v1289_v17 = vmul.f32 %v2562_v35, %v1287_v49  ;;  %v1288_v25 = vmul.f32 %v2559_v34, %v1286_v10  ;;  %v1240_v49 = vld [vmem:[%s3696_s2 + $0x30] sm:$0x3] }
 0x634   : > { %1337 = vmatpush1.bf16.msra.mxu0 %v1325_v48 }
 0x635   : > { %v1293_v12 = vpop.permute.xlu1 %1292 }
 0x636   : > { %v1295_v15 = vsel %vm360_vm6, %v1293_v12, %v1291_v9  ;;  %v1294_v22 = vsel %vm360_vm6, %v1291_v9, %v1293_v12 }
 0x637   : > { %v1297_v23 = vmul.f32 %v2530_v20, %v1295_v15  ;;  %v1275_v24 = vpop.permute.xlu0 %1274  ;;  %v1312_v28 = vpack.c.bf16 %v1294_v22, %v1288_v25 }
 0x639   : > { %v1277_v26 = vpop.permute.xlu1 %1276  ;;  %v1313_v27 = vpack.c.bf16 %v1297_v23, %v1289_v17 }
 0x63a   : > { %v1278_v29 = vsel %vm342_vm3, %v1275_v24, %v1277_v26  ;;  %v1279_v13 = vsel %vm342_vm3, %v1277_v26, %v1275_v24 }
 0x63b   : > { %v1280_v32 = vmul.f32 %v2512_v14, %v1278_v29  ;;  %v1281_v0 = vmul.f32 %v2516_v16, %v1279_v13  ;;  %1338 = vmatprep.subr.bf16.mxu0 %v1313_v27  ;;  %v1259_v41 = vpop.permute.xlu0 %1258  ;;  %v1376_v29 = vld [vmem:[%s3697_s3 + $0x38] sm:$0xf] }
 0x63c   : > { %1339 = vmatpush1.bf16.msra.mxu0 %v1312_v28  ;;  %v803_v13 = vld [vmem:[%s3697_s3 + $0x18] sm:$0xf] }
 0x63d   : > { %v1310_v42 = vpack.c.bf16 %v1280_v32, %v3121_v56  ;;  %v1261_v39 = vpop.permute.xlu1 %1260  ;;  %v1311_v44 = vpack.c.bf16 %v1281_v0, %v3124_v58  ;;  %v1539_v32 = vld [vmem:[%s3697_s3 + $0x40] sm:$0xf] }
 0x63e   : > { %v1262_v46 = vsel %vm324_vm5, %v1259_v41, %v1261_v39  ;;  %v1263_v47 = vsel %vm324_vm5, %v1261_v39, %v1259_v41 }
 0x63f   : > { %1340 = vmatprep.subr.bf16.mxu0 %v1311_v44  ;;  %v1267_v45 = vpop.permute.xlu0 %1266  ;;  %v1264_v30 = vmul.f32 %v2614_v11, %v1263_v47  ;;  %v1265_v52 = vmul.f32 %v2516_v16, %v1262_v46 }
 0x640   : > { %1341 = vmatpush1.bf16.msra.mxu0 %v1310_v42 }
 0x641   : > { %v1269_v36 = vpop.permute.xlu1 %1268 }
 0x642   : > { %v1270_v50 = vsel %vm333_vm13, %v1267_v45, %v1269_v36  ;;  %v1271_v51 = vsel %vm333_vm13, %v1269_v36, %v1267_v45 }
 0x643   : > { %v1272_v53 = vmul.f32 %v2559_v34, %v1271_v51  ;;  %v1273_v54 = vmul.f32 %v2586_v59, %v1270_v50  ;;  %v1243_v55 = vpop.permute.xlu0 %1242 }
 0x645   : > { %v1308_v57 = vpack.c.bf16 %v1272_v53, %v1264_v30  ;;  %v1245_v18 = vpop.permute.xlu1 %1244  ;;  %v1309_v19 = vpack.c.bf16 %v1273_v54, %v1265_v52 }
 0x646   : > { %v1246_v60 = vsel %vm306_vm2, %v1243_v55, %v1245_v18  ;;  %v1247_v61 = vsel %vm306_vm2, %v1245_v18, %v1243_v55 }
 0x647   : > { %1342 = vmatprep.subr.bf16.mxu0 %v1309_v19  ;;  %v1249_v63 = vmul.f32 %v2586_v59, %v1246_v60  ;;  %v1251_v3 = vpop.permute.xlu0 %1250  ;;  %v1248_v7 = vmul.f32 %v2599_v4, %v1247_v61 }
 0x648   : > { %1343 = vmatpush1.bf16.msra.mxu0 %v1308_v57 }
 0x649   : > { %v1253_v37 = vpop.permute.xlu1 %1252 }
 0x64a   : > { %v1254_v38 = vsel %vm315_vm15, %v1251_v3, %v1253_v37  ;;  %v1255_v6 = vsel %vm315_vm15, %v1253_v37, %v1251_v3 }
 0x64b   : > { %v1256_v8 = vmul.f32 %v2594_v62, %v1255_v6  ;;  %v1307_v9 = vpack.c.bf16 %v1254_v38, %v1249_v63 }
 0x64d   : > { %v1306_v48 = vpack.c.bf16 %v1256_v8, %v1248_v7  ;;  %1344 = vmatprep.subr.bf16.mxu0 %v1307_v9 }
 0x64f   : > { %1345 = vmatpush1.bf16.msra.mxu0 %v1306_v48 }
 0x652   : > { %2351 = vmatmul.mubr.msk.bf16.vlgmr.msra.gmra.mxu0 %vm1048_vm8, %v1240_v49 }
 0x653   : > { %1730 = vmatprep.mubr.bf16.mxu0 %v2407_v2 }
 0x654   : > { %v1319_v10 = vpop.permute.xlu0 %1318 }
 0x712   : > { %v1364_v12 = vpop.f32.mrf.mxu0 }
 0x713   : > { %v1365_v15 = vadd.f32 %v1364_v12, %v1319_v10 }
 0x714   : > { %v1366_v17 = vpop.f32.mrf.mxu0 }
 0x715   : > { %v1371_v22 = vmul.f32 0.01, %v1365_v15  ;;  %v1367_v23 = vadd.f32 %v1366_v17, %v1319_v10 }
 0x716   : > { %v1368_v24 = vpop.f32.mrf.mxu0 }
 0x717   : > { %v1373_v25 = vmax.f32 %v1365_v15, %v1371_v22  ;;  %v1372_v26 = vmul.f32 0.01, %v1367_v23 }
 0x718   : > { %v1369_v27 = vpop.f32.mrf.mxu0 }
 0x719   : > { %v1374_v28 = vmax.f32 %v1367_v23, %v1372_v26  ;;  %1433 = vrot.lane.b32.xlu1 %v1373_v25, %s2402_s22 }
 0x71b   : > { %1435 = vrot.lane.b32.xlu0 %v1374_v28, %s2402_s22 }
 0x71d   : > { %1409 = vrot.lane.b32.xlu1 %v1373_v25, %s2401_s21 }
 0x71f   : > { %1411 = vrot.lane.b32.xlu0 %v1374_v28, %s2401_s21 }
 0x721   : > { %1425 = vrot.lane.b32.xlu1 %v1373_v25, %s2403_s23 }
 0x723   : > { %1427 = vrot.lane.b32.xlu0 %v1374_v28, %s2403_s23 }
 0x725   : > { %1417 = vrot.lane.b32.xlu1 %v1373_v25, %s2404_s24 }
 0x727   : > { %1419 = vrot.lane.b32.xlu0 %v1374_v28, %s2404_s24 }
 0x729   : > { %1401 = vrot.lane.b32.xlu1 %v1373_v25, %s2405_s25 }
 0x72b   : > { %1403 = vrot.lane.b32.xlu0 %v1374_v28, %s2405_s25 }
 0x72d   : > { %1385 = vrot.lane.b32.xlu1 %v1373_v25, %s2406_s26 }
 0x72f   : > { %1387 = vrot.lane.b32.xlu0 %v1374_v28, %s2406_s26 }
 0x731   : > { %1377 = vrot.lane.b32.xlu1 %v1373_v25, %s2408_s27 }
 0x733   : > { %1379 = vrot.lane.b32.xlu0 %v1374_v28, %s2408_s27 }
 0x735   : > { %1393 = vrot.lane.b32.xlu1 %v1373_v25, %s2409_s28 }
 0x737   : > { %1395 = vrot.lane.b32.xlu0 %v1374_v28, %s2409_s28 }
 0x739   : > { %1481 = vperm.xlu1 %2390, %v1376_v29  }
 0x73b   : > { %908 = vperm.xlu0 %2389, %v803_v13  }
 0x73d   : > { %1544 = vperm.xlu1 %2390, %v1539_v32  }
 0x78b   : > { %v1434_v0 = vpop.permute.xlu1 %1433 }
 0x78d   : > { %v1436_v41 = vpop.permute.xlu0 %1435 }
 0x78e   : > { %v1437_v42 = vsel %vm369_vm7, %v1434_v0, %v1436_v41  ;;  %v1438_v39 = vsel %vm369_vm7, %v1436_v41, %v1434_v0 }
 0x78f   : > { %v1439_v44 = vmul.f32 %v2512_v14, %v1437_v42  ;;  %v1440_v45 = vmul.f32 %v2533_v21, %v1438_v39  ;;  %v1410_v46 = vpop.permute.xlu1 %1409 }
 0x791   : > { %v1477_v47 = vpack.c.bf16 %v1439_v44, %v1439_v44  ;;  %v1478_v36 = vpack.c.bf16 %v1440_v45, %v1440_v45  ;;  %v1412_v50 = vpop.permute.xlu0 %1411 }
 0x792   : > { %v1413_v51 = vsel %vm342_vm3, %v1410_v46, %v1412_v50  ;;  %v1414_v30 = vsel %vm342_vm3, %v1412_v50, %v1410_v46 }
 0x793   : > { %2352 = vmatprep.subr.msk.bf16.mxu1 %vm422_vm11, %v1478_v36  ;;  %v1426_v52 = vpop.permute.xlu1 %1425  ;;  %v1488_v53 = vsel %vm422_vm11, %v1477_v47, 0  ;;  %v1415_v54 = vmul.f32 %v2512_v14, %v1413_v51  ;;  %v1416_v55 = vmul.f32 %v2516_v16, %v1414_v30 }
 0x794   : > { %1504 = vmatpush1.bf16.msra.mxu1 %v1488_v53 }
 0x795   : > { %v1428_v57 = vpop.permute.xlu0 %1427  ;;  %v1455_v63 = vrot.slane %v1415_v54, 4  ;;  %v1456_v3 = vrot.slane %v1416_v55, 4 }
 0x796   : > { %v1430_v18 = vsel %vm360_vm6, %v1428_v57, %v1426_v52  ;;  %v1429_v61 = vsel %vm360_vm6, %v1426_v52, %v1428_v57 }
 0x797   : > { %v1432_v19 = vmul.f32 %v2530_v20, %v1430_v18  ;;  %v1418_v60 = vpop.permute.xlu1 %1417  ;;  %v1461_v7 = vrot.slane %v1429_v61, 4  ;;  %v1469_v10 = vsel %vm398_vm12, %v1373_v25, %v1455_v63  ;;  %v1470_v17 = vsel %vm398_vm12, %v1374_v28, %v1456_v3 }
 0x799   : > { %v1420_v37 = vpop.permute.xlu0 %1419  ;;  %v1462_v8 = vrot.slane %v1432_v19, 4 }
 0x79a   : > { %v1421_v38 = vsel %vm351_vm10, %v1418_v60, %v1420_v37  ;;  %v1422_v6 = vsel %vm351_vm10, %v1420_v37, %v1418_v60 }
 0x79b   : > { %v1423_v9 = vmul.f32 %v2559_v34, %v1421_v38  ;;  %v1424_v48 = vmul.f32 %v2562_v35, %v1422_v6  ;;  %v1402_v49 = vpop.permute.xlu1 %1401  ;;  %v1541_v38 = vpack.c.bf16 %v3124_v58, %v3124_v58  ;;  %v1540_v6 = vpack.c.bf16 %v3121_v56, %v3121_v56  ;;  %v1538_v58 = vld [vmem:[%s3696_s2 + $0x40] sm:$0x3] }
 0x79d   : > { %v1471_v12 = vsel %vm398_vm12, %v1423_v9, %v1461_v7  ;;  %v1404_v15 = vpop.permute.xlu0 %1403  ;;  %v1472_v22 = vsel %vm398_vm12, %v1424_v48, %v1462_v8  ;;  %v1375_v7 = vld [vmem:[%s3696_s2 + $0x38] sm:$0x3]  ;;  %v1552_v8 = vsel %vm398_vm12, %v1540_v6, 0 }
 0x79e   : > { %v1476_v23 = vpack.c.bf16 %v1472_v22, %v1470_v17  ;;  %v1475_v24 = vpack.c.bf16 %v1471_v12, %v1469_v10  ;;  %v1405_v29 = vsel %vm333_vm13, %v1402_v49, %v1404_v15  ;;  %v1406_v13 = vsel %vm333_vm13, %v1404_v15, %v1402_v49 }
 0x79f   : > { %v1386_v26 = vpop.permute.xlu1 %1385  ;;  %v1407_v28 = vmul.f32 %v2559_v34, %v1406_v13  ;;  %v1408_v41 = vmul.f32 %v2586_v59, %v1405_v29 }
 0x7a0   : > { %1505 = vmatprep.subr.bf16.mxu1 %v1476_v23 }
 0x7a1   : > { %v1388_v27 = vpop.permute.xlu0 %1387  ;;  %1506 = vmatpush1.bf16.msra.mxu1 %v1475_v24  ;;  %v1449_v51 = vrot.slane %v1407_v28, 4  ;;  %v1450_v30 = vrot.slane %v1408_v41, 4 }
 0x7a2   : > { %v1390_v32 = vsel %vm315_vm15, %v1388_v27, %v1386_v26  ;;  %v1389_v45 = vsel %vm315_vm15, %v1386_v26, %v1388_v27 }
 0x7a3   : > { %v1378_v25 = vpop.permute.xlu1 %1377  ;;  %v1391_v44 = vmul.f32 %v2594_v62, %v1390_v32  ;;  %v1444_v55 = vrot.slane %v1389_v45, 4 }
 0x7a5   : > { %v1380_v0 = vpop.permute.xlu0 %1379  ;;  %v1443_v54 = vrot.slane %v1391_v44, 4 }
 0x7a6   : > { %v1381_v42 = vsel %vm306_vm2, %v1378_v25, %v1380_v0  ;;  %v1382_v39 = vsel %vm306_vm2, %v1380_v0, %v1378_v25 }
 0x7a7   : > { %v1383_v46 = vmul.f32 %v2599_v4, %v1382_v39  ;;  %v1384_v47 = vmul.f32 %v2586_v59, %v1381_v42  ;;  %v1394_v36 = vpop.permute.xlu1 %1393 }
 0x7a9   : > { %v1396_v50 = vpop.permute.xlu0 %1395  ;;  %v1465_v19 = vsel %vm398_vm12, %v1383_v46, %v1443_v54  ;;  %v1466_v61 = vsel %vm398_vm12, %v1384_v47, %v1444_v55 }
 0x7aa   : > { %v1397_v52 = vsel %vm324_vm5, %v1394_v36, %v1396_v50  ;;  %v1398_v53 = vsel %vm324_vm5, %v1396_v50, %v1394_v36 }
 0x7ab   : > { %v1399_v57 = vmul.f32 %v2614_v11, %v1398_v53  ;;  %v1400_v18 = vmul.f32 %v2516_v16, %v1397_v52 }
 0x7ad   : > { %v1467_v60 = vsel %vm398_vm12, %v1399_v57, %v1449_v51  ;;  %v1468_v63 = vsel %vm398_vm12, %v1400_v18, %v1450_v30 }
 0x7ae   : > { %v1474_v3 = vpack.c.bf16 %v1468_v63, %v1466_v61  ;;  %v1473_v37 = vpack.c.bf16 %v1467_v60, %v1465_v19 }
 0x7b0   : > { %1507 = vmatprep.subr.bf16.mxu1 %v1474_v3 }
 0x7b1   : > { %1508 = vmatpush1.bf16.msra.mxu1 %v1473_v37 }
 0x7b2   : > { %2354 = vmatprep.subr.msk.bf16.mxu1 %vm398_vm12, %v1541_v38 }
 0x7b4   : > { %2353 = vmatmul.mubr.msk.bf16.vlgmr.msra.gmra.mxu1 %vm418_vm0, %v1375_v7  ;;  %v1482_v9 = vpop.permute.xlu1 %1481 }
 0x7b5   : > { %1572 = vmatpush1.bf16.msra.mxu1 %v1552_v8  ;;  %1589 = vmatprep.mubr.bf16.mxu1 %v2407_v2 }
 0x7b6   : > { %v909_v56 = vpop.permute.xlu0 %908 }
 0x7b7   : > { %v955_v49 = vadd.f32 %v3116_v40, %v909_v56  ;;  %v957_v15 = vadd.f32 %v3118_v43, %v909_v56 }
 0x7b8   : > { %v1545_v13 = vpop.permute.xlu1 %1544 }
 0x7b9   : > { %v961_v23 = vmul.f32 0.01, %v955_v49  ;;  %v962_v27 = vmul.f32 0.01, %v957_v15 }
 0x7bb   : > { %v963_v32 = vmax.f32 %v955_v49, %v961_v23  ;;  %v964_v42 = vmax.f32 %v957_v15, %v962_v27 }
 0x7bc   : > { %2355 = vmatmul.mubr.msk.bf16.vlgmr.msra.gmra.mxu1 %vm1547_vm9, %v1538_v58 }
 0x7bd   : > { %1865 = vmatprep.mubr.bf16.mxu1 %v2407_v2  ;;  %v965_v43 = vadd.f32 %v963_v32, %v2730_v31  ;;  %v966_v50 = vadd.f32 %v964_v42, %v2733_v33  ;;  %v1609_v31 = vld [vmem:[%s3697_s3 + $0x48] sm:$0xff] }
 0x874   : > { %v1527_v48 = vpop.f32.mrf.mxu1 }
 0x875   : > { %v1528_v10 = vadd.f32 %v1527_v48, %v1482_v9 }
 0x876   : > { %v1529_v12 = vpop.f32.mrf.mxu1 }
 0x877   : > { %v1530_v17 = vadd.f32 %v1529_v12, %v1482_v9  ;;  %v1534_v24 = vmul.f32 0.01, %v1528_v10 }
 0x878   : > { %v1531_v22 = vpop.f32.mrf.mxu1 }
 0x879   : > { %v1535_v29 = vmul.f32 0.01, %v1530_v17  ;;  %v1536_v0 = vmax.f32 %v1528_v10, %v1534_v24 }
 0x87a   : > { %v1532_v26 = vpop.f32.mrf.mxu1 }
 0x87b   : > { %v1537_v39 = vmax.f32 %v1530_v17, %v1535_v29 }
 0x87c   : > { %v1591_v25 = vpop.f32.mrf.mxu1 }
 0x87d   : > { %v1592_v28 = vadd.f32 %v1591_v25, %v1545_v13 }
 0x87e   : > { %v1593_v41 = vpop.f32.mrf.mxu1 }
 0x87f   : > { %v1598_v40 = vadd.f32 %v1592_v28, %v1536_v0  ;;  %v1594_v44 = vadd.f32 %v1593_v41, %v1545_v13 }
 0x880   : > { %v1595_v45 = vpop.f32.mrf.mxu1 }
 0x881   : > { %v1602_v46 = vrot.slane %v1598_v40, 4  ;;  %v1599_v47 = vadd.f32 %v1594_v44, %v1537_v39 }
 0x882   : > { %v1596_v36 = vpop.f32.mrf.mxu1 }
 0x883   : > { %v3318_v51 = vsel %vm398_vm12, %v965_v43, %v1602_v46  ;;  %v1603_v30 = vrot.slane %v1599_v47, 4 }
 0x884   : > { %1666 = vrot.lane.b32.xlu0 %v3318_v51, %s2402_s22 }
 0x885   : > { %v3323_v52 = vsel %vm398_vm12, %v966_v50, %v1603_v30 }
 0x886   : > { %1668 = vrot.lane.b32.xlu1 %v3323_v52, %s2402_s22 }
 0x888   : > { %1650 = vrot.lane.b32.xlu0 %v3318_v51, %s2404_s24 }
 0x88a   : > { %1652 = vrot.lane.b32.xlu1 %v3323_v52, %s2404_s24 }
 0x88c   : > { %1658 = vrot.lane.b32.xlu0 %v3318_v51, %s2403_s23 }
 0x88e   : > { %1660 = vrot.lane.b32.xlu1 %v3323_v52, %s2403_s23 }
 0x890   : > { %1642 = vrot.lane.b32.xlu0 %v3318_v51, %s2401_s21 }
 0x892   : > { %1644 = vrot.lane.b32.xlu1 %v3323_v52, %s2401_s21 }
 0x894   : > { %1626 = vrot.lane.b32.xlu0 %v3318_v51, %s2409_s28 }
 0x896   : > { %1628 = vrot.lane.b32.xlu1 %v3323_v52, %s2409_s28 }
 0x898   : > { %1634 = vrot.lane.b32.xlu0 %v3318_v51, %s2405_s25 }
 0x89a   : > { %1636 = vrot.lane.b32.xlu1 %v3323_v52, %s2405_s25 }
 0x89c   : > { %1610 = vrot.lane.b32.xlu0 %v3318_v51, %s2408_s27 }
 0x89e   : > { %1612 = vrot.lane.b32.xlu1 %v3323_v52, %s2408_s27 }
 0x8a0   : > { %1618 = vrot.lane.b32.xlu0 %v3318_v51, %s2406_s26 }
 0x8a2   : > { %1620 = vrot.lane.b32.xlu1 %v3323_v52, %s2406_s26 }
 0x8a4   : > { %1686 = vperm.xlu0 %2389, %v1609_v31  }
 0x8f6   : > { %v1667_v33 = vpop.permute.xlu0 %1666 }
 0x8f8   : > { %v1669_v53 = vpop.permute.xlu1 %1668 }
 0x8f9   : > { %v1670_v54 = vsel %vm369_vm7, %v1667_v33, %v1669_v53  ;;  %v1671_v55 = vsel %vm369_vm7, %v1669_v53, %v1667_v33 }
 0x8fa   : > { %v1672_v57 = vmul.f32 %v2512_v14, %v1670_v54  ;;  %v1673_v18 = vmul.f32 %v2533_v21, %v1671_v55  ;;  %v1651_v19 = vpop.permute.xlu0 %1650 }
 0x8fc   : > { %v1682_v60 = vpack.c.bf16 %v1672_v57, %v1672_v57  ;;  %v1683_v61 = vpack.c.bf16 %v1673_v18, %v1673_v18  ;;  %v1653_v63 = vpop.permute.xlu1 %1652 }
 0x8fd   : > { %v1655_v38 = vsel %vm351_vm10, %v1653_v63, %v1651_v19  ;;  %v1654_v6 = vsel %vm351_vm10, %v1651_v19, %v1653_v63 }
 0x8fe   : > { %2356 = vmatprep.subr.msk.bf16.mxu0 %vm398_vm12, %v1683_v61  ;;  %v1659_v3 = vpop.permute.xlu0 %1658  ;;  %v1693_v37 = vsel %vm398_vm12, %v1682_v60, 0  ;;  %v1657_v58 = vmul.f32 %v2562_v35, %v1655_v38  ;;  %v1656_v49 = vmul.f32 %v2559_v34, %v1654_v6  ;;  %v1608_v61 = vld [vmem:[%s3696_s2 + $0x48] sm:$0xf] }
 0x8ff   : > { %1705 = vmatpush1.bf16.msra.mxu0 %v1693_v37 }
 0x900   : > { %v1661_v7 = vpop.permute.xlu1 %1660 }
 0x901   : > { %v1663_v8 = vsel %vm360_vm6, %v1661_v7, %v1659_v3  ;;  %v1662_v56 = vsel %vm360_vm6, %v1659_v3, %v1661_v7 }
 0x902   : > { %v1665_v9 = vmul.f32 %v2530_v20, %v1663_v8  ;;  %v1643_v48 = vpop.permute.xlu0 %1642  ;;  %v1680_v15 = vpack.c.bf16 %v1662_v56, %v1656_v49  ;;  %v1744_v49 = vld [vmem:[%s3697_s3 + $0x50] sm:$0xff] }
 0x904   : > { %v1645_v10 = vpop.permute.xlu1 %1644  ;;  %v1681_v12 = vpack.c.bf16 %v1665_v9, %v1657_v58 }
 0x905   : > { %v1646_v17 = vsel %vm342_vm3, %v1643_v48, %v1645_v10  ;;  %v1647_v22 = vsel %vm342_vm3, %v1645_v10, %v1643_v48 }
 0x906   : > { %v1648_v23 = vmul.f32 %v2512_v14, %v1646_v17  ;;  %v1649_v24 = vmul.f32 %v2516_v16, %v1647_v22  ;;  %1706 = vmatprep.subr.bf16.mxu0 %v1681_v12  ;;  %v1627_v26 = vpop.permute.xlu0 %1626 }
 0x907   : > { %1707 = vmatpush1.bf16.msra.mxu0 %v1680_v15 }
 0x908   : > { %v1678_v27 = vpack.c.bf16 %v1648_v23, %v3318_v51  ;;  %v1629_v29 = vpop.permute.xlu1 %1628  ;;  %v1679_v13 = vpack.c.bf16 %v1649_v24, %v3323_v52 }
 0x909   : > { %v1630_v32 = vsel %vm324_vm5, %v1627_v26, %v1629_v29  ;;  %v1631_v0 = vsel %vm324_vm5, %v1629_v29, %v1627_v26 }
 0x90a   : > { %1708 = vmatprep.subr.bf16.mxu0 %v1679_v13  ;;  %v1635_v25 = vpop.permute.xlu0 %1634  ;;  %v1632_v39 = vmul.f32 %v2614_v11, %v1631_v0  ;;  %v1633_v40 = vmul.f32 %v2516_v16, %v1630_v32 }
 0x90b   : > { %1709 = vmatpush1.bf16.msra.mxu0 %v1678_v27 }
 0x90c   : > { %v1637_v28 = vpop.permute.xlu1 %1636 }
 0x90d   : > { %v1638_v41 = vsel %vm333_vm13, %v1635_v25, %v1637_v28  ;;  %v1639_v42 = vsel %vm333_vm13, %v1637_v28, %v1635_v25 }
 0x90e   : > { %v1640_v44 = vmul.f32 %v2559_v34, %v1639_v42  ;;  %v1641_v45 = vmul.f32 %v2586_v59, %v1638_v41  ;;  %v1611_v43 = vpop.permute.xlu0 %1610 }
 0x910   : > { %v1676_v46 = vpack.c.bf16 %v1640_v44, %v1632_v39  ;;  %v1613_v47 = vpop.permute.xlu1 %1612  ;;  %v1677_v36 = vpack.c.bf16 %v1641_v45, %v1633_v40 }
 0x911   : > { %v1614_v50 = vsel %vm306_vm2, %v1611_v43, %v1613_v47  ;;  %v1615_v30 = vsel %vm306_vm2, %v1613_v47, %v1611_v43 }
 0x912   : > { %1710 = vmatprep.subr.bf16.mxu0 %v1677_v36  ;;  %v1617_v31 = vmul.f32 %v2586_v59, %v1614_v50  ;;  %v1619_v33 = vpop.permute.xlu0 %1618  ;;  %v1616_v57 = vmul.f32 %v2599_v4, %v1615_v30 }
 0x913   : > { %1711 = vmatpush1.bf16.msra.mxu0 %v1676_v46 }
 0x914   : > { %v1621_v53 = vpop.permute.xlu1 %1620 }
 0x915   : > { %v1622_v54 = vsel %vm315_vm15, %v1619_v33, %v1621_v53  ;;  %v1623_v55 = vsel %vm315_vm15, %v1621_v53, %v1619_v33 }
 0x916   : > { %v1624_v18 = vmul.f32 %v2594_v62, %v1623_v55  ;;  %v1675_v19 = vpack.c.bf16 %v1622_v54, %v1617_v31 }
 0x918   : > { %v1674_v60 = vpack.c.bf16 %v1624_v18, %v1616_v57  ;;  %1712 = vmatprep.subr.bf16.mxu0 %v1675_v19 }
 0x91a   : > { %1713 = vmatpush1.bf16.msra.mxu0 %v1674_v60 }
 0x91d   : > { %2357 = vmatmul.mubr.msk.bf16.vlgmr.msra.gmra.mxu0 %vm1048_vm8, %v1608_v61 }
 0x91e   : > { %2002 = vmatprep.mubr.bf16.mxu0 %v2407_v2 }
 0x91f   : > { %v1687_v63 = vpop.permute.xlu0 %1686 }
 0x9dd   : > { %v1732_v3 = vpop.f32.mrf.mxu0 }
 0x9de   : > { %v1733_v37 = vadd.f32 %v1732_v3, %v1687_v63 }
 0x9df   : > { %v1734_v38 = vpop.f32.mrf.mxu0 }
 0x9e0   : > { %v1739_v6 = vmul.f32 0.01, %v1733_v37  ;;  %v1735_v7 = vadd.f32 %v1734_v38, %v1687_v63 }
 0x9e1   : > { %v1736_v8 = vpop.f32.mrf.mxu0 }
 0x9e2   : > { %v3413_v58 = vmax.f32 %v1733_v37, %v1739_v6  ;;  %v1740_v56 = vmul.f32 0.01, %v1735_v7 }
 0x9e3   : > { %v1737_v9 = vpop.f32.mrf.mxu0 }
 0x9e4   : > { %v1742_v48 = vmax.f32 %v1735_v7, %v1740_v56  ;;  %1801 = vrot.lane.b32.xlu1 %v3413_v58, %s2402_s22 }
 0x9e6   : > { %1803 = vrot.lane.b32.xlu0 %v1742_v48, %s2402_s22 }
 0x9e8   : > { %1785 = vrot.lane.b32.xlu1 %v3413_v58, %s2404_s24 }
 0x9ea   : > { %1787 = vrot.lane.b32.xlu0 %v1742_v48, %s2404_s24 }
 0x9ec   : > { %1793 = vrot.lane.b32.xlu1 %v3413_v58, %s2403_s23 }
 0x9ee   : > { %1795 = vrot.lane.b32.xlu0 %v1742_v48, %s2403_s23 }
 0x9f0   : > { %1777 = vrot.lane.b32.xlu1 %v3413_v58, %s2401_s21 }
 0x9f2   : > { %1779 = vrot.lane.b32.xlu0 %v1742_v48, %s2401_s21 }
 0x9f4   : > { %1761 = vrot.lane.b32.xlu1 %v3413_v58, %s2409_s28 }
 0x9f6   : > { %1763 = vrot.lane.b32.xlu0 %v1742_v48, %s2409_s28 }
 0x9f8   : > { %1769 = vrot.lane.b32.xlu1 %v3413_v58, %s2405_s25 }
 0x9fa   : > { %1771 = vrot.lane.b32.xlu0 %v1742_v48, %s2405_s25 }
 0x9fc   : > { %1745 = vrot.lane.b32.xlu1 %v3413_v58, %s2408_s27 }
 0x9fe   : > { %1747 = vrot.lane.b32.xlu0 %v1742_v48, %s2408_s27 }
 0xa00   : > { %1753 = vrot.lane.b32.xlu1 %v3413_v58, %s2406_s26 }
 0xa02   : > { %1755 = vrot.lane.b32.xlu0 %v1742_v48, %s2406_s26 }
 0xa04   : > { %1821 = vperm.xlu1 %2390, %v1744_v49  }
 0xa56   : > { %v1802_v10 = vpop.permute.xlu1 %1801 }
 0xa58   : > { %v1804_v12 = vpop.permute.xlu0 %1803 }
 0xa59   : > { %v1805_v15 = vsel %vm369_vm7, %v1802_v10, %v1804_v12  ;;  %v1806_v17 = vsel %vm369_vm7, %v1804_v12, %v1802_v10 }
 0xa5a   : > { %v1807_v22 = vmul.f32 %v2512_v14, %v1805_v15  ;;  %v1808_v23 = vmul.f32 %v2533_v21, %v1806_v17  ;;  %v1786_v24 = vpop.permute.xlu1 %1785 }
 0xa5c   : > { %v1817_v26 = vpack.c.bf16 %v1807_v22, %v1807_v22  ;;  %v1818_v27 = vpack.c.bf16 %v1808_v23, %v1808_v23  ;;  %v1788_v29 = vpop.permute.xlu0 %1787 }
 0xa5d   : > { %v1790_v32 = vsel %vm351_vm10, %v1788_v29, %v1786_v24  ;;  %v1789_v0 = vsel %vm351_vm10, %v1786_v24, %v1788_v29 }
 0xa5e   : > { %2358 = vmatprep.subr.msk.bf16.mxu1 %vm398_vm12, %v1818_v27  ;;  %v1794_v13 = vpop.permute.xlu1 %1793  ;;  %v1828_v25 = vsel %vm398_vm12, %v1817_v26, 0  ;;  %v1792_v42 = vmul.f32 %v2562_v35, %v1790_v32  ;;  %v1791_v45 = vmul.f32 %v2559_v34, %v1789_v0  ;;  %v1743_v27 = vld [vmem:[%s3696_s2 + $0x50] sm:$0xf] }
 0xa5f   : > { %1840 = vmatpush1.bf16.msra.mxu1 %v1828_v25 }
 0xa60   : > { %v1796_v28 = vpop.permute.xlu0 %1795 }
 0xa61   : > { %v1798_v41 = vsel %vm360_vm6, %v1796_v28, %v1794_v13  ;;  %v1797_v39 = vsel %vm360_vm6, %v1794_v13, %v1796_v28 }
 0xa62   : > { %v1800_v40 = vmul.f32 %v2530_v20, %v1798_v41  ;;  %v1778_v44 = vpop.permute.xlu1 %1777  ;;  %v1815_v47 = vpack.c.bf16 %v1797_v39, %v1791_v45 }
 0xa64   : > { %v1780_v43 = vpop.permute.xlu0 %1779  ;;  %v1816_v46 = vpack.c.bf16 %v1800_v40, %v1792_v42 }
 0xa65   : > { %v1781_v36 = vsel %vm342_vm3, %v1778_v44, %v1780_v43  ;;  %v1782_v50 = vsel %vm342_vm3, %v1780_v43, %v1778_v44 }
 0xa66   : > { %v1783_v30 = vmul.f32 %v2512_v14, %v1781_v36  ;;  %v1784_v31 = vmul.f32 %v2516_v16, %v1782_v50  ;;  %1841 = vmatprep.subr.bf16.mxu1 %v1816_v46  ;;  %v1762_v33 = vpop.permute.xlu1 %1761 }
 0xa67   : > { %1842 = vmatpush1.bf16.msra.mxu1 %v1815_v47 }
 0xa68   : > { %v1813_v53 = vpack.c.bf16 %v1783_v30, %v3413_v58  ;;  %v1764_v54 = vpop.permute.xlu0 %1763  ;;  %v1814_v55 = vpack.c.bf16 %v1784_v31, %v1742_v48 }
 0xa69   : > { %v1765_v18 = vsel %vm324_vm5, %v1762_v33, %v1764_v54  ;;  %v1766_v19 = vsel %vm324_vm5, %v1764_v54, %v1762_v33 }
 0xa6a   : > { %1843 = vmatprep.subr.bf16.mxu1 %v1814_v55  ;;  %v1770_v57 = vpop.permute.xlu1 %1769  ;;  %v1767_v3 = vmul.f32 %v2614_v11, %v1766_v19  ;;  %v1768_v37 = vmul.f32 %v2516_v16, %v1765_v18 }
 0xa6b   : > { %1844 = vmatpush1.bf16.msra.mxu1 %v1813_v53 }
 0xa6c   : > { %v1772_v60 = vpop.permute.xlu0 %1771 }
 0xa6d   : > { %v1773_v61 = vsel %vm333_vm13, %v1770_v57, %v1772_v60  ;;  %v1774_v63 = vsel %vm333_vm13, %v1772_v60, %v1770_v57 }
 0xa6e   : > { %v1775_v38 = vmul.f32 %v2559_v34, %v1774_v63  ;;  %v1776_v6 = vmul.f32 %v2586_v59, %v1773_v61  ;;  %v1746_v7 = vpop.permute.xlu1 %1745 }
 0xa70   : > { %v1811_v8 = vpack.c.bf16 %v1775_v38, %v1767_v3  ;;  %v1748_v58 = vpop.permute.xlu0 %1747  ;;  %v1812_v56 = vpack.c.bf16 %v1776_v6, %v1768_v37 }
 0xa71   : > { %v1749_v9 = vsel %vm306_vm2, %v1746_v7, %v1748_v58  ;;  %v1750_v48 = vsel %vm306_vm2, %v1748_v58, %v1746_v7 }
 0xa72   : > { %1845 = vmatprep.subr.bf16.mxu1 %v1812_v56  ;;  %v1752_v49 = vmul.f32 %v2586_v59, %v1749_v9  ;;  %v1754_v10 = vpop.permute.xlu1 %1753  ;;  %v1751_v22 = vmul.f32 %v2599_v4, %v1750_v48 }
 0xa73   : > { %1846 = vmatpush1.bf16.msra.mxu1 %v1811_v8 }
 0xa74   : > { %v1756_v12 = vpop.permute.xlu0 %1755 }
 0xa75   : > { %v1757_v15 = vsel %vm315_vm15, %v1754_v10, %v1756_v12  ;;  %v1758_v17 = vsel %vm315_vm15, %v1756_v12, %v1754_v10 }
 0xa76   : > { %v1759_v23 = vmul.f32 %v2594_v62, %v1758_v17  ;;  %v1810_v24 = vpack.c.bf16 %v1757_v15, %v1752_v49 }
 0xa78   : > { %v1809_v26 = vpack.c.bf16 %v1759_v23, %v1751_v22  ;;  %1847 = vmatprep.subr.bf16.mxu1 %v1810_v24 }
 0xa7a   : > { %1848 = vmatpush1.bf16.msra.mxu1 %v1809_v26 }
 0xa7d   : > { %2359 = vmatmul.mubr.msk.bf16.vlgmr.msra.gmra.mxu1 %vm1048_vm8, %v1743_v27 }
 0xa7e   : > { %2165 = vmatprep.mubr.bf16.mxu1 %v2407_v2 }
 0xa7f   : > { %v1822_v29 = vpop.permute.xlu1 %1821 }
 0xb3d   : > { %v1867_v13 = vpop.f32.mrf.mxu1 }
 0xb3e   : > { %v1868_v25 = vadd.f32 %v1867_v13, %v1822_v29 }
 0xb3f   : > { %v1869_v32 = vpop.f32.mrf.mxu1 }
 0xb40   : > { %v1874_v0 = vmul.f32 0.01, %v1868_v25  ;;  %v1870_v28 = vadd.f32 %v1869_v32, %v1822_v29 }
 0xb41   : > { %v1871_v41 = vpop.f32.mrf.mxu1 }
 0xb42   : > { %v1876_v42 = vmax.f32 %v1868_v25, %v1874_v0  ;;  %v1875_v39 = vmul.f32 0.01, %v1870_v28 }
 0xb43   : > { %v1872_v40 = vpop.f32.mrf.mxu1 }
 0xb44   : > { %v3497_v44 = vadd.f32 %v1876_v42, %v3318_v51  ;;  %v1877_v45 = vmax.f32 %v1870_v28, %v1875_v39  ;;  %v1881_v51 = vld [vmem:[%s3697_s3 + $0x58] sm:$0xf] }
 0xb46   : > { %v3500_v43 = vadd.f32 %v1877_v45, %v3323_v52  ;;  %1938 = vrot.lane.b32.xlu0 %v3497_v44, %s2402_s22 }
 0xb48   : > { %1940 = vrot.lane.b32.xlu1 %v3500_v43, %s2402_s22  ;;  %v2181_v5 = vpack.c.bf16 %v3500_v43, %v3500_v43 }
 0xb4a   : > { %1922 = vrot.lane.b32.xlu0 %v3497_v44, %s2404_s24 }
 0xb4c   : > { %1924 = vrot.lane.b32.xlu1 %v3500_v43, %s2404_s24 }
 0xb4e   : > { %1930 = vrot.lane.b32.xlu0 %v3497_v44, %s2403_s23 }
 0xb50   : > { %1932 = vrot.lane.b32.xlu1 %v3500_v43, %s2403_s23 }
 0xb52   : > { %1914 = vrot.lane.b32.xlu0 %v3497_v44, %s2401_s21 }
 0xb54   : > { %1916 = vrot.lane.b32.xlu1 %v3500_v43, %s2401_s21 }
 0xb56   : > { %1898 = vrot.lane.b32.xlu0 %v3497_v44, %s2409_s28 }
 0xb58   : > { %1900 = vrot.lane.b32.xlu1 %v3500_v43, %s2409_s28 }
 0xb5a   : > { %1906 = vrot.lane.b32.xlu0 %v3497_v44, %s2405_s25 }
 0xb5c   : > { %1908 = vrot.lane.b32.xlu1 %v3500_v43, %s2405_s25 }
 0xb5e   : > { %1882 = vrot.lane.b32.xlu0 %v3497_v44, %s2408_s27 }
 0xb60   : > { %1884 = vrot.lane.b32.xlu1 %v3500_v43, %s2408_s27 }
 0xb62   : > { %1890 = vrot.lane.b32.xlu0 %v3497_v44, %s2406_s26 }
 0xb64   : > { %1892 = vrot.lane.b32.xlu1 %v3500_v43, %s2406_s26 }
 0xb66   : > { %1958 = vperm.xlu0 %2389, %v1881_v51  }
 0xbb8   : > { %v1939_v52 = vpop.permute.xlu0 %1938 }
 0xbba   : > { %v1941_v46 = vpop.permute.xlu1 %1940 }
 0xbbb   : > { %v1942_v47 = vsel %vm369_vm7, %v1939_v52, %v1941_v46  ;;  %v1943_v36 = vsel %vm369_vm7, %v1941_v46, %v1939_v52 }
 0xbbc   : > { %v1944_v50 = vmul.f32 %v2512_v14, %v1942_v47  ;;  %v1945_v30 = vmul.f32 %v2533_v21, %v1943_v36  ;;  %v1923_v31 = vpop.permute.xlu0 %1922 }
 0xbbe   : > { %v1954_v33 = vpack.c.bf16 %v1944_v50, %v1944_v50  ;;  %v1955_v53 = vpack.c.bf16 %v1945_v30, %v1945_v30  ;;  %v1925_v54 = vpop.permute.xlu1 %1924 }
 0xbbf   : > { %v1927_v18 = vsel %vm351_vm10, %v1925_v54, %v1923_v31  ;;  %v1926_v19 = vsel %vm351_vm10, %v1923_v31, %v1925_v54 }
 0xbc0   : > { %2360 = vmatprep.subr.msk.bf16.mxu0 %vm398_vm12, %v1955_v53  ;;  %v1931_v55 = vpop.permute.xlu0 %1930  ;;  %v1965_v57 = vsel %vm398_vm12, %v1954_v33, 0  ;;  %v1929_v63 = vmul.f32 %v2562_v35, %v1927_v18  ;;  %v1928_v6 = vmul.f32 %v2559_v34, %v1926_v19  ;;  %v1880_v53 = vld [vmem:[%s3696_s2 + $0x58] sm:$0x3] }
 0xbc1   : > { %1977 = vmatpush1.bf16.msra.mxu0 %v1965_v57 }
 0xbc2   : > { %v1933_v60 = vpop.permute.xlu1 %1932 }
 0xbc3   : > { %v1935_v61 = vsel %vm360_vm6, %v1933_v60, %v1931_v55  ;;  %v1934_v3 = vsel %vm360_vm6, %v1931_v55, %v1933_v60 }
 0xbc4   : > { %v1937_v37 = vmul.f32 %v2530_v20, %v1935_v61  ;;  %v1915_v38 = vpop.permute.xlu0 %1914  ;;  %v1952_v58 = vpack.c.bf16 %v1934_v3, %v1928_v6  ;;  %v2016_v6 = vld [vmem:[%s3697_s3 + $0x60] sm:$0xf] }
 0xbc6   : > { %v1917_v7 = vpop.permute.xlu1 %1916  ;;  %v1953_v8 = vpack.c.bf16 %v1937_v37, %v1929_v63 }
 0xbc7   : > { %v1918_v56 = vsel %vm342_vm3, %v1915_v38, %v1917_v7  ;;  %v1919_v9 = vsel %vm342_vm3, %v1917_v7, %v1915_v38  ;;  %v2179_v7 = vld [vmem:[%s3697_s3 + $0x68] sm:$0xf] }
 0xbc8   : > { %v1920_v48 = vmul.f32 %v2512_v14, %v1918_v56  ;;  %v1921_v49 = vmul.f32 %v2516_v16, %v1919_v9  ;;  %1978 = vmatprep.subr.bf16.mxu0 %v1953_v8  ;;  %v1899_v10 = vpop.permute.xlu0 %1898 }
 0xbc9   : > { %1979 = vmatpush1.bf16.msra.mxu0 %v1952_v58 }
 0xbca   : > { %v1950_v12 = vpack.c.bf16 %v1920_v48, %v3497_v44  ;;  %v1901_v15 = vpop.permute.xlu1 %1900  ;;  %v1951_v17 = vpack.c.bf16 %v1921_v49, %v3500_v43  ;;  %v2178_v43 = vld [vmem:[%s3696_s2 + $0x68] sm:$0x3] }
 0xbcb   : > { %v1902_v23 = vsel %vm324_vm5, %v1899_v10, %v1901_v15  ;;  %v1903_v24 = vsel %vm324_vm5, %v1901_v15, %v1899_v10 }
 0xbcc   : > { %1980 = vmatprep.subr.bf16.mxu0 %v1951_v17  ;;  %v1907_v22 = vpop.permute.xlu0 %1906  ;;  %v1904_v13 = vmul.f32 %v2614_v11, %v1903_v24  ;;  %v1905_v25 = vmul.f32 %v2516_v16, %v1902_v23 }
 0xbcd   : > { %1981 = vmatpush1.bf16.msra.mxu0 %v1950_v12 }
 0xbce   : > { %v1909_v26 = vpop.permute.xlu1 %1908 }
 0xbcf   : > { %v1910_v27 = vsel %vm333_vm13, %v1907_v22, %v1909_v26  ;;  %v1911_v29 = vsel %vm333_vm13, %v1909_v26, %v1907_v22 }
 0xbd0   : > { %v1912_v32 = vmul.f32 %v2559_v34, %v1911_v29  ;;  %v1913_v0 = vmul.f32 %v2586_v59, %v1910_v27  ;;  %v1883_v28 = vpop.permute.xlu0 %1882 }
 0xbd2   : > { %v1948_v41 = vpack.c.bf16 %v1912_v32, %v1904_v13  ;;  %v1885_v42 = vpop.permute.xlu1 %1884  ;;  %v1949_v39 = vpack.c.bf16 %v1913_v0, %v1905_v25 }
 0xbd3   : > { %v1886_v40 = vsel %vm306_vm2, %v1883_v28, %v1885_v42  ;;  %v1887_v45 = vsel %vm306_vm2, %v1885_v42, %v1883_v28 }
 0xbd4   : > { %1982 = vmatprep.subr.bf16.mxu0 %v1949_v39  ;;  %v1889_v51 = vmul.f32 %v2586_v59, %v1886_v40  ;;  %v1891_v52 = vpop.permute.xlu0 %1890  ;;  %v1888_v50 = vmul.f32 %v2599_v4, %v1887_v45 }
 0xbd5   : > { %1983 = vmatpush1.bf16.msra.mxu0 %v1948_v41 }
 0xbd6   : > { %v1893_v46 = vpop.permute.xlu1 %1892 }
 0xbd7   : > { %v1894_v47 = vsel %vm315_vm15, %v1891_v52, %v1893_v46  ;;  %v1895_v36 = vsel %vm315_vm15, %v1893_v46, %v1891_v52 }
 0xbd8   : > { %v1896_v30 = vmul.f32 %v2594_v62, %v1895_v36  ;;  %v1947_v31 = vpack.c.bf16 %v1894_v47, %v1889_v51 }
 0xbda   : > { %v1946_v33 = vpack.c.bf16 %v1896_v30, %v1888_v50  ;;  %1984 = vmatprep.subr.bf16.mxu0 %v1947_v31 }
 0xbdc   : > { %1985 = vmatpush1.bf16.msra.mxu0 %v1946_v33 }
 0xbdf   : > { %2361 = vmatmul.mubr.msk.bf16.vlgmr.msra.gmra.mxu0 %vm1048_vm8, %v1880_v53 }
 0xbe1   : > { %v1959_v54 = vpop.permute.xlu0 %1958 }
 0xc9f   : > { %v2004_v55 = vpop.f32.mrf.mxu0 }
 0xca0   : > { %v2005_v57 = vadd.f32 %v2004_v55, %v1959_v54 }
 0xca1   : > { %v2006_v18 = vpop.f32.mrf.mxu0 }
 0xca2   : > { %v2011_v19 = vmul.f32 0.01, %v2005_v57  ;;  %v2007_v60 = vadd.f32 %v2006_v18, %v1959_v54 }
 0xca3   : > { %v2008_v61 = vpop.f32.mrf.mxu0 }
 0xca4   : > { %v2013_v63 = vmax.f32 %v2005_v57, %v2011_v19  ;;  %v2012_v3 = vmul.f32 0.01, %v2007_v60 }
 0xca5   : > { %v2009_v37 = vpop.f32.mrf.mxu0 }
 0xca6   : > { %v2014_v38 = vmax.f32 %v2007_v60, %v2012_v3  ;;  %2073 = vrot.lane.b32.xlu1 %v2013_v63, %s2402_s22 }
 0xca8   : > { %2075 = vrot.lane.b32.xlu0 %v2014_v38, %s2402_s22 }
 0xcaa   : > { %2049 = vrot.lane.b32.xlu1 %v2013_v63, %s2401_s21 }
 0xcac   : > { %2051 = vrot.lane.b32.xlu0 %v2014_v38, %s2401_s21 }
 0xcae   : > { %2065 = vrot.lane.b32.xlu1 %v2013_v63, %s2403_s23 }
 0xcb0   : > { %2067 = vrot.lane.b32.xlu0 %v2014_v38, %s2403_s23 }
 0xcb2   : > { %2057 = vrot.lane.b32.xlu1 %v2013_v63, %s2404_s24 }
 0xcb4   : > { %2059 = vrot.lane.b32.xlu0 %v2014_v38, %s2404_s24 }
 0xcb6   : > { %2041 = vrot.lane.b32.xlu1 %v2013_v63, %s2405_s25 }
 0xcb8   : > { %2043 = vrot.lane.b32.xlu0 %v2014_v38, %s2405_s25 }
 0xcba   : > { %2025 = vrot.lane.b32.xlu1 %v2013_v63, %s2406_s26 }
 0xcbc   : > { %2027 = vrot.lane.b32.xlu0 %v2014_v38, %s2406_s26 }
 0xcbe   : > { %2017 = vrot.lane.b32.xlu1 %v2013_v63, %s2408_s27 }
 0xcc0   : > { %2019 = vrot.lane.b32.xlu0 %v2014_v38, %s2408_s27 }
 0xcc2   : > { %2033 = vrot.lane.b32.xlu1 %v2013_v63, %s2409_s28 }
 0xcc4   : > { %2035 = vrot.lane.b32.xlu0 %v2014_v38, %s2409_s28 }
 0xcc6   : > { %2121 = vperm.xlu1 %2390, %v2016_v6  }
 0xcc8   : > { %2184 = vperm.xlu0 %2389, %v2179_v7  }
 0xd18   : > { %v2074_v8 = vpop.permute.xlu1 %2073 }
 0xd1a   : > { %v2076_v58 = vpop.permute.xlu0 %2075 }
 0xd1b   : > { %v2077_v56 = vsel %vm369_vm7, %v2074_v8, %v2076_v58  ;;  %v2078_v9 = vsel %vm369_vm7, %v2076_v58, %v2074_v8 }
 0xd1c   : > { %v2079_v48 = vmul.f32 %v2512_v14, %v2077_v56  ;;  %v2080_v49 = vmul.f32 %v2533_v21, %v2078_v9  ;;  %v2050_v10 = vpop.permute.xlu1 %2049 }
 0xd1e   : > { %v2117_v12 = vpack.c.bf16 %v2079_v48, %v2079_v48  ;;  %v2118_v15 = vpack.c.bf16 %v2080_v49, %v2080_v49  ;;  %v2052_v17 = vpop.permute.xlu0 %2051 }
 0xd1f   : > { %v2053_v22 = vsel %vm342_vm3, %v2050_v10, %v2052_v17  ;;  %v2054_v23 = vsel %vm342_vm3, %v2052_v17, %v2050_v10 }
 0xd20   : > { %2362 = vmatprep.subr.msk.bf16.mxu1 %vm422_vm11, %v2118_v15  ;;  %v2066_v24 = vpop.permute.xlu1 %2065  ;;  %v2128_v26 = vsel %vm422_vm11, %v2117_v12, 0  ;;  %v2055_v27 = vmul.f32 %v2512_v14, %v2053_v22  ;;  %v2056_v21 = vmul.f32 %v2516_v16, %v2054_v23 }
 0xd21   : > { %2144 = vmatpush1.bf16.msra.mxu1 %v2128_v26 }
 0xd22   : > { %v2068_v29 = vpop.permute.xlu0 %2067  ;;  %v2095_v28 = vrot.slane %v2055_v27, 4  ;;  %v2096_v41 = vrot.slane %v2056_v21, 4 }
 0xd23   : > { %v2070_v13 = vsel %vm360_vm6, %v2068_v29, %v2066_v24  ;;  %v2069_v0 = vsel %vm360_vm6, %v2066_v24, %v2068_v29  ;;  %v2180_v24 = vpack.c.bf16 %v3497_v44, %v3497_v44 }
 0xd24   : > { %v2072_v25 = vmul.f32 %v2530_v20, %v2070_v13  ;;  %v2058_v32 = vpop.permute.xlu1 %2057  ;;  %v2101_v40 = vrot.slane %v2069_v0, 4  ;;  %v2109_v46 = vsel %vm398_vm12, %v2013_v63, %v2095_v28  ;;  %v2110_v50 = vsel %vm398_vm12, %v2014_v38, %v2096_v41 }
 0xd26   : > { %v2060_v42 = vpop.permute.xlu0 %2059  ;;  %v2102_v45 = vrot.slane %v2072_v25, 4 }
 0xd27   : > { %v2061_v39 = vsel %vm351_vm10, %v2058_v32, %v2060_v42  ;;  %v2062_v14 = vsel %vm351_vm10, %v2060_v42, %v2058_v32 }
 0xd28   : > { %v2063_v51 = vmul.f32 %v2559_v34, %v2061_v39  ;;  %v2064_v52 = vmul.f32 %v2562_v35, %v2062_v14  ;;  %v2042_v20 = vpop.permute.xlu1 %2041 }
 0xd2a   : > { %v2111_v47 = vsel %vm398_vm12, %v2063_v51, %v2101_v40  ;;  %v2044_v36 = vpop.permute.xlu0 %2043  ;;  %v2112_v30 = vsel %vm398_vm12, %v2064_v52, %v2102_v45 }
 0xd2b   : > { %v2116_v31 = vpack.c.bf16 %v2112_v30, %v2110_v50  ;;  %v2115_v33 = vpack.c.bf16 %v2111_v47, %v2109_v46  ;;  %v2045_v55 = vsel %vm333_vm13, %v2042_v20, %v2044_v36  ;;  %v2046_v35 = vsel %vm333_vm13, %v2044_v36, %v2042_v20  ;;  %v2392_v46 = vld [vmem:[%s2452_s20] sm:$0xff] }
 0xd2c   : > { %v2026_v53 = vpop.permute.xlu1 %2025  ;;  %v2047_v60 = vmul.f32 %v2559_v34, %v2046_v35  ;;  %v2048_v61 = vmul.f32 %v2586_v59, %v2045_v55 }
 0xd2d   : > { %2145 = vmatprep.subr.bf16.mxu1 %v2116_v31 }
 0xd2e   : > { %v2028_v54 = vpop.permute.xlu0 %2027  ;;  %2146 = vmatpush1.bf16.msra.mxu1 %v2115_v33  ;;  %v2089_v34 = vrot.slane %v2047_v60, 4  ;;  %v2090_v56 = vrot.slane %v2048_v61, 4 }
 0xd2f   : > { %v2030_v18 = vsel %vm315_vm15, %v2028_v54, %v2026_v53  ;;  %v2029_v38 = vsel %vm315_vm15, %v2026_v53, %v2028_v54 }
 0xd30   : > { %v2018_v57 = vpop.permute.xlu1 %2017  ;;  %v2031_v37 = vmul.f32 %v2594_v62, %v2030_v18  ;;  %v2084_v10 = vrot.slane %v2029_v38, 4 }
 0xd32   : > { %v2020_v19 = vpop.permute.xlu0 %2019  ;;  %v2083_v49 = vrot.slane %v2031_v37, 4 }
 0xd33   : > { %v2021_v63 = vsel %vm306_vm2, %v2018_v57, %v2020_v19  ;;  %v2022_v3 = vsel %vm306_vm2, %v2020_v19, %v2018_v57 }
 0xd34   : > { %v2023_v6 = vmul.f32 %v2599_v4, %v2022_v3  ;;  %v2024_v7 = vmul.f32 %v2586_v59, %v2021_v63  ;;  %v2034_v8 = vpop.permute.xlu1 %2033 }
 0xd36   : > { %v2036_v58 = vpop.permute.xlu0 %2035  ;;  %v2105_v4 = vsel %vm398_vm12, %v2023_v6, %v2083_v49  ;;  %v2106_v15 = vsel %vm398_vm12, %v2024_v7, %v2084_v10 }
 0xd37   : > { %v2037_v9 = vsel %vm324_vm5, %v2034_v8, %v2036_v58  ;;  %v2038_v48 = vsel %vm324_vm5, %v2036_v58, %v2034_v8 }
 0xd38   : > { %v2039_v62 = vmul.f32 %v2614_v11, %v2038_v48  ;;  %v2040_v12 = vmul.f32 %v2516_v16, %v2037_v9  ;;  %v2015_v16 = vld [vmem:[%s3696_s2 + $0x60] sm:$0x3]  ;;  %v2191_v11 = vsel %vm398_vm12, %v2180_v24, 0 }
 0xd3a   : > { %v2107_v59 = vsel %vm398_vm12, %v2039_v62, %v2089_v34  ;;  %v2108_v17 = vsel %vm398_vm12, %v2040_v12, %v2090_v56 }
 0xd3b   : > { %v2114_v22 = vpack.c.bf16 %v2108_v17, %v2106_v15  ;;  %v2113_v23 = vpack.c.bf16 %v2107_v59, %v2105_v4 }
 0xd3d   : > { %2147 = vmatprep.subr.bf16.mxu1 %v2114_v22 }
 0xd3e   : > { %2148 = vmatpush1.bf16.msra.mxu1 %v2113_v23 }
 0xd3f   : > { %2364 = vmatprep.subr.msk.bf16.mxu1 %vm398_vm12, %v2181_v5 }
 0xd41   : > { %2363 = vmatmul.mubr.msk.bf16.vlgmr.msra.gmra.mxu1 %vm418_vm0, %v2015_v16  ;;  %v2122_v44 = vpop.permute.xlu1 %2121 }
 0xd42   : > { %2211 = vmatpush1.bf16.msra.mxu1 %v2191_v11  ;;  %2228 = vmatprep.mubr.bf16.mxu1 %v2407_v2 }
 0xd43   : > { %v2185_v28 = vpop.permute.xlu0 %2184 }
 0xd49   : > { %2365 = vmatmul.mubr.msk.bf16.vlgmr.msra.gmra.mxu1 %vm1547_vm9, %v2178_v43 }
 0xe01   : > { %v2167_v26 = vpop.f32.mrf.mxu1 }
 0xe02   : > { %v2168_v27 = vadd.f32 %v2167_v26, %v2122_v44 }
 0xe03   : > { %v2169_v21 = vpop.f32.mrf.mxu1 }
 0xe04   : > { %v2170_v29 = vadd.f32 %v2169_v21, %v2122_v44  ;;  %v2174_v25 = vmul.f32 0.01, %v2168_v27 }
 0xe05   : > { %v2171_v13 = vpop.f32.mrf.mxu1 }
 0xe06   : > { %v2175_v0 = vmul.f32 0.01, %v2170_v29  ;;  %v2176_v2 = vmax.f32 %v2168_v27, %v2174_v25 }
 0xe07   : > { %v2172_v32 = vpop.f32.mrf.mxu1 }
 0xe08   : > { %v2177_v14 = vmax.f32 %v2170_v29, %v2175_v0 }
 0xe09   : > { %v2230_v41 = vpop.f32.mrf.mxu1 }
 0xe0a   : > { %v2231_v42 = vadd.f32 %v2230_v41, %v2185_v28 }
 0xe0b   : > { %v2232_v39 = vpop.f32.mrf.mxu1 }
 0xe0c   : > { %v2237_v40 = vadd.f32 %v2231_v42, %v2176_v2  ;;  %v2233_v45 = vadd.f32 %v2232_v39, %v2185_v28 }
 0xe0d   : > { %v2234_v51 = vpop.f32.mrf.mxu1 }
 0xe0e   : > { %v2238_v52 = vadd.f32 %v2233_v45, %v2177_v14  ;;  %v2239_v47 = vadd.f32 %v2392_v46, %v2237_v40 }
 0xe0f   : > { %v2235_v20 = vpop.f32.mrf.mxu1 }
 0xe10   : > { %v2240_v36 = vadd.f32 %v2238_v52, %v2463_v1 }
 0xe12   : > { %v2243_v50 = vcombine.low %v2239_v47, %v2240_v36 }
 0xe14   : > { %2245 = vst [vmem:[%s217_s18] sm:$0xff] %v2243_v50 }
 0xe15 PF: > { %s14_s15 = sadd.s32 1, %s2399_s15  }
 0xe16   : > { %p11_p4 = scmp.ge.s32.totalorder %s14_s15, 4  }
 0xe18   :  { %13 = sbr.rel (!%p11_p4) target bundleno = 1 (0x1), region = 69 }

</bundles_post_ra>
